<compile_context>
chip_gen: v5e
topology: v5e:2x2
jax: 0.10.0
libtpu: 0.0.40
codegen_flags: <defaults>
</compile_context>

<pallas_src>
import functools
import math

import jax
import jax.numpy as jnp
from jax.experimental import pallas as pl
from jax.experimental.pallas import tpu as pltpu

_EPS = 1e-6
_NEG_INF = -1e9


def _pick_vmem_limit():
    # Default scoped VMEM limits (16 MiB v5e / 32 MiB v6e,v7x) are too small for
    # resident weights + large tiles; raise it but keep ~25% headroom (v7x: 64 MiB).
    cap = 128 * 1024 * 1024
    try:
        cap = int(getattr(pltpu.get_tpu_info(), "vmem_capacity_bytes", cap))
    except Exception:
        pass
    return int(min(96 * 1024 * 1024, (cap * 3) // 4))


_VMEM_LIMIT = _pick_vmem_limit()


def _smem_spec():
    # Small LayerNorm (alpha, beta) tables live in SMEM, whole-array (not blocked).
    return pl.BlockSpec(memory_space=pltpu.MemorySpace.SMEM)


def _compiler_params():
    return pltpu.CompilerParams(dimension_semantics=("parallel",),
                                vmem_limit_bytes=_VMEM_LIMIT)


# ------------------------------ in-kernel helpers --------------------------- #

def _layernorm_rows(x, alpha, beta):
    # Matches the from-scratch torch LayerNormalization: mean over last dim,
    # UNBIASED std (torch.std default), eps added to std (not var), scalar alpha/beta.
    d = x.shape[-1]
    mean = jnp.mean(x, axis=-1, keepdims=True)
    diff = x - mean
    var = jnp.sum(diff * diff, axis=-1, keepdims=True) * (1.0 / (d - 1))
    std = jnp.sqrt(var)
    inv = pl.reciprocal(std + _EPS, approx=False)          # EUP, exact
    return alpha * diff * inv + beta


def _mha_fused_wo(q, k, v, bias, wo, ctx_ref, h):
    """Per-head softmax(Q K^T / sqrt(dk) + bias) V, heads written into a [Sq, D]
    VMEM scratch, followed by ONE full-depth ctx @ Wo matmul (MXU-friendly).

    q: [Sq, D] f32, k/v: [Sk, D] f32, bias: broadcastable to [Sq, Sk] (0 / -1e9),
    wo: [D, D] bf16, ctx_ref: VMEM [Sq, D] f32 scratch.  Returns [Sq, D] f32."""
    sq, d = q.shape
    sk = k.shape[0]
    dk = d // h
    q = q * (1.0 / math.sqrt(dk))                           # fold softmax scale once
    biasf = jnp.broadcast_to(bias.astype(jnp.float32), (sq, sk))  # hoisted, once
    for i in range(h):                                      # static loop; h is small
        sl = slice(i * dk, (i + 1) * dk)
        qi = q[:, sl].astype(jnp.bfloat16)
        ki = k[:, sl].astype(jnp.bfloat16)
        vi = v[:, sl].astype(jnp.bfloat16)
        s = jnp.einsum("qd,kd->qk", qi, ki,
                       preferred_element_type=jnp.float32) + biasf
        s = s - jnp.max(s, axis=-1, keepdims=True)
        p = jnp.exp(s)
        p = p * pl.reciprocal(jnp.sum(p, axis=-1, keepdims=True), approx=True)
        ctx_ref[:, sl] = jnp.dot(p.astype(jnp.bfloat16), vi,
                                 preferred_element_type=jnp.float32)
    return jnp.dot(ctx_ref[...].astype(jnp.bfloat16), wo,
                   preferred_element_type=jnp.float32)


# ----------------------------------- kernels -------------------------------- #

def _decoder_layer_kernel(x_ref, e_ref, tb_ref, sb_ref, ln_ref,
                          wqkv_ref, bqkv_ref, wo1_ref, bo1_ref,
                          wq_ref, bq_ref, wkv_ref, bkv_ref, wo2_ref, bo2_ref,
                          w1_ref, b1_ref, w2_ref, b2_ref,
                          o_ref, ctx_ref, *, h):
    x = x_ref[0].astype(jnp.float32)                        # [S, D]
    e = e_ref[0].astype(jnp.float32)                        # [Sk, D]
    d = x.shape[-1]

    # ---- self-attention sub-block (pre-norm residual, fused QKV) ----
    nx = _layernorm_rows(x, ln_ref[0, 0], ln_ref[0, 1])
    qkv = jnp.dot(nx.astype(jnp.bfloat16), wqkv_ref[...],
                  preferred_element_type=jnp.float32) + bqkv_ref[...]
    q, k, v = qkv[:, :d], qkv[:, d:2 * d], qkv[:, 2 * d:]
    attn = _mha_fused_wo(q, k, v, tb_ref[0, 0], wo1_ref[...], ctx_ref, h)
    x = x + attn + bo1_ref[...]

    # ---- cross-attention sub-block (fused KV from raw encoder output) ----
    nx = _layernorm_rows(x, ln_ref[1, 0], ln_ref[1, 1])
    q = jnp.dot(nx.astype(jnp.bfloat16), wq_ref[...],
                preferred_element_type=jnp.float32) + bq_ref[...]
    kv = jnp.dot(e.astype(jnp.bfloat16), wkv_ref[...],
                 preferred_element_type=jnp.float32) + bkv_ref[...]
    k, v = kv[:, :d], kv[:, d:]
    attn = _mha_fused_wo(q, k, v, sb_ref[0, 0], wo2_ref[...], ctx_ref, h)
    x = x + attn + bo2_ref[...]

    # ---- feed-forward sub-block ----
    nx = _layernorm_rows(x, ln_ref[2, 0], ln_ref[2, 1])
    hdn = jnp.dot(nx.astype(jnp.bfloat16), w1_ref[...],
                  preferred_element_type=jnp.float32) + b1_ref[...]
    hdn = jnp.maximum(hdn, 0.0)
    y = jnp.dot(hdn.astype(jnp.bfloat16), w2_ref[...],
                preferred_element_type=jnp.float32) + b2_ref[...]
    o_ref[0] = (x + y).astype(o_ref.dtype)


def _layernorm_kernel(x_ref, ln_ref, o_ref):
    x = x_ref[...].astype(jnp.float32)
    o_ref[...] = _layernorm_rows(x, ln_ref[0, 0], ln_ref[0, 1]).astype(o_ref.dtype)


# --------------------------------- wrappers --------------------------------- #

def _row_tile(n, max_tile=512):
    """Largest multiple-of-8 row tile <= max_tile dividing n (mem-bound ops want
    big tiles: ~85% of HBM roofline at 512 vs ~29% at 128)."""
    if n % 8 != 0:
        return n
    t = min(max_tile, n)
    t -= t % 8
    while t >= 8:
        if n % t == 0:
            return t
        t -= 8
    return n


def _mask_to_bias(mask, b):
    """[B,1,Mq,Mk] {0,1} keep-mask -> additive bias (0 / -1e9), bf16 (half the DMA)."""
    if mask.shape[0] != b:
        mask = jnp.broadcast_to(mask, (b,) + mask.shape[1:])
    return jnp.where(mask >= 0.5, 0.0, _NEG_INF).astype(jnp.bfloat16)


def decoder_layer_pallas(x, enc, src_bias, tgt_bias, p, h):
    b, s, d = x.shape
    sk = enc.shape[1]
    tq, tk = tgt_bias.shape[2], tgt_bias.shape[3]
    cq, ck = src_bias.shape[2], src_bias.shape[3]
    sa, ca, ff = p["self_attn"], p["cross_attn"], p["ffn"]
    d_ff = ff["w1"].shape[1]
    return pl.pallas_call(
        functools.partial(_decoder_layer_kernel, h=h),
        grid=(b,),
        in_specs=[
            pl.BlockSpec((1, s, d), lambda i: (i, 0, 0)),            # x
            pl.BlockSpec((1, sk, d), lambda i: (i, 0, 0)),           # encoder output
            pl.BlockSpec((1, 1, tq, tk), lambda i: (i, 0, 0, 0)),    # tgt additive bias
            pl.BlockSpec((1, 1, cq, ck), lambda i: (i, 0, 0, 0)),    # src additive bias
            _smem_spec(),                                            # LN (alpha,beta) x3
            pl.BlockSpec((d, 3 * d), lambda i: (0, 0)),              # wqkv   (bf16)
            pl.BlockSpec((1, 3 * d), lambda i: (0, 0)),              # bqkv
            pl.BlockSpec((d, d), lambda i: (0, 0)),                  # wo (self)
            pl.BlockSpec((1, d), lambda i: (0, 0)),                  # bo (self)
            pl.BlockSpec((d, d), lambda i: (0, 0)),                  # wq (cross)
            pl.BlockSpec((1, d), lambda i: (0, 0)),                  # bq (cross)
            pl.BlockSpec((d, 2 * d), lambda i: (0, 0)),              # wkv (cross)
            pl.BlockSpec((1, 2 * d), lambda i: (0, 0)),              # bkv (cross)
            pl.BlockSpec((d, d), lambda i: (0, 0)),                  # wo (cross)
            pl.BlockSpec((1, d), lambda i: (0, 0)),                  # bo (cross)
            pl.BlockSpec((d, d_ff), lambda i: (0, 0)),               # w1
            pl.BlockSpec((1, d_ff), lambda i: (0, 0)),               # b1
            pl.BlockSpec((d_ff, d), lambda i: (0, 0)),               # w2
            pl.BlockSpec((1, d), lambda i: (0, 0)),                  # b2
        ],
        out_specs=pl.BlockSpec((1, s, d), lambda i: (i, 0, 0)),
        out_shape=jax.ShapeDtypeStruct((b, s, d), x.dtype),
        scratch_shapes=[pltpu.VMEM((s, d), jnp.float32)],            # per-head ctx
        compiler_params=_compiler_params(),
    )(x, enc, tgt_bias, src_bias, p["ln"],
      sa["wqkv"], sa["bqkv"], sa["wo"], sa["bo"],
      ca["wq"], ca["bq"], ca["wkv"], ca["bkv"], ca["wo"], ca["bo"],
      ff["w1"], ff["b1"], ff["w2"], ff["b2"])


def layernorm_pallas(x, ln):
    b, s, d = x.shape
    n = b * s
    x2 = x.reshape(n, d)
    tn = _row_tile(n)
    out = pl.pallas_call(
        _layernorm_kernel,
        grid=(n // tn,),
        in_specs=[pl.BlockSpec((tn, d), lambda i: (i, 0)), _smem_spec()],
        out_specs=pl.BlockSpec((tn, d), lambda i: (i, 0)),
        out_shape=jax.ShapeDtypeStruct((n, d), x.dtype),
        compiler_params=_compiler_params(),
    )(x2, ln)
    return out.reshape(b, s, d)


# --------------------------------- model glue -------------------------------- #

def decoder_forward(params, x, encoder_output, src_mask, tgt_mask, h):
    b = x.shape[0]
    # Mask -> additive bias conversion hoisted out of all layers / heads.
    tgt_bias = _mask_to_bias(tgt_mask, b)
    src_bias = _mask_to_bias(src_mask, b)
    for blk in params["layers"]:
        x = decoder_layer_pallas(x, encoder_output, src_bias, tgt_bias, blk, h)
    return layernorm_pallas(x, params["norm"])


# ------------------------------ parameter init ------------------------------- #

def _init_linear(key, din, dout):
    kw, kb = jax.random.split(key)
    lim = 1.0 / math.sqrt(din)
    w = jax.random.uniform(kw, (din, dout), jnp.float32, -lim, lim)   # pre-transposed W^T
    b = jax.random.uniform(kb, (1, dout), jnp.float32, -lim, lim)
    return w.astype(jnp.bfloat16), b      # bf16 weights (MXU-native), f32 biases


def _init_self_attn(keys, d):
    wq, bq = _init_linear(keys[0], d, d)
    wk, bk = _init_linear(keys[1], d, d)
    wv, bv = _init_linear(keys[2], d, d)
    wo, bo = _init_linear(keys[3], d, d)
    return {"wqkv": jnp.concatenate([wq, wk, wv], axis=1),
            "bqkv": jnp.concatenate([bq, bk, bv], axis=1),
            "wo": wo, "bo": bo}


def _init_cross_attn(keys, d):
    wq, bq = _init_linear(keys[0], d, d)
    wk, bk = _init_linear(keys[1], d, d)
    wv, bv = _init_linear(keys[2], d, d)
    wo, bo = _init_linear(keys[3], d, d)
    return {"wq": wq, "bq": bq,
            "wkv": jnp.concatenate([wk, wv], axis=1),
            "bkv": jnp.concatenate([bk, bv], axis=1),
            "wo": wo, "bo": bo}


def _ln_params(n):
    # One row (alpha=1, beta=0) per LayerNormalization; lives in SMEM inside kernels.
    return jnp.tile(jnp.array([[1.0, 0.0]], jnp.float32), (n, 1))


def init_block(key, d_model, d_ff):
    ks = jax.random.split(key, 10)
    w1, b1 = _init_linear(ks[8], d_model, d_ff)
    w2, b2 = _init_linear(ks[9], d_ff, d_model)
    return {"self_attn": _init_self_attn(ks[0:4], d_model),
            "cross_attn": _init_cross_attn(ks[4:8], d_model),
            "ffn": {"w1": w1, "b1": b1, "w2": w2, "b2": b2},
            "ln": _ln_params(3)}


def init_decoder(key, n_layers, d_model, d_ff):
    keys = jax.random.split(key, n_layers)
    return {"layers": [init_block(k, d_model, d_ff) for k in keys],
            "norm": _ln_params(1)}


# ----------------------------------- main ------------------------------------ #

if __name__ == "__main__":
    B, S_TGT, S_SRC = 2, 8, 8
    D_MODEL, H, D_FF, N_LAYERS = 32, 4, 64, 2

    root = jax.random.PRNGKey(0)
    kp, kx, ke = jax.random.split(root, 3)
    params = init_decoder(kp, N_LAYERS, D_MODEL, D_FF)

    x = jax.random.normal(kx, (B, S_TGT, D_MODEL), jnp.float32)
    encoder_output = jax.random.normal(ke, (B, S_SRC, D_MODEL), jnp.float32)
    src_mask = jnp.ones((B, 1, 1, S_SRC), jnp.float32)                      # no padding
    causal = jnp.tril(jnp.ones((S_TGT, S_TGT), jnp.float32))
    tgt_mask = jnp.broadcast_to(causal[None, None], (B, 1, S_TGT, S_TGT))   # causal mask

    # TODO(synk): dropout inside ResidualConnection is stochastic; omitted (eval / p=0).
    fwd = jax.jit(lambda xx, ee, sm, tm: decoder_forward(params, xx, ee, sm, tm, H))
    out = fwd(x, encoder_output, src_mask, tgt_mask)
    jax.block_until_ready(out)
    assert out.shape == (B, S_TGT, D_MODEL) and out.dtype == jnp.float32
    assert bool(jnp.all(jnp.isfinite(out)))
    print("KERNEL_OK")
</pallas_src>

<mosaic_0001>
module attributes {stable_mosaic.version = 11 : i64} {
  func.func @_decoder_layer_kernel(%arg0: i32, %arg1: memref<1x8x32xf32, #tpu.memory_space<vmem>>, %arg2: memref<1x8x32xf32, #tpu.memory_space<vmem>>, %arg3: memref<1x1x8x8xbf16, #tpu.memory_space<vmem>>, %arg4: memref<1x1x1x8xbf16, #tpu.memory_space<vmem>>, %arg5: memref<3x2xf32, #tpu.memory_space<smem>>, %arg6: memref<32x96xbf16, #tpu.memory_space<vmem>>, %arg7: memref<1x96xf32, #tpu.memory_space<vmem>>, %arg8: memref<32x32xbf16, #tpu.memory_space<vmem>>, %arg9: memref<1x32xf32, #tpu.memory_space<vmem>>, %arg10: memref<32x32xbf16, #tpu.memory_space<vmem>>, %arg11: memref<1x32xf32, #tpu.memory_space<vmem>>, %arg12: memref<32x64xbf16, #tpu.memory_space<vmem>>, %arg13: memref<1x64xf32, #tpu.memory_space<vmem>>, %arg14: memref<32x32xbf16, #tpu.memory_space<vmem>>, %arg15: memref<1x32xf32, #tpu.memory_space<vmem>>, %arg16: memref<32x64xbf16, #tpu.memory_space<vmem>>, %arg17: memref<1x64xf32, #tpu.memory_space<vmem>>, %arg18: memref<64x32xbf16, #tpu.memory_space<vmem>>, %arg19: memref<1x32xf32, #tpu.memory_space<vmem>>, %arg20: memref<1x8x32xf32, #tpu.memory_space<vmem>>, %arg21: memref<8x32xf32, #tpu.memory_space<vmem>>) attributes {dimension_semantics = [#tpu.dimension_semantics<parallel>], iteration_bounds = array<i64: 2>, scalar_prefetch = 0 : i64, scratch_operands = 1 : i64, tpu.core_type = #tpu.core_type<tc>, window_params = [{transform_indices = @transform_0, window_bounds = array<i64: 1, 8, 32>}, {transform_indices = @transform_1, window_bounds = array<i64: 1, 8, 32>}, {transform_indices = @transform_2, window_bounds = array<i64: 1, 1, 8, 8>}, {transform_indices = @transform_3, window_bounds = array<i64: 1, 1, 1, 8>}, {transform_indices = @transform_4, window_bounds = array<i64: 3, 2>}, {pipeline_mode = #tpu.pipeline_mode<synchronous>, transform_indices = @transform_5, window_bounds = array<i64: 32, 96>}, {pipeline_mode = #tpu.pipeline_mode<synchronous>, transform_indices = @transform_6, window_bounds = array<i64: 1, 96>}, {pipeline_mode = #tpu.pipeline_mode<synchronous>, transform_indices = @transform_7, window_bounds = array<i64: 32, 32>}, {pipeline_mode = #tpu.pipeline_mode<synchronous>, transform_indices = @transform_8, window_bounds = array<i64: 1, 32>}, {pipeline_mode = #tpu.pipeline_mode<synchronous>, transform_indices = @transform_9, window_bounds = array<i64: 32, 32>}, {pipeline_mode = #tpu.pipeline_mode<synchronous>, transform_indices = @transform_10, window_bounds = array<i64: 1, 32>}, {pipeline_mode = #tpu.pipeline_mode<synchronous>, transform_indices = @transform_11, window_bounds = array<i64: 32, 64>}, {pipeline_mode = #tpu.pipeline_mode<synchronous>, transform_indices = @transform_12, window_bounds = array<i64: 1, 64>}, {pipeline_mode = #tpu.pipeline_mode<synchronous>, transform_indices = @transform_13, window_bounds = array<i64: 32, 32>}, {pipeline_mode = #tpu.pipeline_mode<synchronous>, transform_indices = @transform_14, window_bounds = array<i64: 1, 32>}, {pipeline_mode = #tpu.pipeline_mode<synchronous>, transform_indices = @transform_15, window_bounds = array<i64: 32, 64>}, {pipeline_mode = #tpu.pipeline_mode<synchronous>, transform_indices = @transform_16, window_bounds = array<i64: 1, 64>}, {pipeline_mode = #tpu.pipeline_mode<synchronous>, transform_indices = @transform_17, window_bounds = array<i64: 64, 32>}, {pipeline_mode = #tpu.pipeline_mode<synchronous>, transform_indices = @transform_18, window_bounds = array<i64: 1, 32>}, {transform_indices = @transform_19, window_bounds = array<i64: 1, 8, 32>}]} {
    %c0 = arith.constant 0 : index
    %c0_0 = arith.constant 0 : index
    %c0_1 = arith.constant 0 : index
    %0 = vector.load %arg1[%c0, %c0_0, %c0_1] : memref<1x8x32xf32, #tpu.memory_space<vmem>>, vector<1x8x32xf32>
    %1 = vector.shape_cast %0 : vector<1x8x32xf32> to vector<8x32xf32>
    %c0_2 = arith.constant 0 : index
    %c0_3 = arith.constant 0 : index
    %c0_4 = arith.constant 0 : index
    %2 = vector.load %arg2[%c0_2, %c0_3, %c0_4] : memref<1x8x32xf32, #tpu.memory_space<vmem>>, vector<1x8x32xf32>
    %3 = vector.shape_cast %2 : vector<1x8x32xf32> to vector<8x32xf32>
    %c0_5 = arith.constant 0 : index
    %c0_6 = arith.constant 0 : index
    %4 = memref.load %arg5[%c0_5, %c0_6] : memref<3x2xf32, #tpu.memory_space<smem>>
    %c0_7 = arith.constant 0 : index
    %c1 = arith.constant 1 : index
    %5 = memref.load %arg5[%c0_7, %c1] : memref<3x2xf32, #tpu.memory_space<smem>>
    %cst = arith.constant dense<0.000000e+00> : vector<8xf32>
    %6 = vector.multi_reduction <add>, %1, %cst [1] : vector<8x32xf32> to vector<8xf32>
    %7 = vector.shape_cast %6 : vector<8xf32> to vector<8x1xf32>
    %cst_8 = arith.constant 3.200000e+01 : f32
    %8 = vector.broadcast %cst_8 : f32 to vector<8x1xf32>
    %9 = arith.divf %7, %8 : vector<8x1xf32>
    %10 = vector.broadcast %9 : vector<8x1xf32> to vector<8x32xf32>
    %11 = arith.subf %1, %10 : vector<8x32xf32>
    %12 = arith.mulf %11, %11 : vector<8x32xf32>
    %cst_9 = arith.constant dense<0.000000e+00> : vector<8xf32>
    %13 = vector.multi_reduction <add>, %12, %cst_9 [1] : vector<8x32xf32> to vector<8xf32>
    %14 = vector.shape_cast %13 : vector<8xf32> to vector<8x1xf32>
    %cst_10 = arith.constant 0.0322580636 : f32
    %15 = vector.broadcast %cst_10 : f32 to vector<8x1xf32>
    %16 = arith.mulf %14, %15 : vector<8x1xf32>
    %17 = math.sqrt %16 : vector<8x1xf32>
    %cst_11 = arith.constant 9.99999997E-7 : f32
    %18 = vector.broadcast %cst_11 : f32 to vector<8x1xf32>
    %19 = arith.addf %17, %18 : vector<8x1xf32>
    %20 = tpu.reciprocal %19 : vector<8x1xf32> -> vector<8x1xf32>
    %21 = vector.broadcast %4 : f32 to vector<8x32xf32>
    %22 = arith.mulf %21, %11 : vector<8x32xf32>
    %23 = vector.broadcast %20 : vector<8x1xf32> to vector<8x32xf32>
    %24 = arith.mulf %22, %23 : vector<8x32xf32>
    %25 = vector.broadcast %5 : f32 to vector<8x32xf32>
    %26 = arith.addf %24, %25 : vector<8x32xf32>
    %27 = arith.truncf %26 : vector<8x32xf32> to vector<8x32xbf16>
    %c0_12 = arith.constant 0 : index
    %c0_13 = arith.constant 0 : index
    %28 = vector.load %arg6[%c0_12, %c0_13] : memref<32x96xbf16, #tpu.memory_space<vmem>>, vector<32x96xbf16>
    %cst_14 = arith.constant dense<0.000000e+00> : vector<8x96xf32>
    %29 = tpu.matmul %27, %28, %cst_14 {dimension_numbers = #tpu.dot_dimension_numbers<[1], [0], [0], [1], [0, 0, 1, 1], [], []>} : vector<8x32xbf16>, vector<32x96xbf16>, vector<8x96xf32> -> vector<8x96xf32>
    %c0_15 = arith.constant 0 : index
    %c0_16 = arith.constant 0 : index
    %30 = vector.load %arg7[%c0_15, %c0_16] : memref<1x96xf32, #tpu.memory_space<vmem>>, vector<1x96xf32>
    %31 = vector.broadcast %30 : vector<1x96xf32> to vector<8x96xf32>
    %32 = arith.addf %29, %31 : vector<8x96xf32>
    %33 = vector.extract_strided_slice %32 {offsets = [0, 0], sizes = [8, 32], strides = [1, 1]} : vector<8x96xf32> to vector<8x32xf32>
    %34 = vector.extract_strided_slice %32 {offsets = [0, 32], sizes = [8, 32], strides = [1, 1]} : vector<8x96xf32> to vector<8x32xf32>
    %35 = vector.extract_strided_slice %32 {offsets = [0, 64], sizes = [8, 32], strides = [1, 1]} : vector<8x96xf32> to vector<8x32xf32>
    %c0_17 = arith.constant 0 : index
    %c0_18 = arith.constant 0 : index
    %c0_19 = arith.constant 0 : index
    %c0_20 = arith.constant 0 : index
    %36 = vector.load %arg3[%c0_17, %c0_18, %c0_19, %c0_20] : memref<1x1x8x8xbf16, #tpu.memory_space<vmem>>, vector<1x1x8x8xbf16>
    %37 = vector.shape_cast %36 : vector<1x1x8x8xbf16> to vector<8x8xbf16>
    %c0_21 = arith.constant 0 : index
    %c0_22 = arith.constant 0 : index
    %38 = vector.load %arg8[%c0_21, %c0_22] : memref<32x32xbf16, #tpu.memory_space<vmem>>, vector<32x32xbf16>
    %cst_23 = arith.constant 0.353553385 : f32
    %39 = vector.broadcast %cst_23 : f32 to vector<8x32xf32>
    %40 = arith.mulf %33, %39 : vector<8x32xf32>
    %41 = arith.extf %37 : vector<8x8xbf16> to vector<8x8xf32>
    %42 = vector.extract_strided_slice %40 {offsets = [0, 0], sizes = [8, 8], strides = [1, 1]} : vector<8x32xf32> to vector<8x8xf32>
    %43 = arith.truncf %42 : vector<8x8xf32> to vector<8x8xbf16>
    %44 = vector.extract_strided_slice %34 {offsets = [0, 0], sizes = [8, 8], strides = [1, 1]} : vector<8x32xf32> to vector<8x8xf32>
    %45 = arith.truncf %44 : vector<8x8xf32> to vector<8x8xbf16>
    %46 = vector.extract_strided_slice %35 {offsets = [0, 0], sizes = [8, 8], strides = [1, 1]} : vector<8x32xf32> to vector<8x8xf32>
    %47 = arith.truncf %46 : vector<8x8xf32> to vector<8x8xbf16>
    "tpu.trace_start"() <{level = 10 : i32, message = "qd,kd->qk"}> : () -> ()
    %cst_24 = arith.constant dense<0.000000e+00> : vector<8x8xf32>
    %48 = tpu.matmul %43, %45, %cst_24 {dimension_numbers = #tpu.dot_dimension_numbers<[1], [1], [0], [0], [0, 0, 1, 0], [], []>} : vector<8x8xbf16>, vector<8x8xbf16>, vector<8x8xf32> -> vector<8x8xf32>
    "tpu.trace_stop"() : () -> ()
    %49 = arith.addf %48, %41 : vector<8x8xf32>
    %cst_25 = arith.constant dense<0xFF800000> : vector<8xf32>
    %50 = vector.multi_reduction <maximumf>, %49, %cst_25 [1] : vector<8x8xf32> to vector<8xf32>
    %51 = vector.shape_cast %50 : vector<8xf32> to vector<8x1xf32>
    %52 = vector.broadcast %51 : vector<8x1xf32> to vector<8x8xf32>
    %53 = arith.subf %49, %52 : vector<8x8xf32>
    %54 = math.exp %53 : vector<8x8xf32>
    %cst_26 = arith.constant dense<0.000000e+00> : vector<8xf32>
    %55 = vector.multi_reduction <add>, %54, %cst_26 [1] : vector<8x8xf32> to vector<8xf32>
    %56 = vector.shape_cast %55 : vector<8xf32> to vector<8x1xf32>
    %57 = tpu.reciprocal %56 {approx = true} : vector<8x1xf32> -> vector<8x1xf32>
    %58 = vector.broadcast %57 : vector<8x1xf32> to vector<8x8xf32>
    %59 = arith.mulf %54, %58 : vector<8x8xf32>
    %60 = arith.truncf %59 : vector<8x8xf32> to vector<8x8xbf16>
    %cst_27 = arith.constant dense<0.000000e+00> : vector<8x8xf32>
    %61 = tpu.matmul %60, %47, %cst_27 {dimension_numbers = #tpu.dot_dimension_numbers<[1], [0], [0], [1], [0, 0, 1, 1], [], []>} : vector<8x8xbf16>, vector<8x8xbf16>, vector<8x8xf32> -> vector<8x8xf32>
    %c0_28 = arith.constant 0 : index
    %c0_29 = arith.constant 0 : index
    %62 = vector.load %arg21[%c0_28, %c0_29] : memref<8x32xf32, #tpu.memory_space<vmem>>, vector<8x8xf32>
    tpu.vector_store %arg21[%c0_28, %c0_29], %61 {strides = array<i32>} : memref<8x32xf32, #tpu.memory_space<vmem>>, vector<8x8xf32>,
    %63 = vector.extract_strided_slice %40 {offsets = [0, 8], sizes = [8, 8], strides = [1, 1]} : vector<8x32xf32> to vector<8x8xf32>
    %64 = arith.truncf %63 : vector<8x8xf32> to vector<8x8xbf16>
    %65 = vector.extract_strided_slice %34 {offsets = [0, 8], sizes = [8, 8], strides = [1, 1]} : vector<8x32xf32> to vector<8x8xf32>
    %66 = arith.truncf %65 : vector<8x8xf32> to vector<8x8xbf16>
    %67 = vector.extract_strided_slice %35 {offsets = [0, 8], sizes = [8, 8], strides = [1, 1]} : vector<8x32xf32> to vector<8x8xf32>
    %68 = arith.truncf %67 : vector<8x8xf32> to vector<8x8xbf16>
    "tpu.trace_start"() <{level = 10 : i32, message = "qd,kd->qk"}> : () -> ()
    %cst_30 = arith.constant dense<0.000000e+00> : vector<8x8xf32>
    %69 = tpu.matmul %64, %66, %cst_30 {dimension_numbers = #tpu.dot_dimension_numbers<[1], [1], [0], [0], [0, 0, 1, 0], [], []>} : vector<8x8xbf16>, vector<8x8xbf16>, vector<8x8xf32> -> vector<8x8xf32>
    "tpu.trace_stop"() : () -> ()
    %70 = arith.addf %69, %41 : vector<8x8xf32>
    %cst_31 = arith.constant dense<0xFF800000> : vector<8xf32>
    %71 = vector.multi_reduction <maximumf>, %70, %cst_31 [1] : vector<8x8xf32> to vector<8xf32>
    %72 = vector.shape_cast %71 : vector<8xf32> to vector<8x1xf32>
    %73 = vector.broadcast %72 : vector<8x1xf32> to vector<8x8xf32>
    %74 = arith.subf %70, %73 : vector<8x8xf32>
    %75 = math.exp %74 : vector<8x8xf32>
    %cst_32 = arith.constant dense<0.000000e+00> : vector<8xf32>
    %76 = vector.multi_reduction <add>, %75, %cst_32 [1] : vector<8x8xf32> to vector<8xf32>
    %77 = vector.shape_cast %76 : vector<8xf32> to vector<8x1xf32>
    %78 = tpu.reciprocal %77 {approx = true} : vector<8x1xf32> -> vector<8x1xf32>
    %79 = vector.broadcast %78 : vector<8x1xf32> to vector<8x8xf32>
    %80 = arith.mulf %75, %79 : vector<8x8xf32>
    %81 = arith.truncf %80 : vector<8x8xf32> to vector<8x8xbf16>
    %cst_33 = arith.constant dense<0.000000e+00> : vector<8x8xf32>
    %82 = tpu.matmul %81, %68, %cst_33 {dimension_numbers = #tpu.dot_dimension_numbers<[1], [0], [0], [1], [0, 0, 1, 1], [], []>} : vector<8x8xbf16>, vector<8x8xbf16>, vector<8x8xf32> -> vector<8x8xf32>
    %c0_34 = arith.constant 0 : index
    %c8 = arith.constant 8 : index
    %83 = vector.load %arg21[%c0_34, %c8] : memref<8x32xf32, #tpu.memory_space<vmem>>, vector<8x8xf32>
    tpu.vector_store %arg21[%c0_34, %c8], %82 {strides = array<i32>} : memref<8x32xf32, #tpu.memory_space<vmem>>, vector<8x8xf32>,
    %84 = vector.extract_strided_slice %40 {offsets = [0, 16], sizes = [8, 8], strides = [1, 1]} : vector<8x32xf32> to vector<8x8xf32>
    %85 = arith.truncf %84 : vector<8x8xf32> to vector<8x8xbf16>
    %86 = vector.extract_strided_slice %34 {offsets = [0, 16], sizes = [8, 8], strides = [1, 1]} : vector<8x32xf32> to vector<8x8xf32>
    %87 = arith.truncf %86 : vector<8x8xf32> to vector<8x8xbf16>
    %88 = vector.extract_strided_slice %35 {offsets = [0, 16], sizes = [8, 8], strides = [1, 1]} : vector<8x32xf32> to vector<8x8xf32>
    %89 = arith.truncf %88 : vector<8x8xf32> to vector<8x8xbf16>
    "tpu.trace_start"() <{level = 10 : i32, message = "qd,kd->qk"}> : () -> ()
    %cst_35 = arith.constant dense<0.000000e+00> : vector<8x8xf32>
    %90 = tpu.matmul %85, %87, %cst_35 {dimension_numbers = #tpu.dot_dimension_numbers<[1], [1], [0], [0], [0, 0, 1, 0], [], []>} : vector<8x8xbf16>, vector<8x8xbf16>, vector<8x8xf32> -> vector<8x8xf32>
    "tpu.trace_stop"() : () -> ()
    %91 = arith.addf %90, %41 : vector<8x8xf32>
    %cst_36 = arith.constant dense<0xFF800000> : vector<8xf32>
    %92 = vector.multi_reduction <maximumf>, %91, %cst_36 [1] : vector<8x8xf32> to vector<8xf32>
    %93 = vector.shape_cast %92 : vector<8xf32> to vector<8x1xf32>
    %94 = vector.broadcast %93 : vector<8x1xf32> to vector<8x8xf32>
    %95 = arith.subf %91, %94 : vector<8x8xf32>
    %96 = math.exp %95 : vector<8x8xf32>
    %cst_37 = arith.constant dense<0.000000e+00> : vector<8xf32>
    %97 = vector.multi_reduction <add>, %96, %cst_37 [1] : vector<8x8xf32> to vector<8xf32>
    %98 = vector.shape_cast %97 : vector<8xf32> to vector<8x1xf32>
    %99 = tpu.reciprocal %98 {approx = true} : vector<8x1xf32> -> vector<8x1xf32>
    %100 = vector.broadcast %99 : vector<8x1xf32> to vector<8x8xf32>
    %101 = arith.mulf %96, %100 : vector<8x8xf32>
    %102 = arith.truncf %101 : vector<8x8xf32> to vector<8x8xbf16>
    %cst_38 = arith.constant dense<0.000000e+00> : vector<8x8xf32>
    %103 = tpu.matmul %102, %89, %cst_38 {dimension_numbers = #tpu.dot_dimension_numbers<[1], [0], [0], [1], [0, 0, 1, 1], [], []>} : vector<8x8xbf16>, vector<8x8xbf16>, vector<8x8xf32> -> vector<8x8xf32>
    %c0_39 = arith.constant 0 : index
    %c16 = arith.constant 16 : index
    %104 = vector.load %arg21[%c0_39, %c16] : memref<8x32xf32, #tpu.memory_space<vmem>>, vector<8x8xf32>
    tpu.vector_store %arg21[%c0_39, %c16], %103 {strides = array<i32>} : memref<8x32xf32, #tpu.memory_space<vmem>>, vector<8x8xf32>,
    %105 = vector.extract_strided_slice %40 {offsets = [0, 24], sizes = [8, 8], strides = [1, 1]} : vector<8x32xf32> to vector<8x8xf32>
    %106 = arith.truncf %105 : vector<8x8xf32> to vector<8x8xbf16>
    %107 = vector.extract_strided_slice %34 {offsets = [0, 24], sizes = [8, 8], strides = [1, 1]} : vector<8x32xf32> to vector<8x8xf32>
    %108 = arith.truncf %107 : vector<8x8xf32> to vector<8x8xbf16>
    %109 = vector.extract_strided_slice %35 {offsets = [0, 24], sizes = [8, 8], strides = [1, 1]} : vector<8x32xf32> to vector<8x8xf32>
    %110 = arith.truncf %109 : vector<8x8xf32> to vector<8x8xbf16>
    "tpu.trace_start"() <{level = 10 : i32, message = "qd,kd->qk"}> : () -> ()
    %cst_40 = arith.constant dense<0.000000e+00> : vector<8x8xf32>
    %111 = tpu.matmul %106, %108, %cst_40 {dimension_numbers = #tpu.dot_dimension_numbers<[1], [1], [0], [0], [0, 0, 1, 0], [], []>} : vector<8x8xbf16>, vector<8x8xbf16>, vector<8x8xf32> -> vector<8x8xf32>
    "tpu.trace_stop"() : () -> ()
    %112 = arith.addf %111, %41 : vector<8x8xf32>
    %cst_41 = arith.constant dense<0xFF800000> : vector<8xf32>
    %113 = vector.multi_reduction <maximumf>, %112, %cst_41 [1] : vector<8x8xf32> to vector<8xf32>
    %114 = vector.shape_cast %113 : vector<8xf32> to vector<8x1xf32>
    %115 = vector.broadcast %114 : vector<8x1xf32> to vector<8x8xf32>
    %116 = arith.subf %112, %115 : vector<8x8xf32>
    %117 = math.exp %116 : vector<8x8xf32>
    %cst_42 = arith.constant dense<0.000000e+00> : vector<8xf32>
    %118 = vector.multi_reduction <add>, %117, %cst_42 [1] : vector<8x8xf32> to vector<8xf32>
    %119 = vector.shape_cast %118 : vector<8xf32> to vector<8x1xf32>
    %120 = tpu.reciprocal %119 {approx = true} : vector<8x1xf32> -> vector<8x1xf32>
    %121 = vector.broadcast %120 : vector<8x1xf32> to vector<8x8xf32>
    %122 = arith.mulf %117, %121 : vector<8x8xf32>
    %123 = arith.truncf %122 : vector<8x8xf32> to vector<8x8xbf16>
    %cst_43 = arith.constant dense<0.000000e+00> : vector<8x8xf32>
    %124 = tpu.matmul %123, %110, %cst_43 {dimension_numbers = #tpu.dot_dimension_numbers<[1], [0], [0], [1], [0, 0, 1, 1], [], []>} : vector<8x8xbf16>, vector<8x8xbf16>, vector<8x8xf32> -> vector<8x8xf32>
    %c0_44 = arith.constant 0 : index
    %c24 = arith.constant 24 : index
    %125 = vector.load %arg21[%c0_44, %c24] : memref<8x32xf32, #tpu.memory_space<vmem>>, vector<8x8xf32>
    tpu.vector_store %arg21[%c0_44, %c24], %124 {strides = array<i32>} : memref<8x32xf32, #tpu.memory_space<vmem>>, vector<8x8xf32>,
    %c0_45 = arith.constant 0 : index
    %c0_46 = arith.constant 0 : index
    %126 = vector.load %arg21[%c0_45, %c0_46] : memref<8x32xf32, #tpu.memory_space<vmem>>, vector<8x32xf32>
    %127 = arith.truncf %126 : vector<8x32xf32> to vector<8x32xbf16>
    %cst_47 = arith.constant dense<0.000000e+00> : vector<8x32xf32>
    %128 = tpu.matmul %127, %38, %cst_47 {dimension_numbers = #tpu.dot_dimension_numbers<[1], [0], [0], [1], [0, 0, 1, 1], [], []>} : vector<8x32xbf16>, vector<32x32xbf16>, vector<8x32xf32> -> vector<8x32xf32>
    %129 = arith.addf %1, %128 : vector<8x32xf32>
    %c0_48 = arith.constant 0 : index
    %c0_49 = arith.constant 0 : index
    %130 = vector.load %arg9[%c0_48, %c0_49] : memref<1x32xf32, #tpu.memory_space<vmem>>, vector<1x32xf32>
    %131 = vector.broadcast %130 : vector<1x32xf32> to vector<8x32xf32>
    %132 = arith.addf %129, %131 : vector<8x32xf32>
    %c1_50 = arith.constant 1 : index
    %c0_51 = arith.constant 0 : index
    %133 = memref.load %arg5[%c1_50, %c0_51] : memref<3x2xf32, #tpu.memory_space<smem>>
    %c1_52 = arith.constant 1 : index
    %c1_53 = arith.constant 1 : index
    %134 = memref.load %arg5[%c1_52, %c1_53] : memref<3x2xf32, #tpu.memory_space<smem>>
    %cst_54 = arith.constant dense<0.000000e+00> : vector<8xf32>
    %135 = vector.multi_reduction <add>, %132, %cst_54 [1] : vector<8x32xf32> to vector<8xf32>
    %136 = vector.shape_cast %135 : vector<8xf32> to vector<8x1xf32>
    %cst_55 = arith.constant 3.200000e+01 : f32
    %137 = vector.broadcast %cst_55 : f32 to vector<8x1xf32>
    %138 = arith.divf %136, %137 : vector<8x1xf32>
    %139 = vector.broadcast %138 : vector<8x1xf32> to vector<8x32xf32>
    %140 = arith.subf %132, %139 : vector<8x32xf32>
    %141 = arith.mulf %140, %140 : vector<8x32xf32>
    %cst_56 = arith.constant dense<0.000000e+00> : vector<8xf32>
    %142 = vector.multi_reduction <add>, %141, %cst_56 [1] : vector<8x32xf32> to vector<8xf32>
    %143 = vector.shape_cast %142 : vector<8xf32> to vector<8x1xf32>
    %cst_57 = arith.constant 0.0322580636 : f32
    %144 = vector.broadcast %cst_57 : f32 to vector<8x1xf32>
    %145 = arith.mulf %143, %144 : vector<8x1xf32>
    %146 = math.sqrt %145 : vector<8x1xf32>
    %cst_58 = arith.constant 9.99999997E-7 : f32
    %147 = vector.broadcast %cst_58 : f32 to vector<8x1xf32>
    %148 = arith.addf %146, %147 : vector<8x1xf32>
    %149 = tpu.reciprocal %148 : vector<8x1xf32> -> vector<8x1xf32>
    %150 = vector.broadcast %133 : f32 to vector<8x32xf32>
    %151 = arith.mulf %150, %140 : vector<8x32xf32>
    %152 = vector.broadcast %149 : vector<8x1xf32> to vector<8x32xf32>
    %153 = arith.mulf %151, %152 : vector<8x32xf32>
    %154 = vector.broadcast %134 : f32 to vector<8x32xf32>
    %155 = arith.addf %153, %154 : vector<8x32xf32>
    %156 = arith.truncf %155 : vector<8x32xf32> to vector<8x32xbf16>
    %c0_59 = arith.constant 0 : index
    %c0_60 = arith.constant 0 : index
    %157 = vector.load %arg10[%c0_59, %c0_60] : memref<32x32xbf16, #tpu.memory_space<vmem>>, vector<32x32xbf16>
    %cst_61 = arith.constant dense<0.000000e+00> : vector<8x32xf32>
    %158 = tpu.matmul %156, %157, %cst_61 {dimension_numbers = #tpu.dot_dimension_numbers<[1], [0], [0], [1], [0, 0, 1, 1], [], []>} : vector<8x32xbf16>, vector<32x32xbf16>, vector<8x32xf32> -> vector<8x32xf32>
    %c0_62 = arith.constant 0 : index
    %c0_63 = arith.constant 0 : index
    %159 = vector.load %arg11[%c0_62, %c0_63] : memref<1x32xf32, #tpu.memory_space<vmem>>, vector<1x32xf32>
    %160 = vector.broadcast %159 : vector<1x32xf32> to vector<8x32xf32>
    %161 = arith.addf %158, %160 : vector<8x32xf32>
    %162 = arith.truncf %3 : vector<8x32xf32> to vector<8x32xbf16>
    %c0_64 = arith.constant 0 : index
    %c0_65 = arith.constant 0 : index
    %163 = vector.load %arg12[%c0_64, %c0_65] : memref<32x64xbf16, #tpu.memory_space<vmem>>, vector<32x64xbf16>
    %cst_66 = arith.constant dense<0.000000e+00> : vector<8x64xf32>
    %164 = tpu.matmul %162, %163, %cst_66 {dimension_numbers = #tpu.dot_dimension_numbers<[1], [0], [0], [1], [0, 0, 1, 1], [], []>} : vector<8x32xbf16>, vector<32x64xbf16>, vector<8x64xf32> -> vector<8x64xf32>
    %c0_67 = arith.constant 0 : index
    %c0_68 = arith.constant 0 : index
    %165 = vector.load %arg13[%c0_67, %c0_68] : memref<1x64xf32, #tpu.memory_space<vmem>>, vector<1x64xf32>
    %166 = vector.broadcast %165 : vector<1x64xf32> to vector<8x64xf32>
    %167 = arith.addf %164, %166 : vector<8x64xf32>
    %168 = vector.extract_strided_slice %167 {offsets = [0, 0], sizes = [8, 32], strides = [1, 1]} : vector<8x64xf32> to vector<8x32xf32>
    %169 = vector.extract_strided_slice %167 {offsets = [0, 32], sizes = [8, 32], strides = [1, 1]} : vector<8x64xf32> to vector<8x32xf32>
    %c0_69 = arith.constant 0 : index
    %c0_70 = arith.constant 0 : index
    %c0_71 = arith.constant 0 : index
    %c0_72 = arith.constant 0 : index
    %170 = vector.load %arg4[%c0_69, %c0_70, %c0_71, %c0_72] : memref<1x1x1x8xbf16, #tpu.memory_space<vmem>>, vector<1x1x1x8xbf16>
    %171 = vector.shape_cast %170 : vector<1x1x1x8xbf16> to vector<1x8xbf16>
    %c0_73 = arith.constant 0 : index
    %c0_74 = arith.constant 0 : index
    %172 = vector.load %arg14[%c0_73, %c0_74] : memref<32x32xbf16, #tpu.memory_space<vmem>>, vector<32x32xbf16>
    %cst_75 = arith.constant 0.353553385 : f32
    %173 = vector.broadcast %cst_75 : f32 to vector<8x32xf32>
    %174 = arith.mulf %161, %173 : vector<8x32xf32>
    %175 = arith.extf %171 : vector<1x8xbf16> to vector<1x8xf32>
    %176 = vector.shape_cast %175 : vector<1x8xf32> to vector<1x8xf32>
    %177 = vector.broadcast %176 : vector<1x8xf32> to vector<8x8xf32>
    %178 = vector.extract_strided_slice %174 {offsets = [0, 0], sizes = [8, 8], strides = [1, 1]} : vector<8x32xf32> to vector<8x8xf32>
    %179 = arith.truncf %178 : vector<8x8xf32> to vector<8x8xbf16>
    %180 = vector.extract_strided_slice %168 {offsets = [0, 0], sizes = [8, 8], strides = [1, 1]} : vector<8x32xf32> to vector<8x8xf32>
    %181 = arith.truncf %180 : vector<8x8xf32> to vector<8x8xbf16>
    %182 = vector.extract_strided_slice %169 {offsets = [0, 0], sizes = [8, 8], strides = [1, 1]} : vector<8x32xf32> to vector<8x8xf32>
    %183 = arith.truncf %182 : vector<8x8xf32> to vector<8x8xbf16>
    "tpu.trace_start"() <{level = 10 : i32, message = "qd,kd->qk"}> : () -> ()
    %cst_76 = arith.constant dense<0.000000e+00> : vector<8x8xf32>
    %184 = tpu.matmul %179, %181, %cst_76 {dimension_numbers = #tpu.dot_dimension_numbers<[1], [1], [0], [0], [0, 0, 1, 0], [], []>} : vector<8x8xbf16>, vector<8x8xbf16>, vector<8x8xf32> -> vector<8x8xf32>
    "tpu.trace_stop"() : () -> ()
    %185 = arith.addf %184, %177 : vector<8x8xf32>
    %cst_77 = arith.constant dense<0xFF800000> : vector<8xf32>
    %186 = vector.multi_reduction <maximumf>, %185, %cst_77 [1] : vector<8x8xf32> to vector<8xf32>
    %187 = vector.shape_cast %186 : vector<8xf32> to vector<8x1xf32>
    %188 = vector.broadcast %187 : vector<8x1xf32> to vector<8x8xf32>
    %189 = arith.subf %185, %188 : vector<8x8xf32>
    %190 = math.exp %189 : vector<8x8xf32>
    %cst_78 = arith.constant dense<0.000000e+00> : vector<8xf32>
    %191 = vector.multi_reduction <add>, %190, %cst_78 [1] : vector<8x8xf32> to vector<8xf32>
    %192 = vector.shape_cast %191 : vector<8xf32> to vector<8x1xf32>
    %193 = tpu.reciprocal %192 {approx = true} : vector<8x1xf32> -> vector<8x1xf32>
    %194 = vector.broadcast %193 : vector<8x1xf32> to vector<8x8xf32>
    %195 = arith.mulf %190, %194 : vector<8x8xf32>
    %196 = arith.truncf %195 : vector<8x8xf32> to vector<8x8xbf16>
    %cst_79 = arith.constant dense<0.000000e+00> : vector<8x8xf32>
    %197 = tpu.matmul %196, %183, %cst_79 {dimension_numbers = #tpu.dot_dimension_numbers<[1], [0], [0], [1], [0, 0, 1, 1], [], []>} : vector<8x8xbf16>, vector<8x8xbf16>, vector<8x8xf32> -> vector<8x8xf32>
    %c0_80 = arith.constant 0 : index
    %c0_81 = arith.constant 0 : index
    %198 = vector.load %arg21[%c0_80, %c0_81] : memref<8x32xf32, #tpu.memory_space<vmem>>, vector<8x8xf32>
    tpu.vector_store %arg21[%c0_80, %c0_81], %197 {strides = array<i32>} : memref<8x32xf32, #tpu.memory_space<vmem>>, vector<8x8xf32>,
    %199 = vector.extract_strided_slice %174 {offsets = [0, 8], sizes = [8, 8], strides = [1, 1]} : vector<8x32xf32> to vector<8x8xf32>
    %200 = arith.truncf %199 : vector<8x8xf32> to vector<8x8xbf16>
    %201 = vector.extract_strided_slice %168 {offsets = [0, 8], sizes = [8, 8], strides = [1, 1]} : vector<8x32xf32> to vector<8x8xf32>
    %202 = arith.truncf %201 : vector<8x8xf32> to vector<8x8xbf16>
    %203 = vector.extract_strided_slice %169 {offsets = [0, 8], sizes = [8, 8], strides = [1, 1]} : vector<8x32xf32> to vector<8x8xf32>
    %204 = arith.truncf %203 : vector<8x8xf32> to vector<8x8xbf16>
    "tpu.trace_start"() <{level = 10 : i32, message = "qd,kd->qk"}> : () -> ()
    %cst_82 = arith.constant dense<0.000000e+00> : vector<8x8xf32>
    %205 = tpu.matmul %200, %202, %cst_82 {dimension_numbers = #tpu.dot_dimension_numbers<[1], [1], [0], [0], [0, 0, 1, 0], [], []>} : vector<8x8xbf16>, vector<8x8xbf16>, vector<8x8xf32> -> vector<8x8xf32>
    "tpu.trace_stop"() : () -> ()
    %206 = arith.addf %205, %177 : vector<8x8xf32>
    %cst_83 = arith.constant dense<0xFF800000> : vector<8xf32>
    %207 = vector.multi_reduction <maximumf>, %206, %cst_83 [1] : vector<8x8xf32> to vector<8xf32>
    %208 = vector.shape_cast %207 : vector<8xf32> to vector<8x1xf32>
    %209 = vector.broadcast %208 : vector<8x1xf32> to vector<8x8xf32>
    %210 = arith.subf %206, %209 : vector<8x8xf32>
    %211 = math.exp %210 : vector<8x8xf32>
    %cst_84 = arith.constant dense<0.000000e+00> : vector<8xf32>
    %212 = vector.multi_reduction <add>, %211, %cst_84 [1] : vector<8x8xf32> to vector<8xf32>
    %213 = vector.shape_cast %212 : vector<8xf32> to vector<8x1xf32>
    %214 = tpu.reciprocal %213 {approx = true} : vector<8x1xf32> -> vector<8x1xf32>
    %215 = vector.broadcast %214 : vector<8x1xf32> to vector<8x8xf32>
    %216 = arith.mulf %211, %215 : vector<8x8xf32>
    %217 = arith.truncf %216 : vector<8x8xf32> to vector<8x8xbf16>
    %cst_85 = arith.constant dense<0.000000e+00> : vector<8x8xf32>
    %218 = tpu.matmul %217, %204, %cst_85 {dimension_numbers = #tpu.dot_dimension_numbers<[1], [0], [0], [1], [0, 0, 1, 1], [], []>} : vector<8x8xbf16>, vector<8x8xbf16>, vector<8x8xf32> -> vector<8x8xf32>
    %c0_86 = arith.constant 0 : index
    %c8_87 = arith.constant 8 : index
    %219 = vector.load %arg21[%c0_86, %c8_87] : memref<8x32xf32, #tpu.memory_space<vmem>>, vector<8x8xf32>
    tpu.vector_store %arg21[%c0_86, %c8_87], %218 {strides = array<i32>} : memref<8x32xf32, #tpu.memory_space<vmem>>, vector<8x8xf32>,
    %220 = vector.extract_strided_slice %174 {offsets = [0, 16], sizes = [8, 8], strides = [1, 1]} : vector<8x32xf32> to vector<8x8xf32>
    %221 = arith.truncf %220 : vector<8x8xf32> to vector<8x8xbf16>
    %222 = vector.extract_strided_slice %168 {offsets = [0, 16], sizes = [8, 8], strides = [1, 1]} : vector<8x32xf32> to vector<8x8xf32>
    %223 = arith.truncf %222 : vector<8x8xf32> to vector<8x8xbf16>
    %224 = vector.extract_strided_slice %169 {offsets = [0, 16], sizes = [8, 8], strides = [1, 1]} : vector<8x32xf32> to vector<8x8xf32>
    %225 = arith.truncf %224 : vector<8x8xf32> to vector<8x8xbf16>
    "tpu.trace_start"() <{level = 10 : i32, message = "qd,kd->qk"}> : () -> ()
    %cst_88 = arith.constant dense<0.000000e+00> : vector<8x8xf32>
    %226 = tpu.matmul %221, %223, %cst_88 {dimension_numbers = #tpu.dot_dimension_numbers<[1], [1], [0], [0], [0, 0, 1, 0], [], []>} : vector<8x8xbf16>, vector<8x8xbf16>, vector<8x8xf32> -> vector<8x8xf32>
    "tpu.trace_stop"() : () -> ()
    %227 = arith.addf %226, %177 : vector<8x8xf32>
    %cst_89 = arith.constant dense<0xFF800000> : vector<8xf32>
    %228 = vector.multi_reduction <maximumf>, %227, %cst_89 [1] : vector<8x8xf32> to vector<8xf32>
    %229 = vector.shape_cast %228 : vector<8xf32> to vector<8x1xf32>
    %230 = vector.broadcast %229 : vector<8x1xf32> to vector<8x8xf32>
    %231 = arith.subf %227, %230 : vector<8x8xf32>
    %232 = math.exp %231 : vector<8x8xf32>
    %cst_90 = arith.constant dense<0.000000e+00> : vector<8xf32>
    %233 = vector.multi_reduction <add>, %232, %cst_90 [1] : vector<8x8xf32> to vector<8xf32>
    %234 = vector.shape_cast %233 : vector<8xf32> to vector<8x1xf32>
    %235 = tpu.reciprocal %234 {approx = true} : vector<8x1xf32> -> vector<8x1xf32>
    %236 = vector.broadcast %235 : vector<8x1xf32> to vector<8x8xf32>
    %237 = arith.mulf %232, %236 : vector<8x8xf32>
    %238 = arith.truncf %237 : vector<8x8xf32> to vector<8x8xbf16>
    %cst_91 = arith.constant dense<0.000000e+00> : vector<8x8xf32>
    %239 = tpu.matmul %238, %225, %cst_91 {dimension_numbers = #tpu.dot_dimension_numbers<[1], [0], [0], [1], [0, 0, 1, 1], [], []>} : vector<8x8xbf16>, vector<8x8xbf16>, vector<8x8xf32> -> vector<8x8xf32>
    %c0_92 = arith.constant 0 : index
    %c16_93 = arith.constant 16 : index
    %240 = vector.load %arg21[%c0_92, %c16_93] : memref<8x32xf32, #tpu.memory_space<vmem>>, vector<8x8xf32>
    tpu.vector_store %arg21[%c0_92, %c16_93], %239 {strides = array<i32>} : memref<8x32xf32, #tpu.memory_space<vmem>>, vector<8x8xf32>,
    %241 = vector.extract_strided_slice %174 {offsets = [0, 24], sizes = [8, 8], strides = [1, 1]} : vector<8x32xf32> to vector<8x8xf32>
    %242 = arith.truncf %241 : vector<8x8xf32> to vector<8x8xbf16>
    %243 = vector.extract_strided_slice %168 {offsets = [0, 24], sizes = [8, 8], strides = [1, 1]} : vector<8x32xf32> to vector<8x8xf32>
    %244 = arith.truncf %243 : vector<8x8xf32> to vector<8x8xbf16>
    %245 = vector.extract_strided_slice %169 {offsets = [0, 24], sizes = [8, 8], strides = [1, 1]} : vector<8x32xf32> to vector<8x8xf32>
    %246 = arith.truncf %245 : vector<8x8xf32> to vector<8x8xbf16>
    "tpu.trace_start"() <{level = 10 : i32, message = "qd,kd->qk"}> : () -> ()
    %cst_94 = arith.constant dense<0.000000e+00> : vector<8x8xf32>
    %247 = tpu.matmul %242, %244, %cst_94 {dimension_numbers = #tpu.dot_dimension_numbers<[1], [1], [0], [0], [0, 0, 1, 0], [], []>} : vector<8x8xbf16>, vector<8x8xbf16>, vector<8x8xf32> -> vector<8x8xf32>
    "tpu.trace_stop"() : () -> ()
    %248 = arith.addf %247, %177 : vector<8x8xf32>
    %cst_95 = arith.constant dense<0xFF800000> : vector<8xf32>
    %249 = vector.multi_reduction <maximumf>, %248, %cst_95 [1] : vector<8x8xf32> to vector<8xf32>
    %250 = vector.shape_cast %249 : vector<8xf32> to vector<8x1xf32>
    %251 = vector.broadcast %250 : vector<8x1xf32> to vector<8x8xf32>
    %252 = arith.subf %248, %251 : vector<8x8xf32>
    %253 = math.exp %252 : vector<8x8xf32>
    %cst_96 = arith.constant dense<0.000000e+00> : vector<8xf32>
    %254 = vector.multi_reduction <add>, %253, %cst_96 [1] : vector<8x8xf32> to vector<8xf32>
    %255 = vector.shape_cast %254 : vector<8xf32> to vector<8x1xf32>
    %256 = tpu.reciprocal %255 {approx = true} : vector<8x1xf32> -> vector<8x1xf32>
    %257 = vector.broadcast %256 : vector<8x1xf32> to vector<8x8xf32>
    %258 = arith.mulf %253, %257 : vector<8x8xf32>
    %259 = arith.truncf %258 : vector<8x8xf32> to vector<8x8xbf16>
    %cst_97 = arith.constant dense<0.000000e+00> : vector<8x8xf32>
    %260 = tpu.matmul %259, %246, %cst_97 {dimension_numbers = #tpu.dot_dimension_numbers<[1], [0], [0], [1], [0, 0, 1, 1], [], []>} : vector<8x8xbf16>, vector<8x8xbf16>, vector<8x8xf32> -> vector<8x8xf32>
    %c0_98 = arith.constant 0 : index
    %c24_99 = arith.constant 24 : index
    %261 = vector.load %arg21[%c0_98, %c24_99] : memref<8x32xf32, #tpu.memory_space<vmem>>, vector<8x8xf32>
    tpu.vector_store %arg21[%c0_98, %c24_99], %260 {strides = array<i32>} : memref<8x32xf32, #tpu.memory_space<vmem>>, vector<8x8xf32>,
    %c0_100 = arith.constant 0 : index
    %c0_101 = arith.constant 0 : index
    %262 = vector.load %arg21[%c0_100, %c0_101] : memref<8x32xf32, #tpu.memory_space<vmem>>, vector<8x32xf32>
    %263 = arith.truncf %262 : vector<8x32xf32> to vector<8x32xbf16>
    %cst_102 = arith.constant dense<0.000000e+00> : vector<8x32xf32>
    %264 = tpu.matmul %263, %172, %cst_102 {dimension_numbers = #tpu.dot_dimension_numbers<[1], [0], [0], [1], [0, 0, 1, 1], [], []>} : vector<8x32xbf16>, vector<32x32xbf16>, vector<8x32xf32> -> vector<8x32xf32>
    %265 = arith.addf %132, %264 : vector<8x32xf32>
    %c0_103 = arith.constant 0 : index
    %c0_104 = arith.constant 0 : index
    %266 = vector.load %arg15[%c0_103, %c0_104] : memref<1x32xf32, #tpu.memory_space<vmem>>, vector<1x32xf32>
    %267 = vector.broadcast %266 : vector<1x32xf32> to vector<8x32xf32>
    %268 = arith.addf %265, %267 : vector<8x32xf32>
    %c2 = arith.constant 2 : index
    %c0_105 = arith.constant 0 : index
    %269 = memref.load %arg5[%c2, %c0_105] : memref<3x2xf32, #tpu.memory_space<smem>>
    %c2_106 = arith.constant 2 : index
    %c1_107 = arith.constant 1 : index
    %270 = memref.load %arg5[%c2_106, %c1_107] : memref<3x2xf32, #tpu.memory_space<smem>>
    %cst_108 = arith.constant dense<0.000000e+00> : vector<8xf32>
    %271 = vector.multi_reduction <add>, %268, %cst_108 [1] : vector<8x32xf32> to vector<8xf32>
    %272 = vector.shape_cast %271 : vector<8xf32> to vector<8x1xf32>
    %cst_109 = arith.constant 3.200000e+01 : f32
    %273 = vector.broadcast %cst_109 : f32 to vector<8x1xf32>
    %274 = arith.divf %272, %273 : vector<8x1xf32>
    %275 = vector.broadcast %274 : vector<8x1xf32> to vector<8x32xf32>
    %276 = arith.subf %268, %275 : vector<8x32xf32>
    %277 = arith.mulf %276, %276 : vector<8x32xf32>
    %cst_110 = arith.constant dense<0.000000e+00> : vector<8xf32>
    %278 = vector.multi_reduction <add>, %277, %cst_110 [1] : vector<8x32xf32> to vector<8xf32>
    %279 = vector.shape_cast %278 : vector<8xf32> to vector<8x1xf32>
    %cst_111 = arith.constant 0.0322580636 : f32
    %280 = vector.broadcast %cst_111 : f32 to vector<8x1xf32>
    %281 = arith.mulf %279, %280 : vector<8x1xf32>
    %282 = math.sqrt %281 : vector<8x1xf32>
    %cst_112 = arith.constant 9.99999997E-7 : f32
    %283 = vector.broadcast %cst_112 : f32 to vector<8x1xf32>
    %284 = arith.addf %282, %283 : vector<8x1xf32>
    %285 = tpu.reciprocal %284 : vector<8x1xf32> -> vector<8x1xf32>
    %286 = vector.broadcast %269 : f32 to vector<8x32xf32>
    %287 = arith.mulf %286, %276 : vector<8x32xf32>
    %288 = vector.broadcast %285 : vector<8x1xf32> to vector<8x32xf32>
    %289 = arith.mulf %287, %288 : vector<8x32xf32>
    %290 = vector.broadcast %270 : f32 to vector<8x32xf32>
    %291 = arith.addf %289, %290 : vector<8x32xf32>
    %292 = arith.truncf %291 : vector<8x32xf32> to vector<8x32xbf16>
    %c0_113 = arith.constant 0 : index
    %c0_114 = arith.constant 0 : index
    %293 = vector.load %arg16[%c0_113, %c0_114] : memref<32x64xbf16, #tpu.memory_space<vmem>>, vector<32x64xbf16>
    %cst_115 = arith.constant dense<0.000000e+00> : vector<8x64xf32>
    %294 = tpu.matmul %292, %293, %cst_115 {dimension_numbers = #tpu.dot_dimension_numbers<[1], [0], [0], [1], [0, 0, 1, 1], [], []>} : vector<8x32xbf16>, vector<32x64xbf16>, vector<8x64xf32> -> vector<8x64xf32>
    %c0_116 = arith.constant 0 : index
    %c0_117 = arith.constant 0 : index
    %295 = vector.load %arg17[%c0_116, %c0_117] : memref<1x64xf32, #tpu.memory_space<vmem>>, vector<1x64xf32>
    %296 = vector.broadcast %295 : vector<1x64xf32> to vector<8x64xf32>
    %297 = arith.addf %294, %296 : vector<8x64xf32>
    %cst_118 = arith.constant 0.000000e+00 : f32
    %298 = vector.broadcast %cst_118 : f32 to vector<8x64xf32>
    %299 = arith.maximumf %297, %298 : vector<8x64xf32>
    %300 = arith.truncf %299 : vector<8x64xf32> to vector<8x64xbf16>
    %c0_119 = arith.constant 0 : index
    %c0_120 = arith.constant 0 : index
    %301 = vector.load %arg18[%c0_119, %c0_120] : memref<64x32xbf16, #tpu.memory_space<vmem>>, vector<64x32xbf16>
    %cst_121 = arith.constant dense<0.000000e+00> : vector<8x32xf32>
    %302 = tpu.matmul %300, %301, %cst_121 {dimension_numbers = #tpu.dot_dimension_numbers<[1], [0], [0], [1], [0, 0, 1, 1], [], []>} : vector<8x64xbf16>, vector<64x32xbf16>, vector<8x32xf32> -> vector<8x32xf32>
    %c0_122 = arith.constant 0 : index
    %c0_123 = arith.constant 0 : index
    %303 = vector.load %arg19[%c0_122, %c0_123] : memref<1x32xf32, #tpu.memory_space<vmem>>, vector<1x32xf32>
    %304 = vector.broadcast %303 : vector<1x32xf32> to vector<8x32xf32>
    %305 = arith.addf %302, %304 : vector<8x32xf32>
    %306 = arith.addf %268, %305 : vector<8x32xf32>
    %c0_124 = arith.constant 0 : index
    %c0_125 = arith.constant 0 : index
    %c0_126 = arith.constant 0 : index
    %307 = vector.load %arg20[%c0_124, %c0_125, %c0_126] : memref<1x8x32xf32, #tpu.memory_space<vmem>>, vector<1x8x32xf32>
    %308 = vector.shape_cast %307 : vector<1x8x32xf32> to vector<8x32xf32>
    %309 = vector.shape_cast %306 : vector<8x32xf32> to vector<1x8x32xf32>
    tpu.vector_store %arg20[%c0_124, %c0_125, %c0_126], %309 {strides = array<i32>} : memref<1x8x32xf32, #tpu.memory_space<vmem>>, vector<1x8x32xf32>,
    return
  }
  func.func @transform_0(%arg0: i32) -> (i32, i32, i32) {
    %c0_i32 = arith.constant 0 : i32
    %c0_i32_0 = arith.constant 0 : i32
    %c0_i32_1 = arith.constant 0 : i32
    return %arg0, %c0_i32, %c0_i32_0 : i32, i32, i32
  }
  func.func @transform_1(%arg0: i32) -> (i32, i32, i32) {
    %c0_i32 = arith.constant 0 : i32
    %c0_i32_0 = arith.constant 0 : i32
    %c0_i32_1 = arith.constant 0 : i32
    return %arg0, %c0_i32, %c0_i32_0 : i32, i32, i32
  }
  func.func @transform_2(%arg0: i32) -> (i32, i32, i32, i32) {
    %c0_i32 = arith.constant 0 : i32
    %c0_i32_0 = arith.constant 0 : i32
    %c0_i32_1 = arith.constant 0 : i32
    %c0_i32_2 = arith.constant 0 : i32
    return %arg0, %c0_i32, %c0_i32_0, %c0_i32_1 : i32, i32, i32, i32
  }
  func.func @transform_3(%arg0: i32) -> (i32, i32, i32, i32) {
    %c0_i32 = arith.constant 0 : i32
    %c0_i32_0 = arith.constant 0 : i32
    %c0_i32_1 = arith.constant 0 : i32
    %c0_i32_2 = arith.constant 0 : i32
    return %arg0, %c0_i32, %c0_i32_0, %c0_i32_1 : i32, i32, i32, i32
  }
  func.func @transform_4(%arg0: i32) -> (i32, i32) {
    %c0_i32 = arith.constant 0 : i32
    %c0_i32_0 = arith.constant 0 : i32
    %c0_i32_1 = arith.constant 0 : i32
    return %c0_i32, %c0_i32_0 : i32, i32
  }
  func.func @transform_5(%arg0: i32) -> (i32, i32) {
    %c0_i32 = arith.constant 0 : i32
    %c0_i32_0 = arith.constant 0 : i32
    %c0_i32_1 = arith.constant 0 : i32
    return %c0_i32, %c0_i32_0 : i32, i32
  }
  func.func @transform_6(%arg0: i32) -> (i32, i32) {
    %c0_i32 = arith.constant 0 : i32
    %c0_i32_0 = arith.constant 0 : i32
    %c0_i32_1 = arith.constant 0 : i32
    return %c0_i32, %c0_i32_0 : i32, i32
  }
  func.func @transform_7(%arg0: i32) -> (i32, i32) {
    %c0_i32 = arith.constant 0 : i32
    %c0_i32_0 = arith.constant 0 : i32
    %c0_i32_1 = arith.constant 0 : i32
    return %c0_i32, %c0_i32_0 : i32, i32
  }
  func.func @transform_8(%arg0: i32) -> (i32, i32) {
    %c0_i32 = arith.constant 0 : i32
    %c0_i32_0 = arith.constant 0 : i32
    %c0_i32_1 = arith.constant 0 : i32
    return %c0_i32, %c0_i32_0 : i32, i32
  }
  func.func @transform_9(%arg0: i32) -> (i32, i32) {
    %c0_i32 = arith.constant 0 : i32
    %c0_i32_0 = arith.constant 0 : i32
    %c0_i32_1 = arith.constant 0 : i32
    return %c0_i32, %c0_i32_0 : i32, i32
  }
  func.func @transform_10(%arg0: i32) -> (i32, i32) {
    %c0_i32 = arith.constant 0 : i32
    %c0_i32_0 = arith.constant 0 : i32
    %c0_i32_1 = arith.constant 0 : i32
    return %c0_i32, %c0_i32_0 : i32, i32
  }
  func.func @transform_11(%arg0: i32) -> (i32, i32) {
    %c0_i32 = arith.constant 0 : i32
    %c0_i32_0 = arith.constant 0 : i32
    %c0_i32_1 = arith.constant 0 : i32
    return %c0_i32, %c0_i32_0 : i32, i32
  }
  func.func @transform_12(%arg0: i32) -> (i32, i32) {
    %c0_i32 = arith.constant 0 : i32
    %c0_i32_0 = arith.constant 0 : i32
    %c0_i32_1 = arith.constant 0 : i32
    return %c0_i32, %c0_i32_0 : i32, i32
  }
  func.func @transform_13(%arg0: i32) -> (i32, i32) {
    %c0_i32 = arith.constant 0 : i32
    %c0_i32_0 = arith.constant 0 : i32
    %c0_i32_1 = arith.constant 0 : i32
    return %c0_i32, %c0_i32_0 : i32, i32
  }
  func.func @transform_14(%arg0: i32) -> (i32, i32) {
    %c0_i32 = arith.constant 0 : i32
    %c0_i32_0 = arith.constant 0 : i32
    %c0_i32_1 = arith.constant 0 : i32
    return %c0_i32, %c0_i32_0 : i32, i32
  }
  func.func @transform_15(%arg0: i32) -> (i32, i32) {
    %c0_i32 = arith.constant 0 : i32
    %c0_i32_0 = arith.constant 0 : i32
    %c0_i32_1 = arith.constant 0 : i32
    return %c0_i32, %c0_i32_0 : i32, i32
  }
  func.func @transform_16(%arg0: i32) -> (i32, i32) {
    %c0_i32 = arith.constant 0 : i32
    %c0_i32_0 = arith.constant 0 : i32
    %c0_i32_1 = arith.constant 0 : i32
    return %c0_i32, %c0_i32_0 : i32, i32
  }
  func.func @transform_17(%arg0: i32) -> (i32, i32) {
    %c0_i32 = arith.constant 0 : i32
    %c0_i32_0 = arith.constant 0 : i32
    %c0_i32_1 = arith.constant 0 : i32
    return %c0_i32, %c0_i32_0 : i32, i32
  }
  func.func @transform_18(%arg0: i32) -> (i32, i32) {
    %c0_i32 = arith.constant 0 : i32
    %c0_i32_0 = arith.constant 0 : i32
    %c0_i32_1 = arith.constant 0 : i32
    return %c0_i32, %c0_i32_0 : i32, i32
  }
  func.func @transform_19(%arg0: i32) -> (i32, i32, i32) {
    %c0_i32 = arith.constant 0 : i32
    %c0_i32_0 = arith.constant 0 : i32
    %c0_i32_1 = arith.constant 0 : i32
    return %arg0, %c0_i32, %c0_i32_0 : i32, i32, i32
  }
}

module attributes {stable_mosaic.version = 11 : i64} {
  func.func @_decoder_layer_kernel(%arg0: i32, %arg1: memref<1x8x32xf32, #tpu.memory_space<vmem>>, %arg2: memref<1x8x32xf32, #tpu.memory_space<vmem>>, %arg3: memref<1x1x8x8xbf16, #tpu.memory_space<vmem>>, %arg4: memref<1x1x1x8xbf16, #tpu.memory_space<vmem>>, %arg5: memref<3x2xf32, #tpu.memory_space<smem>>, %arg6: memref<32x96xbf16, #tpu.memory_space<vmem>>, %arg7: memref<1x96xf32, #tpu.memory_space<vmem>>, %arg8: memref<32x32xbf16, #tpu.memory_space<vmem>>, %arg9: memref<1x32xf32, #tpu.memory_space<vmem>>, %arg10: memref<32x32xbf16, #tpu.memory_space<vmem>>, %arg11: memref<1x32xf32, #tpu.memory_space<vmem>>, %arg12: memref<32x64xbf16, #tpu.memory_space<vmem>>, %arg13: memref<1x64xf32, #tpu.memory_space<vmem>>, %arg14: memref<32x32xbf16, #tpu.memory_space<vmem>>, %arg15: memref<1x32xf32, #tpu.memory_space<vmem>>, %arg16: memref<32x64xbf16, #tpu.memory_space<vmem>>, %arg17: memref<1x64xf32, #tpu.memory_space<vmem>>, %arg18: memref<64x32xbf16, #tpu.memory_space<vmem>>, %arg19: memref<1x32xf32, #tpu.memory_space<vmem>>, %arg20: memref<1x8x32xf32, #tpu.memory_space<vmem>>, %arg21: memref<8x32xf32, #tpu.memory_space<vmem>>) attributes {dimension_semantics = [#tpu.dimension_semantics<parallel>], iteration_bounds = array<i64: 2>, scalar_prefetch = 0 : i64, scratch_operands = 1 : i64, tpu.core_type = #tpu.core_type<tc>, window_params = [{transform_indices = @transform_0, window_bounds = array<i64: 1, 8, 32>}, {transform_indices = @transform_1, window_bounds = array<i64: 1, 8, 32>}, {transform_indices = @transform_2, window_bounds = array<i64: 1, 1, 8, 8>}, {transform_indices = @transform_3, window_bounds = array<i64: 1, 1, 1, 8>}, {transform_indices = @transform_4, window_bounds = array<i64: 3, 2>}, {pipeline_mode = #tpu.pipeline_mode<synchronous>, transform_indices = @transform_5, window_bounds = array<i64: 32, 96>}, {pipeline_mode = #tpu.pipeline_mode<synchronous>, transform_indices = @transform_6, window_bounds = array<i64: 1, 96>}, {pipeline_mode = #tpu.pipeline_mode<synchronous>, transform_indices = @transform_7, window_bounds = array<i64: 32, 32>}, {pipeline_mode = #tpu.pipeline_mode<synchronous>, transform_indices = @transform_8, window_bounds = array<i64: 1, 32>}, {pipeline_mode = #tpu.pipeline_mode<synchronous>, transform_indices = @transform_9, window_bounds = array<i64: 32, 32>}, {pipeline_mode = #tpu.pipeline_mode<synchronous>, transform_indices = @transform_10, window_bounds = array<i64: 1, 32>}, {pipeline_mode = #tpu.pipeline_mode<synchronous>, transform_indices = @transform_11, window_bounds = array<i64: 32, 64>}, {pipeline_mode = #tpu.pipeline_mode<synchronous>, transform_indices = @transform_12, window_bounds = array<i64: 1, 64>}, {pipeline_mode = #tpu.pipeline_mode<synchronous>, transform_indices = @transform_13, window_bounds = array<i64: 32, 32>}, {pipeline_mode = #tpu.pipeline_mode<synchronous>, transform_indices = @transform_14, window_bounds = array<i64: 1, 32>}, {pipeline_mode = #tpu.pipeline_mode<synchronous>, transform_indices = @transform_15, window_bounds = array<i64: 32, 64>}, {pipeline_mode = #tpu.pipeline_mode<synchronous>, transform_indices = @transform_16, window_bounds = array<i64: 1, 64>}, {pipeline_mode = #tpu.pipeline_mode<synchronous>, transform_indices = @transform_17, window_bounds = array<i64: 64, 32>}, {pipeline_mode = #tpu.pipeline_mode<synchronous>, transform_indices = @transform_18, window_bounds = array<i64: 1, 32>}, {transform_indices = @transform_19, window_bounds = array<i64: 1, 8, 32>}]} {
    %c0 = arith.constant 0 : index
    %c0_0 = arith.constant 0 : index
    %c0_1 = arith.constant 0 : index
    %0 = vector.load %arg1[%c0, %c0_0, %c0_1] : memref<1x8x32xf32, #tpu.memory_space<vmem>>, vector<1x8x32xf32>
    %1 = vector.shape_cast %0 : vector<1x8x32xf32> to vector<8x32xf32>
    %c0_2 = arith.constant 0 : index
    %c0_3 = arith.constant 0 : index
    %c0_4 = arith.constant 0 : index
    %2 = vector.load %arg2[%c0_2, %c0_3, %c0_4] : memref<1x8x32xf32, #tpu.memory_space<vmem>>, vector<1x8x32xf32>
    %3 = vector.shape_cast %2 : vector<1x8x32xf32> to vector<8x32xf32>
    %c0_5 = arith.constant 0 : index
    %c0_6 = arith.constant 0 : index
    %4 = memref.load %arg5[%c0_5, %c0_6] : memref<3x2xf32, #tpu.memory_space<smem>>
    %c0_7 = arith.constant 0 : index
    %c1 = arith.constant 1 : index
    %5 = memref.load %arg5[%c0_7, %c1] : memref<3x2xf32, #tpu.memory_space<smem>>
    %cst = arith.constant dense<0.000000e+00> : vector<8xf32>
    %6 = vector.multi_reduction <add>, %1, %cst [1] : vector<8x32xf32> to vector<8xf32>
    %7 = vector.shape_cast %6 : vector<8xf32> to vector<8x1xf32>
    %cst_8 = arith.constant 3.200000e+01 : f32
    %8 = vector.broadcast %cst_8 : f32 to vector<8x1xf32>
    %9 = arith.divf %7, %8 : vector<8x1xf32>
    %10 = vector.broadcast %9 : vector<8x1xf32> to vector<8x32xf32>
    %11 = arith.subf %1, %10 : vector<8x32xf32>
    %12 = arith.mulf %11, %11 : vector<8x32xf32>
    %cst_9 = arith.constant dense<0.000000e+00> : vector<8xf32>
    %13 = vector.multi_reduction <add>, %12, %cst_9 [1] : vector<8x32xf32> to vector<8xf32>
    %14 = vector.shape_cast %13 : vector<8xf32> to vector<8x1xf32>
    %cst_10 = arith.constant 0.0322580636 : f32
    %15 = vector.broadcast %cst_10 : f32 to vector<8x1xf32>
    %16 = arith.mulf %14, %15 : vector<8x1xf32>
    %17 = math.sqrt %16 : vector<8x1xf32>
    %cst_11 = arith.constant 9.99999997E-7 : f32
    %18 = vector.broadcast %cst_11 : f32 to vector<8x1xf32>
    %19 = arith.addf %17, %18 : vector<8x1xf32>
    %20 = tpu.reciprocal %19 : vector<8x1xf32> -> vector<8x1xf32>
    %21 = vector.broadcast %4 : f32 to vector<8x32xf32>
    %22 = arith.mulf %21, %11 : vector<8x32xf32>
    %23 = vector.broadcast %20 : vector<8x1xf32> to vector<8x32xf32>
    %24 = arith.mulf %22, %23 : vector<8x32xf32>
    %25 = vector.broadcast %5 : f32 to vector<8x32xf32>
    %26 = arith.addf %24, %25 : vector<8x32xf32>
    %27 = arith.truncf %26 : vector<8x32xf32> to vector<8x32xbf16>
    %c0_12 = arith.constant 0 : index
    %c0_13 = arith.constant 0 : index
    %28 = vector.load %arg6[%c0_12, %c0_13] : memref<32x96xbf16, #tpu.memory_space<vmem>>, vector<32x96xbf16>
    %cst_14 = arith.constant dense<0.000000e+00> : vector<8x96xf32>
    %29 = tpu.matmul %27, %28, %cst_14 {dimension_numbers = #tpu.dot_dimension_numbers<[1], [0], [0], [1], [0, 0, 1, 1], [], []>} : vector<8x32xbf16>, vector<32x96xbf16>, vector<8x96xf32> -> vector<8x96xf32>
    %c0_15 = arith.constant 0 : index
    %c0_16 = arith.constant 0 : index
    %30 = vector.load %arg7[%c0_15, %c0_16] : memref<1x96xf32, #tpu.memory_space<vmem>>, vector<1x96xf32>
    %31 = vector.broadcast %30 : vector<1x96xf32> to vector<8x96xf32>
    %32 = arith.addf %29, %31 : vector<8x96xf32>
    %33 = vector.extract_strided_slice %32 {offsets = [0, 0], sizes = [8, 32], strides = [1, 1]} : vector<8x96xf32> to vector<8x32xf32>
    %34 = vector.extract_strided_slice %32 {offsets = [0, 32], sizes = [8, 32], strides = [1, 1]} : vector<8x96xf32> to vector<8x32xf32>
    %35 = vector.extract_strided_slice %32 {offsets = [0, 64], sizes = [8, 32], strides = [1, 1]} : vector<8x96xf32> to vector<8x32xf32>
    %c0_17 = arith.constant 0 : index
    %c0_18 = arith.constant 0 : index
    %c0_19 = arith.constant 0 : index
    %c0_20 = arith.constant 0 : index
    %36 = vector.load %arg3[%c0_17, %c0_18, %c0_19, %c0_20] : memref<1x1x8x8xbf16, #tpu.memory_space<vmem>>, vector<1x1x8x8xbf16>
    %37 = vector.shape_cast %36 : vector<1x1x8x8xbf16> to vector<8x8xbf16>
    %c0_21 = arith.constant 0 : index
    %c0_22 = arith.constant 0 : index
    %38 = vector.load %arg8[%c0_21, %c0_22] : memref<32x32xbf16, #tpu.memory_space<vmem>>, vector<32x32xbf16>
    %cst_23 = arith.constant 0.353553385 : f32
    %39 = vector.broadcast %cst_23 : f32 to vector<8x32xf32>
    %40 = arith.mulf %33, %39 : vector<8x32xf32>
    %41 = arith.extf %37 : vector<8x8xbf16> to vector<8x8xf32>
    %42 = vector.extract_strided_slice %40 {offsets = [0, 0], sizes = [8, 8], strides = [1, 1]} : vector<8x32xf32> to vector<8x8xf32>
    %43 = arith.truncf %42 : vector<8x8xf32> to vector<8x8xbf16>
    %44 = vector.extract_strided_slice %34 {offsets = [0, 0], sizes = [8, 8], strides = [1, 1]} : vector<8x32xf32> to vector<8x8xf32>
    %45 = arith.truncf %44 : vector<8x8xf32> to vector<8x8xbf16>
    %46 = vector.extract_strided_slice %35 {offsets = [0, 0], sizes = [8, 8], strides = [1, 1]} : vector<8x32xf32> to vector<8x8xf32>
    %47 = arith.truncf %46 : vector<8x8xf32> to vector<8x8xbf16>
    "tpu.trace_start"() <{level = 10 : i32, message = "qd,kd->qk"}> : () -> ()
    %cst_24 = arith.constant dense<0.000000e+00> : vector<8x8xf32>
    %48 = tpu.matmul %43, %45, %cst_24 {dimension_numbers = #tpu.dot_dimension_numbers<[1], [1], [0], [0], [0, 0, 1, 0], [], []>} : vector<8x8xbf16>, vector<8x8xbf16>, vector<8x8xf32> -> vector<8x8xf32>
    "tpu.trace_stop"() : () -> ()
    %49 = arith.addf %48, %41 : vector<8x8xf32>
    %cst_25 = arith.constant dense<0xFF800000> : vector<8xf32>
    %50 = vector.multi_reduction <maximumf>, %49, %cst_25 [1] : vector<8x8xf32> to vector<8xf32>
    %51 = vector.shape_cast %50 : vector<8xf32> to vector<8x1xf32>
    %52 = vector.broadcast %51 : vector<8x1xf32> to vector<8x8xf32>
    %53 = arith.subf %49, %52 : vector<8x8xf32>
    %54 = math.exp %53 : vector<8x8xf32>
    %cst_26 = arith.constant dense<0.000000e+00> : vector<8xf32>
    %55 = vector.multi_reduction <add>, %54, %cst_26 [1] : vector<8x8xf32> to vector<8xf32>
    %56 = vector.shape_cast %55 : vector<8xf32> to vector<8x1xf32>
    %57 = tpu.reciprocal %56 {approx = true} : vector<8x1xf32> -> vector<8x1xf32>
    %58 = vector.broadcast %57 : vector<8x1xf32> to vector<8x8xf32>
    %59 = arith.mulf %54, %58 : vector<8x8xf32>
    %60 = arith.truncf %59 : vector<8x8xf32> to vector<8x8xbf16>
    %cst_27 = arith.constant dense<0.000000e+00> : vector<8x8xf32>
    %61 = tpu.matmul %60, %47, %cst_27 {dimension_numbers = #tpu.dot_dimension_numbers<[1], [0], [0], [1], [0, 0, 1, 1], [], []>} : vector<8x8xbf16>, vector<8x8xbf16>, vector<8x8xf32> -> vector<8x8xf32>
    %c0_28 = arith.constant 0 : index
    %c0_29 = arith.constant 0 : index
    %62 = vector.load %arg21[%c0_28, %c0_29] : memref<8x32xf32, #tpu.memory_space<vmem>>, vector<8x8xf32>
    tpu.vector_store %arg21[%c0_28, %c0_29], %61 {strides = array<i32>} : memref<8x32xf32, #tpu.memory_space<vmem>>, vector<8x8xf32>,
    %63 = vector.extract_strided_slice %40 {offsets = [0, 8], sizes = [8, 8], strides = [1, 1]} : vector<8x32xf32> to vector<8x8xf32>
    %64 = arith.truncf %63 : vector<8x8xf32> to vector<8x8xbf16>
    %65 = vector.extract_strided_slice %34 {offsets = [0, 8], sizes = [8, 8], strides = [1, 1]} : vector<8x32xf32> to vector<8x8xf32>
    %66 = arith.truncf %65 : vector<8x8xf32> to vector<8x8xbf16>
    %67 = vector.extract_strided_slice %35 {offsets = [0, 8], sizes = [8, 8], strides = [1, 1]} : vector<8x32xf32> to vector<8x8xf32>
    %68 = arith.truncf %67 : vector<8x8xf32> to vector<8x8xbf16>
    "tpu.trace_start"() <{level = 10 : i32, message = "qd,kd->qk"}> : () -> ()
    %cst_30 = arith.constant dense<0.000000e+00> : vector<8x8xf32>
    %69 = tpu.matmul %64, %66, %cst_30 {dimension_numbers = #tpu.dot_dimension_numbers<[1], [1], [0], [0], [0, 0, 1, 0], [], []>} : vector<8x8xbf16>, vector<8x8xbf16>, vector<8x8xf32> -> vector<8x8xf32>
    "tpu.trace_stop"() : () -> ()
    %70 = arith.addf %69, %41 : vector<8x8xf32>
    %cst_31 = arith.constant dense<0xFF800000> : vector<8xf32>
    %71 = vector.multi_reduction <maximumf>, %70, %cst_31 [1] : vector<8x8xf32> to vector<8xf32>
    %72 = vector.shape_cast %71 : vector<8xf32> to vector<8x1xf32>
    %73 = vector.broadcast %72 : vector<8x1xf32> to vector<8x8xf32>
    %74 = arith.subf %70, %73 : vector<8x8xf32>
    %75 = math.exp %74 : vector<8x8xf32>
    %cst_32 = arith.constant dense<0.000000e+00> : vector<8xf32>
    %76 = vector.multi_reduction <add>, %75, %cst_32 [1] : vector<8x8xf32> to vector<8xf32>
    %77 = vector.shape_cast %76 : vector<8xf32> to vector<8x1xf32>
    %78 = tpu.reciprocal %77 {approx = true} : vector<8x1xf32> -> vector<8x1xf32>
    %79 = vector.broadcast %78 : vector<8x1xf32> to vector<8x8xf32>
    %80 = arith.mulf %75, %79 : vector<8x8xf32>
    %81 = arith.truncf %80 : vector<8x8xf32> to vector<8x8xbf16>
    %cst_33 = arith.constant dense<0.000000e+00> : vector<8x8xf32>
    %82 = tpu.matmul %81, %68, %cst_33 {dimension_numbers = #tpu.dot_dimension_numbers<[1], [0], [0], [1], [0, 0, 1, 1], [], []>} : vector<8x8xbf16>, vector<8x8xbf16>, vector<8x8xf32> -> vector<8x8xf32>
    %c0_34 = arith.constant 0 : index
    %c8 = arith.constant 8 : index
    %83 = vector.load %arg21[%c0_34, %c8] : memref<8x32xf32, #tpu.memory_space<vmem>>, vector<8x8xf32>
    tpu.vector_store %arg21[%c0_34, %c8], %82 {strides = array<i32>} : memref<8x32xf32, #tpu.memory_space<vmem>>, vector<8x8xf32>,
    %84 = vector.extract_strided_slice %40 {offsets = [0, 16], sizes = [8, 8], strides = [1, 1]} : vector<8x32xf32> to vector<8x8xf32>
    %85 = arith.truncf %84 : vector<8x8xf32> to vector<8x8xbf16>
    %86 = vector.extract_strided_slice %34 {offsets = [0, 16], sizes = [8, 8], strides = [1, 1]} : vector<8x32xf32> to vector<8x8xf32>
    %87 = arith.truncf %86 : vector<8x8xf32> to vector<8x8xbf16>
    %88 = vector.extract_strided_slice %35 {offsets = [0, 16], sizes = [8, 8], strides = [1, 1]} : vector<8x32xf32> to vector<8x8xf32>
    %89 = arith.truncf %88 : vector<8x8xf32> to vector<8x8xbf16>
    "tpu.trace_start"() <{level = 10 : i32, message = "qd,kd->qk"}> : () -> ()
    %cst_35 = arith.constant dense<0.000000e+00> : vector<8x8xf32>
    %90 = tpu.matmul %85, %87, %cst_35 {dimension_numbers = #tpu.dot_dimension_numbers<[1], [1], [0], [0], [0, 0, 1, 0], [], []>} : vector<8x8xbf16>, vector<8x8xbf16>, vector<8x8xf32> -> vector<8x8xf32>
    "tpu.trace_stop"() : () -> ()
    %91 = arith.addf %90, %41 : vector<8x8xf32>
    %cst_36 = arith.constant dense<0xFF800000> : vector<8xf32>
    %92 = vector.multi_reduction <maximumf>, %91, %cst_36 [1] : vector<8x8xf32> to vector<8xf32>
    %93 = vector.shape_cast %92 : vector<8xf32> to vector<8x1xf32>
    %94 = vector.broadcast %93 : vector<8x1xf32> to vector<8x8xf32>
    %95 = arith.subf %91, %94 : vector<8x8xf32>
    %96 = math.exp %95 : vector<8x8xf32>
    %cst_37 = arith.constant dense<0.000000e+00> : vector<8xf32>
    %97 = vector.multi_reduction <add>, %96, %cst_37 [1] : vector<8x8xf32> to vector<8xf32>
    %98 = vector.shape_cast %97 : vector<8xf32> to vector<8x1xf32>
    %99 = tpu.reciprocal %98 {approx = true} : vector<8x1xf32> -> vector<8x1xf32>
    %100 = vector.broadcast %99 : vector<8x1xf32> to vector<8x8xf32>
    %101 = arith.mulf %96, %100 : vector<8x8xf32>
    %102 = arith.truncf %101 : vector<8x8xf32> to vector<8x8xbf16>
    %cst_38 = arith.constant dense<0.000000e+00> : vector<8x8xf32>
    %103 = tpu.matmul %102, %89, %cst_38 {dimension_numbers = #tpu.dot_dimension_numbers<[1], [0], [0], [1], [0, 0, 1, 1], [], []>} : vector<8x8xbf16>, vector<8x8xbf16>, vector<8x8xf32> -> vector<8x8xf32>
    %c0_39 = arith.constant 0 : index
    %c16 = arith.constant 16 : index
    %104 = vector.load %arg21[%c0_39, %c16] : memref<8x32xf32, #tpu.memory_space<vmem>>, vector<8x8xf32>
    tpu.vector_store %arg21[%c0_39, %c16], %103 {strides = array<i32>} : memref<8x32xf32, #tpu.memory_space<vmem>>, vector<8x8xf32>,
    %105 = vector.extract_strided_slice %40 {offsets = [0, 24], sizes = [8, 8], strides = [1, 1]} : vector<8x32xf32> to vector<8x8xf32>
    %106 = arith.truncf %105 : vector<8x8xf32> to vector<8x8xbf16>
    %107 = vector.extract_strided_slice %34 {offsets = [0, 24], sizes = [8, 8], strides = [1, 1]} : vector<8x32xf32> to vector<8x8xf32>
    %108 = arith.truncf %107 : vector<8x8xf32> to vector<8x8xbf16>
    %109 = vector.extract_strided_slice %35 {offsets = [0, 24], sizes = [8, 8], strides = [1, 1]} : vector<8x32xf32> to vector<8x8xf32>
    %110 = arith.truncf %109 : vector<8x8xf32> to vector<8x8xbf16>
    "tpu.trace_start"() <{level = 10 : i32, message = "qd,kd->qk"}> : () -> ()
    %cst_40 = arith.constant dense<0.000000e+00> : vector<8x8xf32>
    %111 = tpu.matmul %106, %108, %cst_40 {dimension_numbers = #tpu.dot_dimension_numbers<[1], [1], [0], [0], [0, 0, 1, 0], [], []>} : vector<8x8xbf16>, vector<8x8xbf16>, vector<8x8xf32> -> vector<8x8xf32>
    "tpu.trace_stop"() : () -> ()
    %112 = arith.addf %111, %41 : vector<8x8xf32>
    %cst_41 = arith.constant dense<0xFF800000> : vector<8xf32>
    %113 = vector.multi_reduction <maximumf>, %112, %cst_41 [1] : vector<8x8xf32> to vector<8xf32>
    %114 = vector.shape_cast %113 : vector<8xf32> to vector<8x1xf32>
    %115 = vector.broadcast %114 : vector<8x1xf32> to vector<8x8xf32>
    %116 = arith.subf %112, %115 : vector<8x8xf32>
    %117 = math.exp %116 : vector<8x8xf32>
    %cst_42 = arith.constant dense<0.000000e+00> : vector<8xf32>
    %118 = vector.multi_reduction <add>, %117, %cst_42 [1] : vector<8x8xf32> to vector<8xf32>
    %119 = vector.shape_cast %118 : vector<8xf32> to vector<8x1xf32>
    %120 = tpu.reciprocal %119 {approx = true} : vector<8x1xf32> -> vector<8x1xf32>
    %121 = vector.broadcast %120 : vector<8x1xf32> to vector<8x8xf32>
    %122 = arith.mulf %117, %121 : vector<8x8xf32>
    %123 = arith.truncf %122 : vector<8x8xf32> to vector<8x8xbf16>
    %cst_43 = arith.constant dense<0.000000e+00> : vector<8x8xf32>
    %124 = tpu.matmul %123, %110, %cst_43 {dimension_numbers = #tpu.dot_dimension_numbers<[1], [0], [0], [1], [0, 0, 1, 1], [], []>} : vector<8x8xbf16>, vector<8x8xbf16>, vector<8x8xf32> -> vector<8x8xf32>
    %c0_44 = arith.constant 0 : index
    %c24 = arith.constant 24 : index
    %125 = vector.load %arg21[%c0_44, %c24] : memref<8x32xf32, #tpu.memory_space<vmem>>, vector<8x8xf32>
    tpu.vector_store %arg21[%c0_44, %c24], %124 {strides = array<i32>} : memref<8x32xf32, #tpu.memory_space<vmem>>, vector<8x8xf32>,
    %c0_45 = arith.constant 0 : index
    %c0_46 = arith.constant 0 : index
    %126 = vector.load %arg21[%c0_45, %c0_46] : memref<8x32xf32, #tpu.memory_space<vmem>>, vector<8x32xf32>
    %127 = arith.truncf %126 : vector<8x32xf32> to vector<8x32xbf16>
    %cst_47 = arith.constant dense<0.000000e+00> : vector<8x32xf32>
    %128 = tpu.matmul %127, %38, %cst_47 {dimension_numbers = #tpu.dot_dimension_numbers<[1], [0], [0], [1], [0, 0, 1, 1], [], []>} : vector<8x32xbf16>, vector<32x32xbf16>, vector<8x32xf32> -> vector<8x32xf32>
    %129 = arith.addf %1, %128 : vector<8x32xf32>
    %c0_48 = arith.constant 0 : index
    %c0_49 = arith.constant 0 : index
    %130 = vector.load %arg9[%c0_48, %c0_49] : memref<1x32xf32, #tpu.memory_space<vmem>>, vector<1x32xf32>
    %131 = vector.broadcast %130 : vector<1x32xf32> to vector<8x32xf32>
    %132 = arith.addf %129, %131 : vector<8x32xf32>
    %c1_50 = arith.constant 1 : index
    %c0_51 = arith.constant 0 : index
    %133 = memref.load %arg5[%c1_50, %c0_51] : memref<3x2xf32, #tpu.memory_space<smem>>
    %c1_52 = arith.constant 1 : index
    %c1_53 = arith.constant 1 : index
    %134 = memref.load %arg5[%c1_52, %c1_53] : memref<3x2xf32, #tpu.memory_space<smem>>
    %cst_54 = arith.constant dense<0.000000e+00> : vector<8xf32>
    %135 = vector.multi_reduction <add>, %132, %cst_54 [1] : vector<8x32xf32> to vector<8xf32>
    %136 = vector.shape_cast %135 : vector<8xf32> to vector<8x1xf32>
    %cst_55 = arith.constant 3.200000e+01 : f32
    %137 = vector.broadcast %cst_55 : f32 to vector<8x1xf32>
    %138 = arith.divf %136, %137 : vector<8x1xf32>
    %139 = vector.broadcast %138 : vector<8x1xf32> to vector<8x32xf32>
    %140 = arith.subf %132, %139 : vector<8x32xf32>
    %141 = arith.mulf %140, %140 : vector<8x32xf32>
    %cst_56 = arith.constant dense<0.000000e+00> : vector<8xf32>
    %142 = vector.multi_reduction <add>, %141, %cst_56 [1] : vector<8x32xf32> to vector<8xf32>
    %143 = vector.shape_cast %142 : vector<8xf32> to vector<8x1xf32>
    %cst_57 = arith.constant 0.0322580636 : f32
    %144 = vector.broadcast %cst_57 : f32 to vector<8x1xf32>
    %145 = arith.mulf %143, %144 : vector<8x1xf32>
    %146 = math.sqrt %145 : vector<8x1xf32>
    %cst_58 = arith.constant 9.99999997E-7 : f32
    %147 = vector.broadcast %cst_58 : f32 to vector<8x1xf32>
    %148 = arith.addf %146, %147 : vector<8x1xf32>
    %149 = tpu.reciprocal %148 : vector<8x1xf32> -> vector<8x1xf32>
    %150 = vector.broadcast %133 : f32 to vector<8x32xf32>
    %151 = arith.mulf %150, %140 : vector<8x32xf32>
    %152 = vector.broadcast %149 : vector<8x1xf32> to vector<8x32xf32>
    %153 = arith.mulf %151, %152 : vector<8x32xf32>
    %154 = vector.broadcast %134 : f32 to vector<8x32xf32>
    %155 = arith.addf %153, %154 : vector<8x32xf32>
    %156 = arith.truncf %155 : vector<8x32xf32> to vector<8x32xbf16>
    %c0_59 = arith.constant 0 : index
    %c0_60 = arith.constant 0 : index
    %157 = vector.load %arg10[%c0_59, %c0_60] : memref<32x32xbf16, #tpu.memory_space<vmem>>, vector<32x32xbf16>
    %cst_61 = arith.constant dense<0.000000e+00> : vector<8x32xf32>
    %158 = tpu.matmul %156, %157, %cst_61 {dimension_numbers = #tpu.dot_dimension_numbers<[1], [0], [0], [1], [0, 0, 1, 1], [], []>} : vector<8x32xbf16>, vector<32x32xbf16>, vector<8x32xf32> -> vector<8x32xf32>
    %c0_62 = arith.constant 0 : index
    %c0_63 = arith.constant 0 : index
    %159 = vector.load %arg11[%c0_62, %c0_63] : memref<1x32xf32, #tpu.memory_space<vmem>>, vector<1x32xf32>
    %160 = vector.broadcast %159 : vector<1x32xf32> to vector<8x32xf32>
    %161 = arith.addf %158, %160 : vector<8x32xf32>
    %162 = arith.truncf %3 : vector<8x32xf32> to vector<8x32xbf16>
    %c0_64 = arith.constant 0 : index
    %c0_65 = arith.constant 0 : index
    %163 = vector.load %arg12[%c0_64, %c0_65] : memref<32x64xbf16, #tpu.memory_space<vmem>>, vector<32x64xbf16>
    %cst_66 = arith.constant dense<0.000000e+00> : vector<8x64xf32>
    %164 = tpu.matmul %162, %163, %cst_66 {dimension_numbers = #tpu.dot_dimension_numbers<[1], [0], [0], [1], [0, 0, 1, 1], [], []>} : vector<8x32xbf16>, vector<32x64xbf16>, vector<8x64xf32> -> vector<8x64xf32>
    %c0_67 = arith.constant 0 : index
    %c0_68 = arith.constant 0 : index
    %165 = vector.load %arg13[%c0_67, %c0_68] : memref<1x64xf32, #tpu.memory_space<vmem>>, vector<1x64xf32>
    %166 = vector.broadcast %165 : vector<1x64xf32> to vector<8x64xf32>
    %167 = arith.addf %164, %166 : vector<8x64xf32>
    %168 = vector.extract_strided_slice %167 {offsets = [0, 0], sizes = [8, 32], strides = [1, 1]} : vector<8x64xf32> to vector<8x32xf32>
    %169 = vector.extract_strided_slice %167 {offsets = [0, 32], sizes = [8, 32], strides = [1, 1]} : vector<8x64xf32> to vector<8x32xf32>
    %c0_69 = arith.constant 0 : index
    %c0_70 = arith.constant 0 : index
    %c0_71 = arith.constant 0 : index
    %c0_72 = arith.constant 0 : index
    %170 = vector.load %arg4[%c0_69, %c0_70, %c0_71, %c0_72] : memref<1x1x1x8xbf16, #tpu.memory_space<vmem>>, vector<1x1x1x8xbf16>
    %171 = vector.shape_cast %170 : vector<1x1x1x8xbf16> to vector<1x8xbf16>
    %c0_73 = arith.constant 0 : index
    %c0_74 = arith.constant 0 : index
    %172 = vector.load %arg14[%c0_73, %c0_74] : memref<32x32xbf16, #tpu.memory_space<vmem>>, vector<32x32xbf16>
    %cst_75 = arith.constant 0.353553385 : f32
    %173 = vector.broadcast %cst_75 : f32 to vector<8x32xf32>
    %174 = arith.mulf %161, %173 : vector<8x32xf32>
    %175 = arith.extf %171 : vector<1x8xbf16> to vector<1x8xf32>
    %176 = vector.shape_cast %175 : vector<1x8xf32> to vector<1x8xf32>
    %177 = vector.broadcast %176 : vector<1x8xf32> to vector<8x8xf32>
    %178 = vector.extract_strided_slice %174 {offsets = [0, 0], sizes = [8, 8], strides = [1, 1]} : vector<8x32xf32> to vector<8x8xf32>
    %179 = arith.truncf %178 : vector<8x8xf32> to vector<8x8xbf16>
    %180 = vector.extract_strided_slice %168 {offsets = [0, 0], sizes = [8, 8], strides = [1, 1]} : vector<8x32xf32> to vector<8x8xf32>
    %181 = arith.truncf %180 : vector<8x8xf32> to vector<8x8xbf16>
    %182 = vector.extract_strided_slice %169 {offsets = [0, 0], sizes = [8, 8], strides = [1, 1]} : vector<8x32xf32> to vector<8x8xf32>
    %183 = arith.truncf %182 : vector<8x8xf32> to vector<8x8xbf16>
    "tpu.trace_start"() <{level = 10 : i32, message = "qd,kd->qk"}> : () -> ()
    %cst_76 = arith.constant dense<0.000000e+00> : vector<8x8xf32>
    %184 = tpu.matmul %179, %181, %cst_76 {dimension_numbers = #tpu.dot_dimension_numbers<[1], [1], [0], [0], [0, 0, 1, 0], [], []>} : vector<8x8xbf16>, vector<8x8xbf16>, vector<8x8xf32> -> vector<8x8xf32>
    "tpu.trace_stop"() : () -> ()
    %185 = arith.addf %184, %177 : vector<8x8xf32>
    %cst_77 = arith.constant dense<0xFF800000> : vector<8xf32>
    %186 = vector.multi_reduction <maximumf>, %185, %cst_77 [1] : vector<8x8xf32> to vector<8xf32>
    %187 = vector.shape_cast %186 : vector<8xf32> to vector<8x1xf32>
    %188 = vector.broadcast %187 : vector<8x1xf32> to vector<8x8xf32>
    %189 = arith.subf %185, %188 : vector<8x8xf32>
    %190 = math.exp %189 : vector<8x8xf32>
    %cst_78 = arith.constant dense<0.000000e+00> : vector<8xf32>
    %191 = vector.multi_reduction <add>, %190, %cst_78 [1] : vector<8x8xf32> to vector<8xf32>
    %192 = vector.shape_cast %191 : vector<8xf32> to vector<8x1xf32>
    %193 = tpu.reciprocal %192 {approx = true} : vector<8x1xf32> -> vector<8x1xf32>
    %194 = vector.broadcast %193 : vector<8x1xf32> to vector<8x8xf32>
    %195 = arith.mulf %190, %194 : vector<8x8xf32>
    %196 = arith.truncf %195 : vector<8x8xf32> to vector<8x8xbf16>
    %cst_79 = arith.constant dense<0.000000e+00> : vector<8x8xf32>
    %197 = tpu.matmul %196, %183, %cst_79 {dimension_numbers = #tpu.dot_dimension_numbers<[1], [0], [0], [1], [0, 0, 1, 1], [], []>} : vector<8x8xbf16>, vector<8x8xbf16>, vector<8x8xf32> -> vector<8x8xf32>
    %c0_80 = arith.constant 0 : index
    %c0_81 = arith.constant 0 : index
    %198 = vector.load %arg21[%c0_80, %c0_81] : memref<8x32xf32, #tpu.memory_space<vmem>>, vector<8x8xf32>
    tpu.vector_store %arg21[%c0_80, %c0_81], %197 {strides = array<i32>} : memref<8x32xf32, #tpu.memory_space<vmem>>, vector<8x8xf32>,
    %199 = vector.extract_strided_slice %174 {offsets = [0, 8], sizes = [8, 8], strides = [1, 1]} : vector<8x32xf32> to vector<8x8xf32>
    %200 = arith.truncf %199 : vector<8x8xf32> to vector<8x8xbf16>
    %201 = vector.extract_strided_slice %168 {offsets = [0, 8], sizes = [8, 8], strides = [1, 1]} : vector<8x32xf32> to vector<8x8xf32>
    %202 = arith.truncf %201 : vector<8x8xf32> to vector<8x8xbf16>
    %203 = vector.extract_strided_slice %169 {offsets = [0, 8], sizes = [8, 8], strides = [1, 1]} : vector<8x32xf32> to vector<8x8xf32>
    %204 = arith.truncf %203 : vector<8x8xf32> to vector<8x8xbf16>
    "tpu.trace_start"() <{level = 10 : i32, message = "qd,kd->qk"}> : () -> ()
    %cst_82 = arith.constant dense<0.000000e+00> : vector<8x8xf32>
    %205 = tpu.matmul %200, %202, %cst_82 {dimension_numbers = #tpu.dot_dimension_numbers<[1], [1], [0], [0], [0, 0, 1, 0], [], []>} : vector<8x8xbf16>, vector<8x8xbf16>, vector<8x8xf32> -> vector<8x8xf32>
    "tpu.trace_stop"() : () -> ()
    %206 = arith.addf %205, %177 : vector<8x8xf32>
    %cst_83 = arith.constant dense<0xFF800000> : vector<8xf32>
    %207 = vector.multi_reduction <maximumf>, %206, %cst_83 [1] : vector<8x8xf32> to vector<8xf32>
    %208 = vector.shape_cast %207 : vector<8xf32> to vector<8x1xf32>
    %209 = vector.broadcast %208 : vector<8x1xf32> to vector<8x8xf32>
    %210 = arith.subf %206, %209 : vector<8x8xf32>
    %211 = math.exp %210 : vector<8x8xf32>
    %cst_84 = arith.constant dense<0.000000e+00> : vector<8xf32>
    %212 = vector.multi_reduction <add>, %211, %cst_84 [1] : vector<8x8xf32> to vector<8xf32>
    %213 = vector.shape_cast %212 : vector<8xf32> to vector<8x1xf32>
    %214 = tpu.reciprocal %213 {approx = true} : vector<8x1xf32> -> vector<8x1xf32>
    %215 = vector.broadcast %214 : vector<8x1xf32> to vector<8x8xf32>
    %216 = arith.mulf %211, %215 : vector<8x8xf32>
    %217 = arith.truncf %216 : vector<8x8xf32> to vector<8x8xbf16>
    %cst_85 = arith.constant dense<0.000000e+00> : vector<8x8xf32>
    %218 = tpu.matmul %217, %204, %cst_85 {dimension_numbers = #tpu.dot_dimension_numbers<[1], [0], [0], [1], [0, 0, 1, 1], [], []>} : vector<8x8xbf16>, vector<8x8xbf16>, vector<8x8xf32> -> vector<8x8xf32>
    %c0_86 = arith.constant 0 : index
    %c8_87 = arith.constant 8 : index
    %219 = vector.load %arg21[%c0_86, %c8_87] : memref<8x32xf32, #tpu.memory_space<vmem>>, vector<8x8xf32>
    tpu.vector_store %arg21[%c0_86, %c8_87], %218 {strides = array<i32>} : memref<8x32xf32, #tpu.memory_space<vmem>>, vector<8x8xf32>,
    %220 = vector.extract_strided_slice %174 {offsets = [0, 16], sizes = [8, 8], strides = [1, 1]} : vector<8x32xf32> to vector<8x8xf32>
    %221 = arith.truncf %220 : vector<8x8xf32> to vector<8x8xbf16>
    %222 = vector.extract_strided_slice %168 {offsets = [0, 16], sizes = [8, 8], strides = [1, 1]} : vector<8x32xf32> to vector<8x8xf32>
    %223 = arith.truncf %222 : vector<8x8xf32> to vector<8x8xbf16>
    %224 = vector.extract_strided_slice %169 {offsets = [0, 16], sizes = [8, 8], strides = [1, 1]} : vector<8x32xf32> to vector<8x8xf32>
    %225 = arith.truncf %224 : vector<8x8xf32> to vector<8x8xbf16>
    "tpu.trace_start"() <{level = 10 : i32, message = "qd,kd->qk"}> : () -> ()
    %cst_88 = arith.constant dense<0.000000e+00> : vector<8x8xf32>
    %226 = tpu.matmul %221, %223, %cst_88 {dimension_numbers = #tpu.dot_dimension_numbers<[1], [1], [0], [0], [0, 0, 1, 0], [], []>} : vector<8x8xbf16>, vector<8x8xbf16>, vector<8x8xf32> -> vector<8x8xf32>
    "tpu.trace_stop"() : () -> ()
    %227 = arith.addf %226, %177 : vector<8x8xf32>
    %cst_89 = arith.constant dense<0xFF800000> : vector<8xf32>
    %228 = vector.multi_reduction <maximumf>, %227, %cst_89 [1] : vector<8x8xf32> to vector<8xf32>
    %229 = vector.shape_cast %228 : vector<8xf32> to vector<8x1xf32>
    %230 = vector.broadcast %229 : vector<8x1xf32> to vector<8x8xf32>
    %231 = arith.subf %227, %230 : vector<8x8xf32>
    %232 = math.exp %231 : vector<8x8xf32>
    %cst_90 = arith.constant dense<0.000000e+00> : vector<8xf32>
    %233 = vector.multi_reduction <add>, %232, %cst_90 [1] : vector<8x8xf32> to vector<8xf32>
    %234 = vector.shape_cast %233 : vector<8xf32> to vector<8x1xf32>
    %235 = tpu.reciprocal %234 {approx = true} : vector<8x1xf32> -> vector<8x1xf32>
    %236 = vector.broadcast %235 : vector<8x1xf32> to vector<8x8xf32>
    %237 = arith.mulf %232, %236 : vector<8x8xf32>
    %238 = arith.truncf %237 : vector<8x8xf32> to vector<8x8xbf16>
    %cst_91 = arith.constant dense<0.000000e+00> : vector<8x8xf32>
    %239 = tpu.matmul %238, %225, %cst_91 {dimension_numbers = #tpu.dot_dimension_numbers<[1], [0], [0], [1], [0, 0, 1, 1], [], []>} : vector<8x8xbf16>, vector<8x8xbf16>, vector<8x8xf32> -> vector<8x8xf32>
    %c0_92 = arith.constant 0 : index
    %c16_93 = arith.constant 16 : index
    %240 = vector.load %arg21[%c0_92, %c16_93] : memref<8x32xf32, #tpu.memory_space<vmem>>, vector<8x8xf32>
    tpu.vector_store %arg21[%c0_92, %c16_93], %239 {strides = array<i32>} : memref<8x32xf32, #tpu.memory_space<vmem>>, vector<8x8xf32>,
    %241 = vector.extract_strided_slice %174 {offsets = [0, 24], sizes = [8, 8], strides = [1, 1]} : vector<8x32xf32> to vector<8x8xf32>
    %242 = arith.truncf %241 : vector<8x8xf32> to vector<8x8xbf16>
    %243 = vector.extract_strided_slice %168 {offsets = [0, 24], sizes = [8, 8], strides = [1, 1]} : vector<8x32xf32> to vector<8x8xf32>
    %244 = arith.truncf %243 : vector<8x8xf32> to vector<8x8xbf16>
    %245 = vector.extract_strided_slice %169 {offsets = [0, 24], sizes = [8, 8], strides = [1, 1]} : vector<8x32xf32> to vector<8x8xf32>
    %246 = arith.truncf %245 : vector<8x8xf32> to vector<8x8xbf16>
    "tpu.trace_start"() <{level = 10 : i32, message = "qd,kd->qk"}> : () -> ()
    %cst_94 = arith.constant dense<0.000000e+00> : vector<8x8xf32>
    %247 = tpu.matmul %242, %244, %cst_94 {dimension_numbers = #tpu.dot_dimension_numbers<[1], [1], [0], [0], [0, 0, 1, 0], [], []>} : vector<8x8xbf16>, vector<8x8xbf16>, vector<8x8xf32> -> vector<8x8xf32>
    "tpu.trace_stop"() : () -> ()
    %248 = arith.addf %247, %177 : vector<8x8xf32>
    %cst_95 = arith.constant dense<0xFF800000> : vector<8xf32>
    %249 = vector.multi_reduction <maximumf>, %248, %cst_95 [1] : vector<8x8xf32> to vector<8xf32>
    %250 = vector.shape_cast %249 : vector<8xf32> to vector<8x1xf32>
    %251 = vector.broadcast %250 : vector<8x1xf32> to vector<8x8xf32>
    %252 = arith.subf %248, %251 : vector<8x8xf32>
    %253 = math.exp %252 : vector<8x8xf32>
    %cst_96 = arith.constant dense<0.000000e+00> : vector<8xf32>
    %254 = vector.multi_reduction <add>, %253, %cst_96 [1] : vector<8x8xf32> to vector<8xf32>
    %255 = vector.shape_cast %254 : vector<8xf32> to vector<8x1xf32>
    %256 = tpu.reciprocal %255 {approx = true} : vector<8x1xf32> -> vector<8x1xf32>
    %257 = vector.broadcast %256 : vector<8x1xf32> to vector<8x8xf32>
    %258 = arith.mulf %253, %257 : vector<8x8xf32>
    %259 = arith.truncf %258 : vector<8x8xf32> to vector<8x8xbf16>
    %cst_97 = arith.constant dense<0.000000e+00> : vector<8x8xf32>
    %260 = tpu.matmul %259, %246, %cst_97 {dimension_numbers = #tpu.dot_dimension_numbers<[1], [0], [0], [1], [0, 0, 1, 1], [], []>} : vector<8x8xbf16>, vector<8x8xbf16>, vector<8x8xf32> -> vector<8x8xf32>
    %c0_98 = arith.constant 0 : index
    %c24_99 = arith.constant 24 : index
    %261 = vector.load %arg21[%c0_98, %c24_99] : memref<8x32xf32, #tpu.memory_space<vmem>>, vector<8x8xf32>
    tpu.vector_store %arg21[%c0_98, %c24_99], %260 {strides = array<i32>} : memref<8x32xf32, #tpu.memory_space<vmem>>, vector<8x8xf32>,
    %c0_100 = arith.constant 0 : index
    %c0_101 = arith.constant 0 : index
    %262 = vector.load %arg21[%c0_100, %c0_101] : memref<8x32xf32, #tpu.memory_space<vmem>>, vector<8x32xf32>
    %263 = arith.truncf %262 : vector<8x32xf32> to vector<8x32xbf16>
    %cst_102 = arith.constant dense<0.000000e+00> : vector<8x32xf32>
    %264 = tpu.matmul %263, %172, %cst_102 {dimension_numbers = #tpu.dot_dimension_numbers<[1], [0], [0], [1], [0, 0, 1, 1], [], []>} : vector<8x32xbf16>, vector<32x32xbf16>, vector<8x32xf32> -> vector<8x32xf32>
    %265 = arith.addf %132, %264 : vector<8x32xf32>
    %c0_103 = arith.constant 0 : index
    %c0_104 = arith.constant 0 : index
    %266 = vector.load %arg15[%c0_103, %c0_104] : memref<1x32xf32, #tpu.memory_space<vmem>>, vector<1x32xf32>
    %267 = vector.broadcast %266 : vector<1x32xf32> to vector<8x32xf32>
    %268 = arith.addf %265, %267 : vector<8x32xf32>
    %c2 = arith.constant 2 : index
    %c0_105 = arith.constant 0 : index
    %269 = memref.load %arg5[%c2, %c0_105] : memref<3x2xf32, #tpu.memory_space<smem>>
    %c2_106 = arith.constant 2 : index
    %c1_107 = arith.constant 1 : index
    %270 = memref.load %arg5[%c2_106, %c1_107] : memref<3x2xf32, #tpu.memory_space<smem>>
    %cst_108 = arith.constant dense<0.000000e+00> : vector<8xf32>
    %271 = vector.multi_reduction <add>, %268, %cst_108 [1] : vector<8x32xf32> to vector<8xf32>
    %272 = vector.shape_cast %271 : vector<8xf32> to vector<8x1xf32>
    %cst_109 = arith.constant 3.200000e+01 : f32
    %273 = vector.broadcast %cst_109 : f32 to vector<8x1xf32>
    %274 = arith.divf %272, %273 : vector<8x1xf32>
    %275 = vector.broadcast %274 : vector<8x1xf32> to vector<8x32xf32>
    %276 = arith.subf %268, %275 : vector<8x32xf32>
    %277 = arith.mulf %276, %276 : vector<8x32xf32>
    %cst_110 = arith.constant dense<0.000000e+00> : vector<8xf32>
    %278 = vector.multi_reduction <add>, %277, %cst_110 [1] : vector<8x32xf32> to vector<8xf32>
    %279 = vector.shape_cast %278 : vector<8xf32> to vector<8x1xf32>
    %cst_111 = arith.constant 0.0322580636 : f32
    %280 = vector.broadcast %cst_111 : f32 to vector<8x1xf32>
    %281 = arith.mulf %279, %280 : vector<8x1xf32>
    %282 = math.sqrt %281 : vector<8x1xf32>
    %cst_112 = arith.constant 9.99999997E-7 : f32
    %283 = vector.broadcast %cst_112 : f32 to vector<8x1xf32>
    %284 = arith.addf %282, %283 : vector<8x1xf32>
    %285 = tpu.reciprocal %284 : vector<8x1xf32> -> vector<8x1xf32>
    %286 = vector.broadcast %269 : f32 to vector<8x32xf32>
    %287 = arith.mulf %286, %276 : vector<8x32xf32>
    %288 = vector.broadcast %285 : vector<8x1xf32> to vector<8x32xf32>
    %289 = arith.mulf %287, %288 : vector<8x32xf32>
    %290 = vector.broadcast %270 : f32 to vector<8x32xf32>
    %291 = arith.addf %289, %290 : vector<8x32xf32>
    %292 = arith.truncf %291 : vector<8x32xf32> to vector<8x32xbf16>
    %c0_113 = arith.constant 0 : index
    %c0_114 = arith.constant 0 : index
    %293 = vector.load %arg16[%c0_113, %c0_114] : memref<32x64xbf16, #tpu.memory_space<vmem>>, vector<32x64xbf16>
    %cst_115 = arith.constant dense<0.000000e+00> : vector<8x64xf32>
    %294 = tpu.matmul %292, %293, %cst_115 {dimension_numbers = #tpu.dot_dimension_numbers<[1], [0], [0], [1], [0, 0, 1, 1], [], []>} : vector<8x32xbf16>, vector<32x64xbf16>, vector<8x64xf32> -> vector<8x64xf32>
    %c0_116 = arith.constant 0 : index
    %c0_117 = arith.constant 0 : index
    %295 = vector.load %arg17[%c0_116, %c0_117] : memref<1x64xf32, #tpu.memory_space<vmem>>, vector<1x64xf32>
    %296 = vector.broadcast %295 : vector<1x64xf32> to vector<8x64xf32>
    %297 = arith.addf %294, %296 : vector<8x64xf32>
    %cst_118 = arith.constant 0.000000e+00 : f32
    %298 = vector.broadcast %cst_118 : f32 to vector<8x64xf32>
    %299 = arith.maximumf %297, %298 : vector<8x64xf32>
    %300 = arith.truncf %299 : vector<8x64xf32> to vector<8x64xbf16>
    %c0_119 = arith.constant 0 : index
    %c0_120 = arith.constant 0 : index
    %301 = vector.load %arg18[%c0_119, %c0_120] : memref<64x32xbf16, #tpu.memory_space<vmem>>, vector<64x32xbf16>
    %cst_121 = arith.constant dense<0.000000e+00> : vector<8x32xf32>
    %302 = tpu.matmul %300, %301, %cst_121 {dimension_numbers = #tpu.dot_dimension_numbers<[1], [0], [0], [1], [0, 0, 1, 1], [], []>} : vector<8x64xbf16>, vector<64x32xbf16>, vector<8x32xf32> -> vector<8x32xf32>
    %c0_122 = arith.constant 0 : index
    %c0_123 = arith.constant 0 : index
    %303 = vector.load %arg19[%c0_122, %c0_123] : memref<1x32xf32, #tpu.memory_space<vmem>>, vector<1x32xf32>
    %304 = vector.broadcast %303 : vector<1x32xf32> to vector<8x32xf32>
    %305 = arith.addf %302, %304 : vector<8x32xf32>
    %306 = arith.addf %268, %305 : vector<8x32xf32>
    %c0_124 = arith.constant 0 : index
    %c0_125 = arith.constant 0 : index
    %c0_126 = arith.constant 0 : index
    %307 = vector.load %arg20[%c0_124, %c0_125, %c0_126] : memref<1x8x32xf32, #tpu.memory_space<vmem>>, vector<1x8x32xf32>
    %308 = vector.shape_cast %307 : vector<1x8x32xf32> to vector<8x32xf32>
    %309 = vector.shape_cast %306 : vector<8x32xf32> to vector<1x8x32xf32>
    tpu.vector_store %arg20[%c0_124, %c0_125, %c0_126], %309 {strides = array<i32>} : memref<1x8x32xf32, #tpu.memory_space<vmem>>, vector<1x8x32xf32>,
    return
  }
  func.func @transform_0(%arg0: i32) -> (i32, i32, i32) {
    %c0_i32 = arith.constant 0 : i32
    %c0_i32_0 = arith.constant 0 : i32
    %c0_i32_1 = arith.constant 0 : i32
    return %arg0, %c0_i32, %c0_i32_0 : i32, i32, i32
  }
  func.func @transform_1(%arg0: i32) -> (i32, i32, i32) {
    %c0_i32 = arith.constant 0 : i32
    %c0_i32_0 = arith.constant 0 : i32
    %c0_i32_1 = arith.constant 0 : i32
    return %arg0, %c0_i32, %c0_i32_0 : i32, i32, i32
  }
  func.func @transform_2(%arg0: i32) -> (i32, i32, i32, i32) {
    %c0_i32 = arith.constant 0 : i32
    %c0_i32_0 = arith.constant 0 : i32
    %c0_i32_1 = arith.constant 0 : i32
    %c0_i32_2 = arith.constant 0 : i32
    return %arg0, %c0_i32, %c0_i32_0, %c0_i32_1 : i32, i32, i32, i32
  }
  func.func @transform_3(%arg0: i32) -> (i32, i32, i32, i32) {
    %c0_i32 = arith.constant 0 : i32
    %c0_i32_0 = arith.constant 0 : i32
    %c0_i32_1 = arith.constant 0 : i32
    %c0_i32_2 = arith.constant 0 : i32
    return %arg0, %c0_i32, %c0_i32_0, %c0_i32_1 : i32, i32, i32, i32
  }
  func.func @transform_4(%arg0: i32) -> (i32, i32) {
    %c0_i32 = arith.constant 0 : i32
    %c0_i32_0 = arith.constant 0 : i32
    %c0_i32_1 = arith.constant 0 : i32
    return %c0_i32, %c0_i32_0 : i32, i32
  }
  func.func @transform_5(%arg0: i32) -> (i32, i32) {
    %c0_i32 = arith.constant 0 : i32
    %c0_i32_0 = arith.constant 0 : i32
    %c0_i32_1 = arith.constant 0 : i32
    return %c0_i32, %c0_i32_0 : i32, i32
  }
  func.func @transform_6(%arg0: i32) -> (i32, i32) {
    %c0_i32 = arith.constant 0 : i32
    %c0_i32_0 = arith.constant 0 : i32
    %c0_i32_1 = arith.constant 0 : i32
    return %c0_i32, %c0_i32_0 : i32, i32
  }
  func.func @transform_7(%arg0: i32) -> (i32, i32) {
    %c0_i32 = arith.constant 0 : i32
    %c0_i32_0 = arith.constant 0 : i32
    %c0_i32_1 = arith.constant 0 : i32
    return %c0_i32, %c0_i32_0 : i32, i32
  }
  func.func @transform_8(%arg0: i32) -> (i32, i32) {
    %c0_i32 = arith.constant 0 : i32
    %c0_i32_0 = arith.constant 0 : i32
    %c0_i32_1 = arith.constant 0 : i32
    return %c0_i32, %c0_i32_0 : i32, i32
  }
  func.func @transform_9(%arg0: i32) -> (i32, i32) {
    %c0_i32 = arith.constant 0 : i32
    %c0_i32_0 = arith.constant 0 : i32
    %c0_i32_1 = arith.constant 0 : i32
    return %c0_i32, %c0_i32_0 : i32, i32
  }
  func.func @transform_10(%arg0: i32) -> (i32, i32) {
    %c0_i32 = arith.constant 0 : i32
    %c0_i32_0 = arith.constant 0 : i32
    %c0_i32_1 = arith.constant 0 : i32
    return %c0_i32, %c0_i32_0 : i32, i32
  }
  func.func @transform_11(%arg0: i32) -> (i32, i32) {
    %c0_i32 = arith.constant 0 : i32
    %c0_i32_0 = arith.constant 0 : i32
    %c0_i32_1 = arith.constant 0 : i32
    return %c0_i32, %c0_i32_0 : i32, i32
  }
  func.func @transform_12(%arg0: i32) -> (i32, i32) {
    %c0_i32 = arith.constant 0 : i32
    %c0_i32_0 = arith.constant 0 : i32
    %c0_i32_1 = arith.constant 0 : i32
    return %c0_i32, %c0_i32_0 : i32, i32
  }
  func.func @transform_13(%arg0: i32) -> (i32, i32) {
    %c0_i32 = arith.constant 0 : i32
    %c0_i32_0 = arith.constant 0 : i32
    %c0_i32_1 = arith.constant 0 : i32
    return %c0_i32, %c0_i32_0 : i32, i32
  }
  func.func @transform_14(%arg0: i32) -> (i32, i32) {
    %c0_i32 = arith.constant 0 : i32
    %c0_i32_0 = arith.constant 0 : i32
    %c0_i32_1 = arith.constant 0 : i32
    return %c0_i32, %c0_i32_0 : i32, i32
  }
  func.func @transform_15(%arg0: i32) -> (i32, i32) {
    %c0_i32 = arith.constant 0 : i32
    %c0_i32_0 = arith.constant 0 : i32
    %c0_i32_1 = arith.constant 0 : i32
    return %c0_i32, %c0_i32_0 : i32, i32
  }
  func.func @transform_16(%arg0: i32) -> (i32, i32) {
    %c0_i32 = arith.constant 0 : i32
    %c0_i32_0 = arith.constant 0 : i32
    %c0_i32_1 = arith.constant 0 : i32
    return %c0_i32, %c0_i32_0 : i32, i32
  }
  func.func @transform_17(%arg0: i32) -> (i32, i32) {
    %c0_i32 = arith.constant 0 : i32
    %c0_i32_0 = arith.constant 0 : i32
    %c0_i32_1 = arith.constant 0 : i32
    return %c0_i32, %c0_i32_0 : i32, i32
  }
  func.func @transform_18(%arg0: i32) -> (i32, i32) {
    %c0_i32 = arith.constant 0 : i32
    %c0_i32_0 = arith.constant 0 : i32
    %c0_i32_1 = arith.constant 0 : i32
    return %c0_i32, %c0_i32_0 : i32, i32
  }
  func.func @transform_19(%arg0: i32) -> (i32, i32, i32) {
    %c0_i32 = arith.constant 0 : i32
    %c0_i32_0 = arith.constant 0 : i32
    %c0_i32_1 = arith.constant 0 : i32
    return %arg0, %c0_i32, %c0_i32_0 : i32, i32, i32
  }
}

module attributes {stable_mosaic.version = 11 : i64} {
  func.func @_layernorm_kernel(%arg0: i32, %arg1: memref<16x32xf32, #tpu.memory_space<vmem>>, %arg2: memref<1x2xf32, #tpu.memory_space<smem>>, %arg3: memref<16x32xf32, #tpu.memory_space<vmem>>) attributes {dimension_semantics = [#tpu.dimension_semantics<parallel>], iteration_bounds = array<i64: 1>, scalar_prefetch = 0 : i64, scratch_operands = 0 : i64, tpu.core_type = #tpu.core_type<tc>, window_params = [{transform_indices = @transform_0, window_bounds = array<i64: 16, 32>}, {transform_indices = @transform_1, window_bounds = array<i64: 1, 2>}, {transform_indices = @transform_2, window_bounds = array<i64: 16, 32>}]} {
    %c0 = arith.constant 0 : index
    %c0_0 = arith.constant 0 : index
    %0 = vector.load %arg1[%c0, %c0_0] : memref<16x32xf32, #tpu.memory_space<vmem>>, vector<16x32xf32>
    %c0_1 = arith.constant 0 : index
    %c0_2 = arith.constant 0 : index
    %1 = memref.load %arg2[%c0_1, %c0_2] : memref<1x2xf32, #tpu.memory_space<smem>>
    %c0_3 = arith.constant 0 : index
    %c1 = arith.constant 1 : index
    %2 = memref.load %arg2[%c0_3, %c1] : memref<1x2xf32, #tpu.memory_space<smem>>
    %cst = arith.constant dense<0.000000e+00> : vector<16xf32>
    %3 = vector.multi_reduction <add>, %0, %cst [1] : vector<16x32xf32> to vector<16xf32>
    %4 = vector.shape_cast %3 : vector<16xf32> to vector<16x1xf32>
    %cst_4 = arith.constant 3.200000e+01 : f32
    %5 = vector.broadcast %cst_4 : f32 to vector<16x1xf32>
    %6 = arith.divf %4, %5 : vector<16x1xf32>
    %7 = vector.broadcast %6 : vector<16x1xf32> to vector<16x32xf32>
    %8 = arith.subf %0, %7 : vector<16x32xf32>
    %9 = arith.mulf %8, %8 : vector<16x32xf32>
    %cst_5 = arith.constant dense<0.000000e+00> : vector<16xf32>
    %10 = vector.multi_reduction <add>, %9, %cst_5 [1] : vector<16x32xf32> to vector<16xf32>
    %11 = vector.shape_cast %10 : vector<16xf32> to vector<16x1xf32>
    %cst_6 = arith.constant 0.0322580636 : f32
    %12 = vector.broadcast %cst_6 : f32 to vector<16x1xf32>
    %13 = arith.mulf %11, %12 : vector<16x1xf32>
    %14 = math.sqrt %13 : vector<16x1xf32>
    %cst_7 = arith.constant 9.99999997E-7 : f32
    %15 = vector.broadcast %cst_7 : f32 to vector<16x1xf32>
    %16 = arith.addf %14, %15 : vector<16x1xf32>
    %17 = tpu.reciprocal %16 : vector<16x1xf32> -> vector<16x1xf32>
    %18 = vector.broadcast %1 : f32 to vector<16x32xf32>
    %19 = arith.mulf %18, %8 : vector<16x32xf32>
    %20 = vector.broadcast %17 : vector<16x1xf32> to vector<16x32xf32>
    %21 = arith.mulf %19, %20 : vector<16x32xf32>
    %22 = vector.broadcast %2 : f32 to vector<16x32xf32>
    %23 = arith.addf %21, %22 : vector<16x32xf32>
    %c0_8 = arith.constant 0 : index
    %c0_9 = arith.constant 0 : index
    %24 = vector.load %arg3[%c0_8, %c0_9] : memref<16x32xf32, #tpu.memory_space<vmem>>, vector<16x32xf32>
    tpu.vector_store %arg3[%c0_8, %c0_9], %23 {strides = array<i32>} : memref<16x32xf32, #tpu.memory_space<vmem>>, vector<16x32xf32>,
    return
  }
  func.func @transform_0(%arg0: i32) -> (i32, i32) {
    %c0_i32 = arith.constant 0 : i32
    %c0_i32_0 = arith.constant 0 : i32
    return %arg0, %c0_i32 : i32, i32
  }
  func.func @transform_1(%arg0: i32) -> (i32, i32) {
    %c0_i32 = arith.constant 0 : i32
    %c0_i32_0 = arith.constant 0 : i32
    %c0_i32_1 = arith.constant 0 : i32
    return %c0_i32, %c0_i32_0 : i32, i32
  }
  func.func @transform_2(%arg0: i32) -> (i32, i32) {
    %c0_i32 = arith.constant 0 : i32
    %c0_i32_0 = arith.constant 0 : i32
    return %arg0, %c0_i32 : i32, i32
  }
}

</mosaic_0001>

<bundles_post_ra>
// kernel: _lambda_.5
= control target key start
LH: loop header
LB: loop body
LE: loop exit
PB: predicated region body
PF: predicated region fallthrough
CT: control target
= control target key end

     0   :  { %7 = vsyncpa [#allocation4], 0  ;;  %s245_s0 = inlined_call_operand.vmem [shape: f32[16,32], index: 0, kind: input, shape index: {}]   ;;  %s246_s1 = inlined_call_operand.vmem [shape: f32[1,2], index: 1, kind: input, shape index: {}]   ;;  %s247_s2 = inlined_call_operand.hbm [shape: f32[16,32], index: 2, kind: output, shape index: {}]  }
   0x1   :  { %8 = vsyncpa [#allocation3], 0  ;;  %s16_s11 = sshll.u32 %s246_s1, 4  ;;  %s196_s12 = smov [#allocation2]   ;;  %s17_s11 = int_to_ptr.vmem [resolvable:$true] %s16_s11 }
   0x2   :  { %19 = dma.vmem_to_smem %s17_s11, 16, %s196_s12, [#allocation4]  }
   0x3   :  { %192 = dma.done.wait [#allocation4], 16  }
   0x4   :  { %193 = vsyncadd [#allocation4], 4294967280 }
   0x5   :  { %24 = sfence }
   0x6   :  { %v25_v0 = vld [vmem:[%s245_s0] sm:$0xff]  ;;  %vm29_vm0 = vcmask 261120   ;;  %v26_v2 = vld [vmem:[%s245_s0 + $0x8] sm:$0xff]  ;;  %v197_v4 = vmov 32.0   ;;  %s233_s0 = sld [smem:[#allocation2]]  ;;  %s198_s17 = smov [#allocation5]  }
   0x7   :  { %v30_v1 = vsel %vm29_vm0, %v25_v0, 0.0  ;;  %v33_v3 = vsel %vm29_vm0, %v26_v2, 0.0  ;;  %146 = vrcp.f32 %v197_v4  ;;  %s235_s1 = sld [smem:[#allocation2 + $0x1]]  ;;  %s125_s18 = sshll.u32 %s198_s17, 4  ;;  %s126_s18 = int_to_ptr.vmem [resolvable:$true] %s125_s18 }
   0x8   :  { %31 = vadd.xlane.f32.xlu0 %v30_v1  ;;  %s127_s21 = sshll.u32 %s247_s2, 4  ;;  %s199_s22 = smov 128   ;;  %s128_s21 = int_to_ptr.hbm [resolvable:$true] %s127_s21 }
   0x9   :  { %s200_s23 = smov 8  }
   0xc   :  { %v111_v53 = vstv %s233_s0 }
   0xd   :  { %v147_v5 = vpop.eup %146  ;;  %v116_v61 = vstv %s235_s1 }
   0xe   :  { %v37_v6 = vmul.f32 32.0, %v147_v5  ;;  %vm41_vm1 = vweird.f32 %v147_v5 }
  0x10   :  { %34 = vadd.xlane.f32.xlu0 %v33_v3  ;;  %v38_v7 = vsub.f32 1.0, %v37_v6 }
  0x12   :  { %v39_v8 = vmul.f32 %v147_v5, %v38_v7 }
  0x14   :  { %v40_v9 = vadd.f32 %v147_v5, %v39_v8 }
  0x16   :  { %v42_v10 = vsel %vm41_vm1, %v147_v5, %v40_v9 }
  0x7b   :  { %v32_v11 = vpop.xlane.xlu0 %31 }
  0x7c   :  { %v43_v12 = vmul.f32 %v42_v10, %v32_v11 }
  0x7e   :  { %v45_v13 = vsub.f32 %v25_v0, %v43_v12 }
  0x80   :  { %v47_v14 = vmul.f32 %v45_v13, %v45_v13  ;;  %v112_v57 = vmul.f32 %v111_v53, %v45_v13 }
  0x82   :  { %v49_v15 = vsel %vm29_vm0, %v47_v14, 0.0 }
  0x83   :  { %50 = vadd.xlane.f32.xlu1 %v49_v15  ;;  %v35_v16 = vpop.xlane.xlu0 %34 }
  0x84   :  { %v44_v17 = vmul.f32 %v42_v10, %v35_v16 }
  0x86   :  { %v228_v18 = vsub.f32 %v26_v2, %v44_v17 }
  0x88   :  { %v48_v19 = vmul.f32 %v228_v18, %v228_v18  ;;  %v113_v6 = vmul.f32 %v111_v53, %v228_v18 }
  0x8a   :  { %v52_v20 = vsel %vm29_vm0, %v48_v19, 0.0 }
  0x8b   :  { %53 = vadd.xlane.f32.xlu1 %v52_v20 }
  0xf6   :  { %v51_v21 = vpop.xlane.xlu1 %50 }
  0xf7   :  { %v55_v22 = vmul.f32 0.032258064, %v51_v21 }
  0xf9   :  { %148 = vrsqrt.f32 %v55_v22  ;;  %vm64_vm2 = vcmp.eq.f32.partialorder %v55_v22, inf  ;;  %v67_v35 = vand.u32 2147483648, %v55_v22  ;;  %vm66_vm3 = vcmp.eq.f32.partialorder %v55_v22, 0.0 }
  0xfe   :  { %v54_v23 = vpop.xlane.xlu1 %53 }
  0xff   :  { %v149_v24 = vpop.eup %148  ;;  %v56_v25 = vmul.f32 0.032258064, %v54_v23 }
 0x100   :  { %v58_v26 = vmul.f32 %v149_v24, %v55_v22 }
 0x101   :  { %150 = vrsqrt.f32 %v56_v25  ;;  %vm76_vm4 = vcmp.eq.f32.partialorder %v56_v25, inf  ;;  %v79_v43 = vand.u32 2147483648, %v56_v25  ;;  %vm78_vm5 = vcmp.eq.f32.partialorder %v56_v25, 0.0 }
 0x102   :  { %v59_v27 = vmul.f32 %v149_v24, %v58_v26 }
 0x104   :  { %v60_v28 = vmul.f32 0.5, %v59_v27 }
 0x106   :  { %v61_v29 = vsub.f32 1.5, %v60_v28 }
 0x107   :  { %v151_v30 = vpop.eup %150 }
 0x108   :  { %v62_v31 = vmul.f32 %v149_v24, %v61_v29  ;;  %v70_v32 = vmul.f32 %v151_v30, %v56_v25 }
 0x10a   :  { %v63_v33 = vmul.f32 %v62_v31, %v55_v22  ;;  %v71_v34 = vmul.f32 %v151_v30, %v70_v32 }
 0x10c   :  { %v65_v36 = vsel %vm64_vm2, %v55_v22, %v63_v33  ;;  %v72_v37 = vmul.f32 0.5, %v71_v34 }
 0x10d   :  { %v68_v38 = vsel %vm66_vm3, %v67_v35, %v65_v36 }
 0x10e   :  { %v81_v39 = vadd.f32 1e-06, %v68_v38  ;;  %v73_v40 = vsub.f32 1.5, %v72_v37 }
 0x110   :  { %152 = vrcp.f32 %v81_v39  ;;  %v74_v41 = vmul.f32 %v151_v30, %v73_v40  ;;  %v94_v50 = vand.u32 2147483648, %v81_v39  ;;  %v92_v52 = vand.u32 2147483647, %v81_v39 }
 0x111   :  { %vm88_vm7 = vweird.f32 %v81_v39 }
 0x112   :  { %v75_v42 = vmul.f32 %v74_v41, %v56_v25  ;;  %v95_v56 = vor.u32 1.1754944e-38, %v94_v50  ;;  %vm93_vm9 = vcmp.eq.f32.partialorder %v92_v52, 8.507059e+37 }
 0x114   :  { %v77_v44 = vsel %vm76_vm4, %v56_v25, %v75_v42 }
 0x115   :  { %v80_v45 = vsel %vm78_vm5, %v79_v43, %v77_v44 }
 0x116   :  { %v153_v46 = vpop.eup %152  ;;  %v82_v47 = vadd.f32 1e-06, %v80_v45 }
 0x117   :  { %v84_v48 = vmul.f32 %v153_v46, %v81_v39  ;;  %vm89_vm6 = vweird.f32 %v153_v46 }
 0x118   :  { %154 = vrcp.f32 %v82_v47  ;;  %vm90_vm8 = vmor %vm88_vm7, %vm89_vm6  ;;  %v108_v0 = vand.u32 2147483648, %v82_v47  ;;  %v106_v2 = vand.u32 2147483647, %v82_v47  ;;  %vm102_vm11 = vweird.f32 %v82_v47 }
 0x119   :  { %v85_v49 = vsub.f32 1.0, %v84_v48 }
 0x11a   :  { %v109_v5 = vor.u32 1.1754944e-38, %v108_v0  ;;  %vm107_vm13 = vcmp.eq.f32.partialorder %v106_v2, 8.507059e+37 }
 0x11b   :  { %v86_v51 = vmul.f32 %v153_v46, %v85_v49 }
 0x11d   :  { %v87_v54 = vadd.f32 %v153_v46, %v86_v51 }
 0x11e   :  { %v155_v55 = vpop.eup %154 }
 0x11f   :  { %v91_v58 = vsel %vm90_vm8, %v153_v46, %v87_v54  ;;  %v98_v59 = vmul.f32 %v155_v55, %v82_v47  ;;  %vm103_vm10 = vweird.f32 %v155_v55 }
 0x120   :  { %v96_v60 = vsel %vm93_vm9, %v95_v56, %v91_v58  ;;  %vm104_vm12 = vmor %vm102_vm11, %vm103_vm10 }
 0x121   :  { %v99_v62 = vsub.f32 1.0, %v98_v59  ;;  %v114_v63 = vmul.f32 %v112_v57, %v96_v60 }
 0x123   :  { %v100_v1 = vmul.f32 %v155_v55, %v99_v62  ;;  %v117_v3 = vadd.f32 %v116_v61, %v114_v63 }
 0x125   :  { %v101_v4 = vadd.f32 %v155_v55, %v100_v1  ;;  %119 = vst.msk [vmem:[#allocation5] sm:$0xff] %vm29_vm0, %v117_v3 }
 0x127   :  { %v105_v7 = vsel %vm104_vm12, %v155_v55, %v101_v4 }
 0x128   :  { %v110_v8 = vsel %vm107_vm13, %v109_v5, %v105_v7 }
 0x129   :  { %v115_v9 = vmul.f32 %v113_v6, %v110_v8 }
 0x12b   :  { %v118_v10 = vadd.f32 %v116_v61, %v115_v9 }
 0x12d   :  { %120 = vst.msk [vmem:[#allocation5 + $0x8] sm:$0xff] %vm29_vm0, %v118_v10 }
 0x12e   :  { %133 = dma.vmem_to_hbm [thread:$0]  %s126_s18, 256, %s128_s21, [#allocation3], %s199_s22, %s199_s22, %s200_s23  }
 0x12f   :  { %194 = dma.done.wait [#allocation3], 256  }
 0x130   :  { %195 = vsyncadd [#allocation3], 4294967040 }
 0x131   :  { %138 = vsyncpa [#allocation3], 1 }
 0x132   :  { %139 = vsyncpa [#allocation4], 1 }

// kernel: _lambda_.4
= control target key start
LH: loop header
LB: loop body
LE: loop exit
PB: predicated region body
PF: predicated region fallthrough
CT: control target
= control target key end

     0   :  { %s3461_s0 = inlined_call_operand.vmem [shape: f32[2,8,32], index: 0, kind: input, shape index: {}]   ;;  %s3462_s1 = inlined_call_operand.hbm [shape: f32[2,8,32], index: 1, kind: input, shape index: {}]   ;;  %s3463_s2 = inlined_call_operand.vmem [shape: bf16[2,1,8,8], index: 2, kind: input, shape index: {}]   ;;  %s3464_s3 = inlined_call_operand.vmem [shape: bf16[2,1,1,8], index: 3, kind: input, shape index: {}]   ;;  %s3465_s4 = inlined_call_operand.vmem [shape: f32[3,2], index: 4, kind: input, shape index: {}]   ;;  %s3466_s5 = inlined_call_operand.hbm [shape: bf16[32,96], index: 5, kind: input, shape index: {}]   ;;  %s3467_s6 = inlined_call_operand.hbm [shape: f32[1,96], index: 6, kind: input, shape index: {}]   ;;  %s3468_s7 = inlined_call_operand.hbm [shape: bf16[32,32], index: 7, kind: input, shape index: {}]   ;;  %s3469_s8 = inlined_call_operand.hbm [shape: f32[1,32], index: 8, kind: input, shape index: {}]   ;;  %s3470_s9 = inlined_call_operand.hbm [shape: bf16[32,32], index: 9, kind: input, shape index: {}]   ;;  %s3471_s10 = inlined_call_operand.hbm [shape: f32[1,32], index: 10, kind: input, shape index: {}]   ;;  %s3472_s11 = inlined_call_operand.hbm [shape: bf16[32,64], index: 11, kind: input, shape index: {}]   ;;  %s3473_s12 = inlined_call_operand.hbm [shape: f32[1,64], index: 12, kind: input, shape index: {}]   ;;  %s3474_s13 = inlined_call_operand.hbm [shape: bf16[32,32], index: 13, kind: input, shape index: {}]   ;;  %s3475_s14 = inlined_call_operand.hbm [shape: f32[1,32], index: 14, kind: input, shape index: {}]   ;;  %s3476_s15 = inlined_call_operand.hbm [shape: bf16[32,64], index: 15, kind: input, shape index: {}]   ;;  %s3477_s16 = inlined_call_operand.hbm [shape: f32[1,64], index: 16, kind: input, shape index: {}]   ;;  %s3478_s17 = inlined_call_operand.vmem [shape: bf16[64,32], index: 17, kind: input, shape index: {}]   ;;  %s3479_s18 = inlined_call_operand.hbm [shape: f32[1,32], index: 18, kind: input, shape index: {}]   ;;  %s3480_s19 = inlined_call_operand.vmem [shape: f32[2,8,32], index: 19, kind: output, shape index: {}]  }
   0x1   :  { %3484 = sst [smem:[#allocation37_spill]] %s3461_s0 }
   0x2   :  { %3485 = sst [smem:[#allocation38_spill]] %s3462_s1 }
   0x3   :  { %3486 = sst [smem:[#allocation39_spill]] %s3463_s2 }
   0x4   :  { %3487 = sst [smem:[#allocation40_spill]] %s3464_s3 }
   0x5   :  { %3488 = sst [smem:[#allocation41_spill]] %s3465_s4 }
   0x6   :  { %3489 = sst [smem:[#allocation42_spill]] %s3466_s5 }
   0x7   :  { %3490 = sst [smem:[#allocation43_spill]] %s3468_s7 }
   0x8   :  { %3491 = sst [smem:[#allocation44_spill]] %s3470_s9 }
   0x9   :  { %3492 = sst [smem:[#allocation45_spill]] %s3478_s17 }
   0xa   :  { %3493 = sst [smem:[#allocation46_spill]] %s3480_s19 }
   0xb   :  { %24 = vsyncpa [#allocation4], 0 }
   0xc   :  { %26 = vsyncpa [#allocation4 + $0x1], 0 }
   0xd   :  { %27 = vsyncpa [#allocation5], 0 }
   0xe   :  { %28 = vsyncpa [#allocation8], 0 }
   0xf   :  { %29 = vsyncpa [#allocation11], 0 }
  0x10   :  { %30 = vsyncpa [#allocation14], 0 }
  0x11   :  { %31 = vsyncpa [#allocation17], 0 }
  0x12   :  { %32 = vsyncpa [#allocation20], 0 }
  0x13   :  { %33 = vsyncpa [#allocation23], 0 }
  0x14   :  { %34 = vsyncpa [#allocation26], 0  ;;  %s3071_s0 = smov 0   ;;  %s3073_s30 = smov 0  }
  0x15   :  { %s3075_s20 = smov 0   ;;  %s3077_s21 = smov 0  }
  0x16 LB: > { %s3494_s5 = sld [smem:[#allocation42_spill]]  ;;  %s3095_s23 = sadd.s32 4294967295, %s2938_s21   ;;  %s2938_s21 = sphi %s3077_s21, %s3513_s21   ;;  %s2934_s20 = sphi %s3075_s20, %s3512_s20   ;;  %s2930_s30 = sphi %s3073_s30, %s3511_s30   ;;  %s2926_s0 = sphi %s3071_s0, %s3510_s0  }
  0x17   : > { %p2040_p0 = scmp.ge.s32.totalorder %s2938_s21, 1  ;;  %p87_p1 = scmp.eq.s32.totalorder %s3095_s23, 0 }
  0x18   : > { %p490_p2 = scmp.lt.s32.totalorder %s2938_s21, 3  ;;  %s2940_s25 = smov [#allocation7]  }
  0x19   : > { %s513_s3 = sshll.u32 %s2940_s25, 4  ;;  %s3497_s7 = sld [smem:[#allocation43_spill]]  ;;  %s514_s3 = int_to_ptr.vmem [resolvable:$true] %s513_s3 }
  0x1a   : > { %p3100_p3 = pnand %p2040_p0, %p490_p2  ;;  %s3499_s9 = sld [smem:[#allocation44_spill]] }
  0x1b   : > { %s2942_s17 = smov 64   ;;  %s589_s1 = sshll.u32 %s3472_s11, 4  ;;  %s590_s1 = int_to_ptr.hbm [resolvable:$true] %s589_s1 }
  0x1c   : > { %s511_s2 = sshll.u32 %s3494_s5, 4  ;;  %p2245_p4 = pneg %p3100_p3  ;;  %s512_s2 = int_to_ptr.hbm [resolvable:$true] %s511_s2 }
  0x1d   : > { %s3495_s24 = scalar_select %p3100_p3, 1, 0 }
  0x1e   : > { %p3111_p5 = pnand %p2245_p4, %p87_p1  ;;  %s2941_s5 = smov [#allocation10]  }
  0x1f   : > { %3496 = sst [smem:[#allocation36_spill]] %s3495_s24  ;;  %s537_s28 = sshll.u32 %s3497_s7, 4  ;;  %s538_s28 = int_to_ptr.hbm [resolvable:$true] %s537_s28 }
  0x20   : > { %s563_s25 = sshll.u32 %s3499_s9, 4  ;;  %s539_s19 = sshll.u32 %s2941_s5, 4  ;;  %s540_s19 = int_to_ptr.vmem [resolvable:$true] %s539_s19  ;;  %s564_s25 = int_to_ptr.hbm [resolvable:$true] %s563_s25 }
  0x21   : > { %s2943_s24 = smov 4   ;;  %s2944_s5 = smov [#allocation13]  }
  0x22   : > { %2251 = dma.hbm_to_vmem [thread:$0]  (!%p3111_p5), %s512_s2, 256, %s514_s3, [#allocation8], %s2942_s17, %s2942_s17, %s2943_s24  }
  0x23   : > { %2257 = dma.hbm_to_vmem [thread:$0]  (!%p3111_p5), %s538_s28, 256, %s540_s19, [#allocation11], %s2942_s17, %s2942_s17, %s2943_s24  }
  0x24   : > { %s565_s22 = sshll.u32 %s2944_s5, 4  ;;  %s2945_s2 = smov [#allocation16]   ;;  %s566_s22 = int_to_ptr.vmem [resolvable:$true] %s565_s22 }
  0x25   : > { %2263 = dma.hbm_to_vmem [thread:$0]  (!%p3111_p5), %s564_s25, 256, %s566_s22, [#allocation14], %s2942_s17, %s2942_s17, %s2943_s24  }
  0x26   : > { %s591_s3 = sshll.u32 %s2945_s2, 4  ;;  %s615_s19 = sshll.u32 %s3474_s13, 4  ;;  %s592_s3 = int_to_ptr.vmem [resolvable:$true] %s591_s3  ;;  %s616_s19 = int_to_ptr.hbm [resolvable:$true] %s615_s19 }
  0x27   : > { %2269 = dma.hbm_to_vmem [thread:$0]  (!%p3111_p5), %s590_s1, 256, %s592_s3, [#allocation17], %s2942_s17, %s2942_s17, %s2943_s24  }
  0x28   : > { %s641_s27 = sshll.u32 %s3476_s15, 4  ;;  %s2946_s25 = smov [#allocation19]   ;;  %s642_s27 = int_to_ptr.hbm [resolvable:$true] %s641_s27 }
  0x29   : > { %s617_s5 = sshll.u32 %s2946_s25, 4  ;;  %s2947_s7 = smov [#allocation22]   ;;  %s618_s5 = int_to_ptr.vmem [resolvable:$true] %s617_s5 }
  0x2a   : > { %2275 = dma.hbm_to_vmem [thread:$0]  (!%p3111_p5), %s616_s19, 256, %s618_s5, [#allocation20], %s2942_s17, %s2942_s17, %s2943_s24  }
  0x2b   : > { %s643_s9 = sshll.u32 %s2947_s7, 4  ;;  %s3500_s4 = sld [smem:[#allocation41_spill]]  ;;  %s644_s9 = int_to_ptr.vmem [resolvable:$true] %s643_s9 }
  0x2c   : > { %2281 = dma.hbm_to_vmem [thread:$0]  (!%p3111_p5), %s642_s27, 256, %s644_s9, [#allocation23], %s2942_s17, %s2942_s17, %s2943_s24  }
  0x2d   : > { %s526_s26 = sshll.u32 %s3467_s6, 4  ;;  %s2948_s19 = smov [#allocation6]   ;;  %s527_s26 = int_to_ptr.hbm [resolvable:$true] %s526_s26 }
  0x2e   : > { %s2949_s25 = smov [#allocation9]   ;;  %s552_s2 = sshll.u32 %s3469_s8, 4  ;;  %s553_s2 = int_to_ptr.hbm [resolvable:$true] %s552_s2 }
  0x2f   : > { %s528_s5 = sshll.u32 %s2949_s25, 4  ;;  %s578_s27 = sshll.u32 %s3471_s10, 4  ;;  %s529_s5 = int_to_ptr.vmem [resolvable:$true] %s528_s5  ;;  %s579_s27 = int_to_ptr.hbm [resolvable:$true] %s578_s27 }
  0x30   : > { %2254 = dma.hbm_to_vmem [thread:$0]  (!%p3111_p5), %s527_s26, 16, %s529_s5, [#allocation8]  }
  0x31   : > { %s502_s1 = sshll.u32 %s3500_s4, 4  ;;  %s2950_s9 = smov [#allocation12]   ;;  %s503_s1 = int_to_ptr.vmem [resolvable:$true] %s502_s1 }
  0x32   : > { %2248 = dma.vmem_to_smem (!%p3111_p5), %s503_s1, 64, %s2948_s19, [#allocation5]  }
  0x33   : > { %s554_s3 = sshll.u32 %s2950_s9, 4  ;;  %s2951_s1 = smov [#allocation15]   ;;  %s555_s3 = int_to_ptr.vmem [resolvable:$true] %s554_s3 }
  0x34   : > { %2260 = dma.hbm_to_vmem [thread:$0]  (!%p3111_p5), %s553_s2, 16, %s555_s3, [#allocation11]  }
  0x35   : > { %s580_s28 = sshll.u32 %s2951_s1, 4  ;;  %s604_s7 = sshll.u32 %s3473_s12, 4  ;;  %s581_s28 = int_to_ptr.vmem [resolvable:$true] %s580_s28  ;;  %s605_s7 = int_to_ptr.hbm [resolvable:$true] %s604_s7 }
  0x36   : > { %2266 = dma.hbm_to_vmem [thread:$0]  (!%p3111_p5), %s579_s27, 16, %s581_s28, [#allocation14]  }
  0x37   : > { %s630_s22 = sshll.u32 %s3475_s14, 4  ;;  %s2952_s17 = smov [#allocation18]   ;;  %s631_s22 = int_to_ptr.hbm [resolvable:$true] %s630_s22 }
  0x38   : > { %s606_s24 = sshll.u32 %s2952_s17, 4  ;;  %s2953_s2 = smov [#allocation21]   ;;  %s607_s24 = int_to_ptr.vmem [resolvable:$true] %s606_s24 }
  0x39   : > { %2272 = dma.hbm_to_vmem [thread:$0]  (!%p3111_p5), %s605_s7, 16, %s607_s24, [#allocation17]  }
  0x3a   : > { %s632_s9 = sshll.u32 %s2953_s2, 4  ;;  %s656_s27 = sshll.u32 %s3477_s16, 4  ;;  %s633_s9 = int_to_ptr.vmem [resolvable:$true] %s632_s9  ;;  %s657_s27 = int_to_ptr.hbm [resolvable:$true] %s656_s27 }
  0x3b   : > { %2278 = dma.hbm_to_vmem [thread:$0]  (!%p3111_p5), %s631_s22, 16, %s633_s9, [#allocation20]  }
  0x3c   : > { %s671_s25 = sshll.u32 %s3479_s18, 4  ;;  %s2954_s7 = smov [#allocation24]   ;;  %s672_s25 = int_to_ptr.hbm [resolvable:$true] %s671_s25 }
  0x3d   : > { %s658_s26 = sshll.u32 %s2954_s7, 4  ;;  %s2955_s5 = smov [#allocation25]   ;;  %s659_s26 = int_to_ptr.vmem [resolvable:$true] %s658_s26 }
  0x3e   : > { %2284 = dma.hbm_to_vmem [thread:$0]  (!%p3111_p5), %s657_s27, 16, %s659_s26, [#allocation23]  }
  0x3f   : > { %s673_s22 = sshll.u32 %s2955_s5, 4  ;;  %s3198_s17 = sadd.s32 1, %s2938_s21   ;;  %s674_s22 = int_to_ptr.vmem [resolvable:$true] %s673_s22 }
  0x40   : > { %2287 = dma.hbm_to_vmem [thread:$0]  (!%p3111_p5), %s672_s25, 16, %s674_s22, [#allocation26]  }
  0x41   : > { %s70_s24 = ssub.s32 %s2938_s21, %s3198_s17  ;;  %s73_s2 = sadd.s32 1, %s2934_s20 }
  0x42   : > { %p71_p6 = scmp.eq.s32.totalorder %s70_s24, 0  ;;  %p80_p7 = scmp.ne.s32.totalorder %s2934_s20, %s2930_s30 }
  0x43   : > { %p81_p8 = scmp.eq.s32.totalorder %s2938_s21, 0  ;;  %p86_p9 = scmp.ne.s32.totalorder %s2930_s30, %s2926_s0 }
  0x44   : > { %s3209_s9 = scalar_select %p71_p6, %s2934_s20, %s73_s2  }
  0x45   : > { %p3213_p10 = por %p87_p1, %p86_p9  ;;  %p2306_p11 = scmp.lt.s32.totalorder %s2938_s21, 2 }
  0x46   : > { %s691_s1 = sand.u32 1, %s2934_s20   ;;  %s2057_s29 = sshll.u32 %s2938_s21, 3 }
  0x47   : > { %p82_p12 = por %p81_p8, %p80_p7  ;;  %s2056_s27 = sshll.u32 %s691_s1, 3 }
  0x48   : > { %s3502_s25 = sld [smem:[#allocation38_spill]]  ;;  %s695_s5 = scalar_lea.vmem [#allocation3], %s2056_s27 }
  0x49   : > { %s703_s22 = sshll.u32 %s695_s5, 4  ;;  %p3223_p13 = pnand %p2306_p11, %p82_p12  ;;  %s704_s22 = int_to_ptr.vmem [resolvable:$true] %s703_s22 }
  0x4a   : > { %s692_s24 = scalar_lea.sflag [#allocation4], %s691_s1 }
  0x4b   : > { %p2846_p2 = pneg %p3223_p13 }
  0x4e   : > { %s699_s7 = scalar_lea.hbm %s3502_s25, %s2057_s29  ;;  %s2849_s27 = scalar_lea.hbm %s3502_s25, 16 }
  0x4f   : > { %s701_s26 = sshll.u32 %s699_s7, 4  ;;  %s702_s26 = int_to_ptr.hbm [resolvable:$true] %s701_s26 }
  0x50   : > { %s2842_s2 = sshra.s32 %s702_s26, 4  ;;  %s2843_s2 = int_to_ptr.hbm [resolvable:$true] %s2842_s2 }
  0x51   : > { %s2844_s21 = scalar_lea.hbm %s2843_s2, 8  ;;  %p2850_p6 = scmp.lt.s32.totalorder %s2843_s2, %s3502_s25 }
  0x52   : > { %p2845_p0 = scmp.ne.s32.totalorder %s2843_s2, %s2844_s21  ;;  %p2851_p7 = scmp.lt.s32.totalorder %s2849_s27, %s2844_s21 }
  0x54   : > { %p2847_p4 = pnand %p2846_p2, %p2845_p0  ;;  %p2852_p8 = por %p2851_p7, %p2850_p6 }
  0x56   : > { %p2848_p5 = pneg %p2847_p4 }
  0x58   : > { %p2853_p9 = pnand %p2852_p8, %p2848_p5 }
  0x5a   : > { %2856 = shalt.err (!%p2853_p9)
}
  0x5b   : > { %2291 = dma.hbm_to_vmem [thread:$0]  (!%p3223_p13), %s702_s26, 128, %s704_s22, %s692_s24  }
  0x5c   : > { %725 = sbr.rel (%p3100_p3) target bundleno = 3350 (0xd16), region = 96  ;;  %s727_s5 = sand.u32 (!%p3100_p3), 1, %s2930_s30  }
  0x5d   : > { %s3240_s4 = sshll.u32 (!%p3100_p3), %s727_s5, 3  ;;  %s728_s29 = scalar_lea.sflag (!%p3100_p3), [#allocation4], %s727_s5 }
  0x5e   : > { %s731_s28 = scalar_lea.vmem (!%p3100_p3), [#allocation3], %s3240_s4 }
  0x61   : > { %2889 = dma.done.wait (%p3213_p10), %s728_s29, 128  }
  0x62   : > { %2891 = vsyncadd (%p3213_p10), %s728_s29, 4294967168 }
  0x63   : > { %2893 = dma.done.wait (%p87_p1), [#allocation5], 64  }
  0x64   : > { %2895 = vsyncadd (%p87_p1), [#allocation5], 4294967232 }
  0x65   : > { %2897 = dma.done.wait (%p87_p1), [#allocation8], 272  }
  0x66   : > { %2899 = vsyncadd (%p87_p1), [#allocation8], 4294967024 }
  0x67   : > { %2901 = dma.done.wait (%p87_p1), [#allocation11], 272  }
  0x68   : > { %2903 = vsyncadd (%p87_p1), [#allocation11], 4294967024 }
  0x69   : > { %2905 = dma.done.wait (%p87_p1), [#allocation14], 272  }
  0x6a   : > { %2907 = vsyncadd (%p87_p1), [#allocation14], 4294967024 }
  0x6b   : > { %2909 = dma.done.wait (%p87_p1), [#allocation17], 272  }
  0x6c   : > { %2911 = vsyncadd (%p87_p1), [#allocation17], 4294967024 }
  0x6d   : > { %2913 = dma.done.wait (%p87_p1), [#allocation20], 272  }
  0x6e   : > { %2915 = vsyncadd (%p87_p1), [#allocation20], 4294967024 }
  0x6f   : > { %2917 = dma.done.wait (%p87_p1), [#allocation23], 272  }
  0x70   : > { %2919 = vsyncadd (%p87_p1), [#allocation23], 4294967024 }
  0x71   : > { %2921 = dma.done.wait (%p87_p1), [#allocation26], 16  }
  0x72   : > { %2923 = vsyncadd (%p87_p1), [#allocation26], 4294967280 }
  0x73   : > { %807 = sfence }
  0x74   : > { %p868_p3 = scmp.lt.s32.totalorder %s3095_s23, 1  ;;  %vm888_vm0 = vcmask 261120   ;;  %s3505_s0 = sld [smem:[#allocation37_spill]]  ;;  %v2956_v2 = vmov 32.0   ;;  %v2172_v14 = vld [vmem:[#allocation7 + $0x8] sm:$0xff]  ;;  %v2171_v15 = vld [vmem:[#allocation7] sm:$0xff] }
  0x75   : > { %2391 = vrcp.f32 %v2956_v2  ;;  %968 = vmatpush.bf16.msra.mxu0 %v2172_v14  ;;  %s886_s2 = sld [smem:[#allocation6]]  ;;  %v2384_v45 = vld [vmem:[#allocation9] ss:$0 sm:$0xff]  ;;  %s2957_s27 = smov 96   ;;  %vm987_vm8 = vcmask 64512   ;;  %vm1024_vm9 = vcmask 1043456  }
  0x76   : > { %s3515_s23 = smov (!%p868_p3, %s3095_s23), 1  ;;  %s2077_s21 = sld [smem:[#allocation6 + $0x1]]  ;;  %vm1103_vm10 = vcmask 130112   ;;  %vm1165_vm11 = vcmask 195712   ;;  %vm1227_vm12 = vcmask 261312  }
  0x77   : > { %s2074_s3 = sshll.u32 %s3515_s23, 3  ;;  %s2958_s19 = smov 104  }
  0x78   : > { %s2959_s7 = smov 120   ;;  %s2960_s1 = smov 88  }
  0x79   : > { %969 = vmatpush.bf16.msra.mxu0 %v2171_v15  ;;  %s2961_s5 = smov 72   ;;  %s2962_s29 = smov 80  }
  0x7a   : > { %s871_s24 = scalar_lea.vmem %s3505_s0, %s2074_s3  ;;  %s2963_s26 = smov 112  }
  0x7b   : > { %v3289_v0 = vld [vmem:[%s871_s24] sm:$0xff]  ;;  %v2392_v3 = vpop.eup %2391  ;;  %v933_v35 = vstv %s886_s2  ;;  %s2075_s22 = sshll.u32 %s3515_s23, 2  ;;  %s3506_s2 = sld [smem:[#allocation39_spill]] }
  0x7c   : > { %v889_v1 = vsel %vm888_vm0, %v3289_v0, 0.0  ;;  %v893_v4 = vmul.f32 32.0, %v2392_v3  ;;  %vm897_vm1 = vweird.f32 %v2392_v3  ;;  %v936_v41 = vstv %s2077_s21  ;;  %s2965_s0 = smov 56   ;;  %s2966_s24 = smov 40  }
  0x7d   : > { %890 = vadd.xlane.f32.xlu0 %v889_v1  ;;  %s2104_s4 = sld [smem:[#allocation6 + $0x80]] }
  0x7e   : > { %v894_v5 = vsub.f32 1.0, %v893_v4 }
  0x80   : > { %v895_v6 = vmul.f32 %v2392_v3, %v894_v5 }
  0x81   : > { %s875_s21 = scalar_lea.vmem %s3506_s2, %s2075_s22  ;;  %s2964_s22 = smov 64  }
  0x82   : > { %v896_v7 = vadd.f32 %v2392_v3, %v895_v6  ;;  %v975_v63 = vld [vmem:[%s875_s21] sm:$0xf]  ;;  %s2967_s2 = smov 48   ;;  %s2968_s21 = smov 8  }
  0x83   : > { %v981_v1 = vunpack.c.l.bf16 %v975_v63 }
  0x84   : > { %v3293_v8 = vsel %vm897_vm1, %v2392_v3, %v896_v7 }
  0xf0   : > { %v891_v9 = vpop.xlane.xlu0 %890 }
  0xf1   : > { %v899_v10 = vmul.f32 %v3293_v8, %v891_v9 }
  0xf3   : > { %v900_v11 = vsub.f32 %v3289_v0, %v899_v10 }
  0xf5   : > { %v901_v12 = vmul.f32 %v900_v11, %v900_v11  ;;  %v934_v38 = vmul.f32 %v933_v35, %v900_v11 }
  0xf7   : > { %v902_v13 = vsel %vm888_vm0, %v901_v12, 0.0 }
  0xf8   : > { %903 = vadd.xlane.f32.xlu0 %v902_v13 }
 0x16b   : > { %v904_v16 = vpop.xlane.xlu0 %903 }
 0x16c   : > { %v905_v17 = vmul.f32 0.032258064, %v904_v16 }
 0x16e   : > { %2393 = vrsqrt.f32 %v905_v17  ;;  %vm913_vm2 = vcmp.eq.f32.partialorder %v905_v17, inf  ;;  %v916_v25 = vand.u32 2147483648, %v905_v17  ;;  %vm915_vm3 = vcmp.eq.f32.partialorder %v905_v17, 0.0 }
 0x174   : > { %v2394_v18 = vpop.eup %2393 }
 0x175   : > { %v907_v19 = vmul.f32 %v2394_v18, %v905_v17 }
 0x177   : > { %v908_v20 = vmul.f32 %v2394_v18, %v907_v19 }
 0x179   : > { %v909_v21 = vmul.f32 0.5, %v908_v20 }
 0x17b   : > { %v910_v22 = vsub.f32 1.5, %v909_v21 }
 0x17d   : > { %v911_v23 = vmul.f32 %v2394_v18, %v910_v22 }
 0x17f   : > { %v912_v24 = vmul.f32 %v911_v23, %v905_v17 }
 0x181   : > { %v914_v26 = vsel %vm913_vm2, %v905_v17, %v912_v24 }
 0x182   : > { %v917_v27 = vsel %vm915_vm3, %v916_v25, %v914_v26 }
 0x183   : > { %v918_v28 = vadd.f32 1e-06, %v917_v27 }
 0x185   : > { %2395 = vrcp.f32 %v918_v28  ;;  %v930_v32 = vand.u32 2147483648, %v918_v28  ;;  %v928_v34 = vand.u32 2147483647, %v918_v28  ;;  %vm924_vm5 = vweird.f32 %v918_v28 }
 0x187   : > { %v931_v37 = vor.u32 1.1754944e-38, %v930_v32  ;;  %vm929_vm7 = vcmp.eq.f32.partialorder %v928_v34, 8.507059e+37 }
 0x18b   : > { %v2396_v29 = vpop.eup %2395 }
 0x18c   : > { %v920_v30 = vmul.f32 %v2396_v29, %v918_v28  ;;  %vm925_vm4 = vweird.f32 %v2396_v29 }
 0x18d   : > { %vm926_vm6 = vmor %vm924_vm5, %vm925_vm4 }
 0x18e   : > { %v921_v31 = vsub.f32 1.0, %v920_v30 }
 0x190   : > { %v922_v33 = vmul.f32 %v2396_v29, %v921_v31 }
 0x192   : > { %v923_v36 = vadd.f32 %v2396_v29, %v922_v33 }
 0x194   : > { %v927_v39 = vsel %vm926_vm6, %v2396_v29, %v923_v36 }
 0x195   : > { %v932_v40 = vsel %vm929_vm7, %v931_v37, %v927_v39 }
 0x196   : > { %v935_v42 = vmul.f32 %v934_v38, %v932_v40 }
 0x198   : > { %v937_v43 = vadd.f32 %v936_v41, %v935_v42 }
 0x19a   : > { %v938_v44 = vpack.c.bf16 %v937_v43, %v937_v43 }
 0x19c   : > { %2086 = vmatmul.msk.bf16.vlgmr.msra.gmra.mxu0 %vm888_vm0, %v938_v44 }
 0x219   : > { %v971_v46 = vpop.f32.mrf.mxu0 }
 0x21a   : > { %v972_v47 = vadd.f32 %v2384_v45, %v971_v46 }
 0x21c   : > { %v980_v48 = vmul.f32 0.35355338, %v972_v47  ;;  %v3299_v49 = vpack.c.bf16 %v972_v47, %v972_v47 }
 0x21e   : > { %v982_v50 = vpack.c.bf16 %v980_v48, %v980_v48  ;;  %985 = vrot.lane.b32.xlu1 %v3299_v49, %s2957_s27 }
 0x220   : > { %1167 = vrot.lane.b32.xlu0 %v982_v50, %s2958_s19  ;;  %1043 = vrot.lane.b32.xlu2 %v982_v50, %s2959_s7 }
 0x221   : > { %v973_v51 = vpop.f32.mrf.mxu0 }
 0x226   : > { %1045 = vrot.lane.b32.xlu1 %v3299_v49, %s2960_s1 }
 0x228   : > { %1169 = vrot.lane.b32.xlu2 %v3299_v49, %s2961_s5 }
 0x22e   : > { %1107 = vrot.lane.b32.xlu1 %v3299_v49, %s2962_s29 }
 0x230   : > { %1105 = vrot.lane.b32.xlu2 %v982_v50, %s2963_s26 }
 0x27a   : > { %v1044_v52 = vpop.permute.xlu2 %1043 }
 0x282   : > { %v1170_v55 = vpop.permute.xlu2 %1169 }
 0x283   : > { %v1175_v58 = vsel %vm987_vm8, %v1170_v55, 0 }
 0x28a   : > { %v1106_v61 = vpop.permute.xlu2 %1105 }
 0x290   : > { %v986_v53 = vpop.permute.xlu1 %985 }
 0x291   : > { %v992_v54 = vsel %vm987_vm8, %v986_v53, 0 }
 0x292   : > { %1001 = vmatpush.bf16.xpose.msra.mxu1 %v992_v54  ;;  %v1168_v62 = vpop.permute.xlu0 %1167 }
 0x298   : > { %v1046_v56 = vpop.permute.xlu1 %1045 }
 0x299   : > { %2087 = vmatmul.msk.bf16.vlgmr.msra.gmra.mxu1 %vm987_vm8, %v982_v50  ;;  %v1051_v57 = vsel %vm987_vm8, %v1046_v56, 0 }
 0x29a   : > { %1060 = vmatpush.bf16.xpose.msra.mxu3 %v1051_v57 }
 0x2a0   : > { %v1108_v59 = vpop.permute.xlu1 %1107 }
 0x2a1   : > { %2089 = vmatmul.msk.bf16.vlgmr.msra.gmra.mxu3 %vm987_vm8, %v1044_v52  ;;  %v1113_v60 = vsel %vm987_vm8, %v1108_v59, 0 }
 0x2a2   : > { %1184 = vmatpush.bf16.xpose.msrb.mxu3 %v1175_v58  ;;  %1122 = vmatpush.bf16.xpose.msrb.mxu0 %v1113_v60 }
 0x2a9   : > { %2091 = vmatmul.msk.bf16.vlgmr.msrb.gmra.mxu0 %vm987_vm8, %v1106_v61 }
 0x2b1   : > { %2093 = vmatmul.msk.bf16.vlgmr.msrb.gmra.mxu3 %vm987_vm8, %v1168_v62 }
 0x316   : > { %v1003_v2 = vpop.f32.mrf.mxu1 }
 0x317   : > { %v1004_v3 = vadd.f32 %v1003_v2, %v981_v1 }
 0x319   : > { %v1007_v4 = vsel %vm987_vm8, %v1004_v3, -inf }
 0x31a   : > { %1008 = vmax.xlane.f32.xlu1 %v1007_v4 }
 0x31e   : > { %v1005_v5 = vpop.f32.mrf.mxu1 }
 0x324   : > { %v1062_v6 = vpop.f32.mrf.mxu3 }
 0x325   : > { %v1063_v7 = vadd.f32 %v1062_v6, %v981_v1 }
 0x326   : > { %v1124_v9 = vpop.f32.mrf.mxu0 }
 0x327   : > { %v1066_v10 = vsel %vm987_vm8, %v1063_v7, -inf  ;;  %v1125_v11 = vadd.f32 %v1124_v9, %v981_v1  ;;  %v2174_v9 = vld [vmem:[#allocation10 + $0x8] sm:$0xff] }
 0x328   : > { %1067 = vmax.xlane.f32.xlu2 %v1066_v10  ;;  %1252 = vmatpush.bf16.msra.mxu0 %v2174_v9  ;;  %v2173_v10 = vld [vmem:[#allocation10] sm:$0xff] }
 0x329   : > { %v1128_v14 = vsel %vm987_vm8, %v1125_v11, -inf }
 0x32c   : > { %v1064_v12 = vpop.f32.mrf.mxu3  ;;  %1253 = vmatpush.bf16.msra.mxu0 %v2173_v10 }
 0x32e   : > { %v1126_v13 = vpop.f32.mrf.mxu0 }
 0x330   : > { %1129 = vmax.xlane.f32.xlu2 %v1128_v14 }
 0x334   : > { %v1186_v15 = vpop.f32.mrf.mxu3 }
 0x335   : > { %v1187_v16 = vadd.f32 %v1186_v15, %v981_v1 }
 0x337   : > { %v1190_v17 = vsel %vm987_vm8, %v1187_v16, -inf }
 0x338   : > { %1191 = vmax.xlane.f32.xlu0 %v1190_v17 }
 0x33c   : > { %v1188_v18 = vpop.f32.mrf.mxu3 }
 0x348   : > { %1019 = vrot.lane.b32.xlu2 %v3299_v49, %s2964_s22  ;;  %s2969_s22 = smov 24  }
 0x34c   : > { %1078 = vrot.lane.b32.xlu0 %v3299_v49, %s2965_s0  ;;  %s2970_s0 = smov 16  }
 0x350   : > { %1202 = vrot.lane.b32.xlu2 %v3299_v49, %s2966_s24  ;;  %s3507_s24 = sld [smem:[#allocation40_spill]] }
 0x354   : > { %1140 = vrot.lane.b32.xlu0 %v3299_v49, %s2967_s2 }
 0x356   : > { %s878_s2 = scalar_lea.vmem %s3507_s24, %s3515_s23 }
 0x38d   : > { %v1009_v19 = vpop.xlane.xlu1 %1008 }
 0x38e   : > { %v1010_v20 = vsub.f32 %v1004_v3, %v1009_v19 }
 0x390   : > { %v1011_v21 = vmul.f32 1.442695, %v1010_v20 }
 0x392   : > { %2397 = vpow2.f32 %v1011_v21 }
 0x398   : > { %v2398_v22 = vpop.eup %2397 }
 0x399   : > { %v1013_v23 = vsel %vm987_vm8, %v2398_v22, 0.0 }
 0x39a   : > { %1014 = vadd.xlane.f32.xlu1 %v1013_v23 }
 0x39b   : > { %v1068_v24 = vpop.xlane.xlu2 %1067 }
 0x39c   : > { %v1069_v25 = vsub.f32 %v1063_v7, %v1068_v24 }
 0x39e   : > { %v1070_v26 = vmul.f32 1.442695, %v1069_v25 }
 0x3a0   : > { %2399 = vpow2.f32 %v1070_v26 }
 0x3a3   : > { %v1130_v27 = vpop.xlane.xlu2 %1129 }
 0x3a4   : > { %v1131_v34 = vsub.f32 %v1125_v11, %v1130_v27 }
 0x3a6   : > { %v2400_v28 = vpop.eup %2399  ;;  %v1132_v36 = vmul.f32 1.442695, %v1131_v34 }
 0x3a7   : > { %v1072_v29 = vsel %vm987_vm8, %v2400_v28, 0.0 }
 0x3a8   : > { %1073 = vadd.xlane.f32.xlu1 %v1072_v29 }
 0x3ab   : > { %v1192_v30 = vpop.xlane.xlu0 %1191  ;;  %v1020_v31 = vpop.permute.xlu2 %1019 }
 0x3ac   : > { %v1193_v32 = vsub.f32 %v1187_v16, %v1192_v30  ;;  %v1026_v33 = vsel %vm1024_vm9, %v1020_v31, 0  ;;  %v2385_v16 = vld [vmem:[#allocation12] ss:$0 sm:$0xff]  ;;  %v2176_v30 = vld [vmem:[#allocation13 + $0x8] sm:$0xff]  ;;  %v2175_v31 = vld [vmem:[#allocation13] sm:$0xff] }
 0x3ad   : > { %1035 = vmatpush.bf16.msra.mxu2 %v1026_v33 }
 0x3ae   : > { %v1194_v35 = vmul.f32 1.442695, %v1193_v32 }
 0x3b0   : > { %2401 = vpow2.f32 %v1194_v35 }
 0x3b1   : > { %2403 = vpow2.f32 %v1132_v36 }
 0x3b3   : > { %v1203_v48 = vpop.permute.xlu2 %1202 }
 0x3b4   : > { %v1208_v50 = vsel %vm1024_vm9, %v1203_v48, 0 }
 0x3b6   : > { %v2402_v37 = vpop.eup %2401 }
 0x3b7   : > { %v1196_v38 = vsel %vm987_vm8, %v2402_v37, 0.0  ;;  %v2404_v39 = vpop.eup %2403 }
 0x3b8   : > { %1197 = vadd.xlane.f32.xlu1 %v1196_v38  ;;  %v1134_v42 = vsel %vm987_vm8, %v2404_v39, 0.0 }
 0x3be   : > { %v1079_v40 = vpop.permute.xlu0 %1078 }
 0x3bf   : > { %v1084_v41 = vsel %vm1024_vm9, %v1079_v40, 0 }
 0x3c0   : > { %1093 = vmatpush.bf16.msrb.mxu2 %v1084_v41  ;;  %1135 = vadd.xlane.f32.xlu1 %v1134_v42 }
 0x3c6   : > { %v1141_v43 = vpop.permute.xlu0 %1140 }
 0x3c7   : > { %v1146_v44 = vsel %vm1024_vm9, %v1141_v43, 0 }
 0x3c8   : > { %1155 = vmatpush.bf16.msrb.mxu1 %v1146_v44 }
 0x3cc   : > { %1339 = vmatpush.bf16.msra.mxu1 %v2176_v30 }
 0x3d0   : > { %1340 = vmatpush.bf16.msra.mxu1 %v2175_v31 }
 0x40d   : > { %v1015_v45 = vpop.xlane.xlu1 %1014 }
 0x40e   : > { %2405 = vrcp.f32 %v1015_v45 }
 0x414   : > { %v2406_v46 = vpop.eup %2405 }
 0x415   : > { %v1017_v47 = vmul.f32 %v2406_v46, %v2398_v22  ;;  %v2178_v22 = vld [vmem:[#allocation16 + $0x8] sm:$0xff] }
 0x416   : > { %1376 = vmatpush.bf16.msra.mxu3 %v2178_v22 }
 0x417   : > { %v1018_v49 = vpack.c.bf16 %v1017_v47, %v1017_v47 }
 0x419   : > { %2088 = vmatmul.msk.bf16.vlgmr.msra.gmra.mxu2 %vm987_vm8, %v1018_v49 }
 0x41a   : > { %1217 = vmatpush.bf16.msra.mxu2 %v1208_v50 }
 0x41b   : > { %v1074_v51 = vpop.xlane.xlu1 %1073 }
 0x41c   : > { %2407 = vrcp.f32 %v1074_v51  ;;  %v1304_v51 = vstv %s2104_s4 }
 0x422   : > { %v2408_v52 = vpop.eup %2407 }
 0x423   : > { %v1076_v53 = vmul.f32 %v2408_v52, %v2400_v28  ;;  %v2177_v28 = vld [vmem:[#allocation16] sm:$0xff] }
 0x424   : > { %1377 = vmatpush.bf16.msra.mxu3 %v2177_v28 }
 0x425   : > { %v1077_v54 = vpack.c.bf16 %v1076_v53, %v1076_v53 }
 0x429   : > { %2090 = vmatmul.msk.bf16.vlgmr.msrb.gmra.mxu2 %vm987_vm8, %v1077_v54 }
 0x42b   : > { %v1198_v55 = vpop.xlane.xlu1 %1197 }
 0x42c   : > { %2409 = vrcp.f32 %v1198_v55 }
 0x432   : > { %v2410_v56 = vpop.eup %2409 }
 0x433   : > { %v1200_v57 = vmul.f32 %v2410_v56, %v2402_v37  ;;  %v1136_v58 = vpop.xlane.xlu1 %1135 }
 0x434   : > { %2411 = vrcp.f32 %v1136_v58 }
 0x435   : > { %v1201_v59 = vpack.c.bf16 %v1200_v57, %v1200_v57 }
 0x439   : > { %2094 = vmatmul.msk.bf16.vlgmr.msra.gmra.mxu2 %vm987_vm8, %v1201_v59 }
 0x43a   : > { %v2412_v60 = vpop.eup %2411 }
 0x43b   : > { %v1138_v61 = vmul.f32 %v2412_v60, %v2404_v39 }
 0x43d   : > { %v1139_v62 = vpack.c.bf16 %v1138_v61, %v1138_v61  ;;  %v2386_v61 = vld [vmem:[#allocation18] ss:$0 sm:$0xff] }
 0x43f   : > { %2092 = vmatmul.msk.bf16.vlgmr.msrb.gmra.mxu1 %vm987_vm8, %v1139_v62 }
 0x49c   : > { %v1037_v63 = vpop.f32.mrf.mxu2 }
 0x49d   : > { %1041 = vst.msk [vmem:[#allocation2] sm:$0xff] %vm987_vm8, %v1037_v63 }
 0x4a4   : > { %v1039_v1 = vpop.f32.mrf.mxu2 }
 0x4ac   : > { %v1095_v2 = vpop.f32.mrf.mxu2 }
 0x4ad   : > { %1100 = vrot.lane.b32.xlu1 %v1095_v2, %s2968_s21 }
 0x4b4   : > { %v1097_v3 = vpop.f32.mrf.mxu2 }
 0x4bc   : > { %v1157_v4 = vpop.f32.mrf.mxu1  ;;  %v1219_v5 = vpop.f32.mrf.mxu2 }
 0x4bd   : > { %1224 = vrot.lane.b32.xlu0 %v1219_v5, %s2969_s22  ;;  %1162 = vrot.lane.b32.xlu2 %v1157_v4, %s2970_s0  ;;  %v2387_v4 = vld [vmem:[#allocation15] ss:$0 sm:$0xff] }
 0x4c4   : > { %v1159_v6 = vpop.f32.mrf.mxu1  ;;  %v1221_v7 = vpop.f32.mrf.mxu2 }
 0x517   : > { %v1163_v12 = vpop.permute.xlu2 %1162 }
 0x51f   : > { %v1101_v11 = vpop.permute.xlu1 %1100 }
 0x520   : > { %1104 = vst.msk [vmem:[#allocation2] sm:$0xff] %vm1103_vm10, %v1101_v11 }
 0x521   : > { %1166 = vst.msk [vmem:[#allocation2] sm:$0xff] %vm1165_vm11, %v1163_v12 }
 0x52f   : > { %v1225_v13 = vpop.permute.xlu0 %1224 }
 0x530   : > { %1228 = vst.msk [vmem:[#allocation2] sm:$0xff] %vm1227_vm12, %v1225_v13 }
 0x537   : > { %v1229_v14 = vld [vmem:[#allocation2] sm:$0xff] }
 0x538   : > { %v1230_v15 = vpack.c.bf16 %v1229_v14, %v1229_v14 }
 0x53a   : > { %2103 = vmatmul.msk.bf16.vlgmr.msra.gmra.mxu0 %vm888_vm0, %v1230_v15 }
 0x5b7   : > { %v1255_v17 = vpop.f32.mrf.mxu0 }
 0x5b8   : > { %v1259_v18 = vadd.f32 %v1255_v17, %v3289_v0  ;;  %v885_v0 = vld [vmem:[%s731_s28] sm:$0xff]  ;;  %s2105_s28 = sld [smem:[#allocation6 + $0x81]] }
 0x5b9   : > { %v1346_v29 = vpack.c.bf16 %v885_v0, %v885_v0 }
 0x5ba   : > { %v3353_v19 = vadd.f32 %v2385_v16, %v1259_v18  ;;  %v1383_v18 = vld [vmem:[%s878_s2] sm:$0x1]  ;;  %s3509_s2 = sld [smem:[#allocation46_spill]] }
 0x5bb   : > { %2123 = vmatmul.msk.bf16.vlgmr.msra.gmra.mxu3 %vm888_vm0, %v1346_v29 }
 0x5bc   : > { %v1267_v20 = vsel %vm888_vm0, %v3353_v19, 0.0 }
 0x5bd   : > { %1268 = vadd.xlane.f32.xlu2 %v1267_v20 }
 0x5be   : > { %v1307_v57 = vstv %s2105_s28 }
 0x5bf   : > { %v1257_v21 = vpop.f32.mrf.mxu0 }
 0x5c0   : > { %v1389_v21 = vunpack.c.l.bf16 %v1383_v18 }
 0x5c2   : > { %v1390_v22 = vperm.slane %v1389_v21, 0 }
 0x630   : > { %v1269_v23 = vpop.xlane.xlu2 %1268 }
 0x631   : > { %v1270_v24 = vmul.f32 %v1269_v23, %v3293_v8 }
 0x633   : > { %v1271_v25 = vsub.f32 %v3353_v19, %v1270_v24 }
 0x635   : > { %v1272_v26 = vmul.f32 %v1271_v25, %v1271_v25  ;;  %v1305_v54 = vmul.f32 %v1304_v51, %v1271_v25 }
 0x637   : > { %v1273_v27 = vsel %vm888_vm0, %v1272_v26, 0.0 }
 0x638   : > { %1274 = vadd.xlane.f32.xlu0 %v1273_v27 }
 0x63e   : > { %v1379_v62 = vpop.f32.mrf.mxu3 }
 0x63f   : > { %v1380_v63 = vadd.f32 %v2386_v61, %v1379_v62 }
 0x641   : > { %v3364_v1 = vpack.c.bf16 %v1380_v63, %v1380_v63 }
 0x643   : > { %1450 = vrot.lane.b32.xlu1 %v3364_v1, %s2959_s7  ;;  %v1397_v2 = vsel %vm987_vm8, %v3364_v1, 0 }
 0x644   : > { %1406 = vmatpush.bf16.xpose.msrb.mxu2 %v1397_v2 }
 0x646   : > { %v1381_v3 = vpop.f32.mrf.mxu3 }
 0x64b   : > { %1511 = vrot.lane.b32.xlu1 %v3364_v1, %s2963_s26 }
 0x6ab   : > { %v1275_v32 = vpop.xlane.xlu0 %1274 }
 0x6ac   : > { %v1276_v33 = vmul.f32 0.032258064, %v1275_v32 }
 0x6ae   : > { %2413 = vrsqrt.f32 %v1276_v33  ;;  %vm1284_vm13 = vcmp.eq.f32.partialorder %v1276_v33, inf  ;;  %v1287_v41 = vand.u32 2147483648, %v1276_v33  ;;  %vm1286_vm14 = vcmp.eq.f32.partialorder %v1276_v33, 0.0 }
 0x6b4   : > { %v2414_v34 = vpop.eup %2413 }
 0x6b5   : > { %v1278_v35 = vmul.f32 %v2414_v34, %v1276_v33  ;;  %v1451_v11 = vpop.permute.xlu1 %1450 }
 0x6b6   : > { %v1456_v12 = vsel %vm987_vm8, %v1451_v11, 0 }
 0x6b7   : > { %v1279_v36 = vmul.f32 %v2414_v34, %v1278_v35  ;;  %1465 = vmatpush.bf16.xpose.msrb.mxu1 %v1456_v12 }
 0x6b9   : > { %v1280_v37 = vmul.f32 0.5, %v1279_v36 }
 0x6bb   : > { %v1281_v38 = vsub.f32 1.5, %v1280_v37 }
 0x6bd   : > { %v1282_v39 = vmul.f32 %v2414_v34, %v1281_v38  ;;  %v1512_v13 = vpop.permute.xlu1 %1511 }
 0x6be   : > { %v1517_v14 = vsel %vm987_vm8, %v1512_v13, 0 }
 0x6bf   : > { %v1283_v40 = vmul.f32 %v1282_v39, %v1276_v33  ;;  %1526 = vmatpush.bf16.xpose.msra.mxu2 %v1517_v14 }
 0x6c1   : > { %v1285_v42 = vsel %vm1284_vm13, %v1276_v33, %v1283_v40 }
 0x6c2   : > { %v1288_v43 = vsel %vm1286_vm14, %v1287_v41, %v1285_v42 }
 0x6c3   : > { %v1289_v44 = vadd.f32 1e-06, %v1288_v43 }
 0x6c5   : > { %2415 = vrcp.f32 %v1289_v44  ;;  %v1301_v48 = vand.u32 2147483648, %v1289_v44  ;;  %v1299_v50 = vand.u32 2147483647, %v1289_v44  ;;  %vm1295_vm1 = vweird.f32 %v1289_v44 }
 0x6c7   : > { %v1302_v53 = vor.u32 1.1754944e-38, %v1301_v48  ;;  %vm1300_vm3 = vcmp.eq.f32.partialorder %v1299_v50, 8.507059e+37 }
 0x6cb   : > { %v2416_v45 = vpop.eup %2415 }
 0x6cc   : > { %v1291_v46 = vmul.f32 %v2416_v45, %v1289_v44  ;;  %vm1296_vm15 = vweird.f32 %v2416_v45 }
 0x6cd   : > { %vm1297_vm2 = vmor %vm1295_vm1, %vm1296_vm15 }
 0x6ce   : > { %v1292_v47 = vsub.f32 1.0, %v1291_v46 }
 0x6d0   : > { %v1293_v49 = vmul.f32 %v2416_v45, %v1292_v47 }
 0x6d2   : > { %v1294_v52 = vadd.f32 %v2416_v45, %v1293_v49 }
 0x6d4   : > { %v1298_v55 = vsel %vm1297_vm2, %v2416_v45, %v1294_v52 }
 0x6d5   : > { %v1303_v56 = vsel %vm1300_vm3, %v1302_v53, %v1298_v55 }
 0x6d6   : > { %v1306_v58 = vmul.f32 %v1305_v54, %v1303_v56 }
 0x6d8   : > { %v1308_v59 = vadd.f32 %v1307_v57, %v1306_v58 }
 0x6da   : > { %v1309_v60 = vpack.c.bf16 %v1308_v59, %v1308_v59 }
 0x6dc   : > { %2114 = vmatmul.msk.bf16.vlgmr.msra.gmra.mxu1 %vm888_vm0, %v1309_v60 }
 0x759   : > { %v1342_v5 = vpop.f32.mrf.mxu1 }
 0x75a   : > { %v1343_v6 = vadd.f32 %v2387_v4, %v1342_v5 }
 0x75c   : > { %v1388_v7 = vmul.f32 0.35355338, %v1343_v6 }
 0x75e   : > { %v1391_v9 = vpack.c.bf16 %v1388_v7, %v1388_v7 }
 0x760   : > { %1509 = vrot.lane.b32.xlu2 %v1391_v9, %s2963_s26  ;;  %1448 = vrot.lane.b32.xlu1 %v1391_v9, %s2959_s7 }
 0x761   : > { %2124 = vmatmul.msk.bf16.vlgmr.msrb.gmra.mxu2 %vm987_vm8, %v1391_v9  ;;  %v1344_v10 = vpop.f32.mrf.mxu1 }
 0x768   : > { %1572 = vrot.lane.b32.xlu1 %v3364_v1, %s2958_s19 }
 0x770   : > { %1570 = vrot.lane.b32.xlu1 %v1391_v9, %s2958_s19 }
 0x7ba   : > { %v1510_v15 = vpop.permute.xlu2 %1509 }
 0x7bb   : > { %2128 = vmatmul.msk.bf16.vlgmr.msra.gmra.mxu2 %vm987_vm8, %v1510_v15 }
 0x7d2   : > { %v1449_v16 = vpop.permute.xlu1 %1448 }
 0x7d3   : > { %2126 = vmatmul.msk.bf16.vlgmr.msrb.gmra.mxu1 %vm987_vm8, %v1449_v16 }
 0x7da   : > { %v1573_v17 = vpop.permute.xlu1 %1572 }
 0x7db   : > { %v1578_v20 = vsel %vm987_vm8, %v1573_v17, 0 }
 0x7dc   : > { %1587 = vmatpush.bf16.xpose.msra.mxu1 %v1578_v20 }
 0x7e2   : > { %v1571_v23 = vpop.permute.xlu1 %1570 }
 0x7e3   : > { %2130 = vmatmul.msk.bf16.vlgmr.msra.gmra.mxu1 %vm987_vm8, %v1571_v23 }
 0x7e4   : > { %v1408_v24 = vpop.f32.mrf.mxu2 }
 0x7e5   : > { %v1409_v25 = vadd.f32 %v1408_v24, %v1390_v22 }
 0x7e7   : > { %v1412_v26 = vsel %vm987_vm8, %v1409_v25, -inf }
 0x7e8   : > { %1413 = vmax.xlane.f32.xlu1 %v1412_v26 }
 0x7ec   : > { %v1410_v27 = vpop.f32.mrf.mxu2 }
 0x801   : > { %1425 = vrot.lane.b32.xlu1 %v3364_v1, %s2957_s27  ;;  %s882_s27 = scalar_lea.vmem %s3509_s2, %s2074_s3 }
 0x809   : > { %1544 = vrot.lane.b32.xlu1 %v3364_v1, %s2962_s29 }
 0x83e   : > { %v1528_v28 = vpop.f32.mrf.mxu2 }
 0x83f   : > { %v1529_v32 = vadd.f32 %v1528_v28, %v1390_v22 }
 0x841   : > { %v1532_v35 = vsel %vm987_vm8, %v1529_v32, -inf }
 0x846   : > { %v1530_v0 = vpop.f32.mrf.mxu2 }
 0x850   : > { %v1467_v29 = vpop.f32.mrf.mxu1 }
 0x851   : > { %v1468_v30 = vadd.f32 %v1467_v29, %v1390_v22  ;;  %v2180_v29 = vld [vmem:[#allocation19 + $0x8] sm:$0xff] }
 0x852   : > { %1654 = vmatpush.bf16.msrb.mxu2 %v2180_v29 }
 0x853   : > { %v1471_v31 = vsel %vm987_vm8, %v1468_v30, -inf }
 0x854   : > { %1472 = vmax.xlane.f32.xlu0 %v1471_v31 }
 0x858   : > { %v1469_v33 = vpop.f32.mrf.mxu1 }
 0x85b   : > { %v1414_v34 = vpop.xlane.xlu1 %1413 }
 0x85c   : > { %v1415_v36 = vsub.f32 %v1409_v25, %v1414_v34  ;;  %1533 = vmax.xlane.f32.xlu0 %v1532_v35 }
 0x85e   : > { %v1416_v37 = vmul.f32 1.442695, %v1415_v36  ;;  %v2388_v36 = vld [vmem:[#allocation21] ss:$0 sm:$0xff] }
 0x860   : > { %v1589_v38 = vpop.f32.mrf.mxu1  ;;  %2417 = vpow2.f32 %v1416_v37 }
 0x861   : > { %v1590_v39 = vadd.f32 %v1589_v38, %v1390_v22 }
 0x863   : > { %v1593_v40 = vsel %vm987_vm8, %v1590_v39, -inf }
 0x864   : > { %1594 = vmax.xlane.f32.xlu0 %v1593_v40 }
 0x866   : > { %v2418_v41 = vpop.eup %2417 }
 0x867   : > { %v1418_v43 = vsel %vm987_vm8, %v2418_v41, 0.0 }
 0x868   : > { %v1591_v42 = vpop.f32.mrf.mxu1 }
 0x86c   : > { %1419 = vadd.xlane.f32.xlu0 %v1418_v43 }
 0x873   : > { %v1426_v44 = vpop.permute.xlu1 %1425 }
 0x874   : > { %v1431_v45 = vsel %vm1024_vm9, %v1426_v44, 0 }
 0x875   : > { %1440 = vmatpush.bf16.msrb.mxu0 %v1431_v45 }
 0x87b   : > { %v1545_v46 = vpop.permute.xlu1 %1544 }
 0x87c   : > { %v1550_v47 = vsel %vm1024_vm9, %v1545_v46, 0 }
 0x87d   : > { %1559 = vmatpush.bf16.msra.mxu0 %v1550_v47  ;;  %v2182_v47 = vld [vmem:[#allocation22 + $0x8] sm:$0xff] }
 0x880   : > { %1483 = vrot.lane.b32.xlu0 %v3364_v1, %s2960_s1  ;;  %s3508_s1 = sld [smem:[#allocation45_spill]] }
 0x8c7   : > { %v1473_v48 = vpop.xlane.xlu0 %1472 }
 0x8c8   : > { %v1474_v49 = vsub.f32 %v1468_v30, %v1473_v48  ;;  %v2179_v30 = vld [vmem:[#allocation19] sm:$0xff]  ;;  %v2181_v48 = vld [vmem:[#allocation22] sm:$0xff] }
 0x8c9   : > { %1655 = vmatpush.bf16.msrb.mxu2 %v2179_v30 }
 0x8ca   : > { %v1475_v50 = vmul.f32 1.442695, %v1474_v49 }
 0x8cc   : > { %2419 = vpow2.f32 %v1475_v50 }
 0x8cf   : > { %v1534_v51 = vpop.xlane.xlu0 %1533 }
 0x8d0   : > { %v1535_v52 = vsub.f32 %v1529_v32, %v1534_v51 }
 0x8d2   : > { %v2420_v53 = vpop.eup %2419  ;;  %v1536_v54 = vmul.f32 1.442695, %v1535_v52 }
 0x8d3   : > { %v1477_v55 = vsel %vm987_vm8, %v2420_v53, 0.0 }
 0x8d4   : > { %2421 = vpow2.f32 %v1536_v54  ;;  %1478 = vadd.xlane.f32.xlu2 %v1477_v55 }
 0x8d7   : > { %v1595_v56 = vpop.xlane.xlu0 %1594 }
 0x8d8   : > { %v1596_v57 = vsub.f32 %v1590_v39, %v1595_v56  ;;  %v2185_v56 = vld [vmem:[%s3508_s1 + $0x10] sm:$0xff] }
 0x8da   : > { %v2422_v58 = vpop.eup %2421  ;;  %v1597_v59 = vmul.f32 1.442695, %v1596_v57 }
 0x8db   : > { %v1538_v60 = vsel %vm987_vm8, %v2422_v58, 0.0 }
 0x8dc   : > { %2423 = vpow2.f32 %v1597_v59  ;;  %1539 = vadd.xlane.f32.xlu2 %v1538_v60 }
 0x8df   : > { %v1420_v61 = vpop.xlane.xlu0 %1419 }
 0x8e0   : > { %2425 = vrcp.f32 %v1420_v61 }
 0x8e2   : > { %v2424_v62 = vpop.eup %2423 }
 0x8e3   : > { %v1599_v63 = vsel %vm987_vm8, %v2424_v62, 0.0 }
 0x8e4   : > { %1600 = vadd.xlane.f32.xlu0 %v1599_v63 }
 0x8e6   : > { %v2426_v2 = vpop.eup %2425 }
 0x8e7   : > { %v1422_v3 = vmul.f32 %v2426_v2, %v2418_v41 }
 0x8e9   : > { %v1423_v4 = vpack.c.bf16 %v1422_v3, %v1422_v3 }
 0x8eb   : > { %2125 = vmatmul.msk.bf16.vlgmr.msrb.gmra.mxu0 %vm987_vm8, %v1423_v4 }
 0x8ec   : > { %1741 = vmatpush.bf16.msrb.mxu0 %v2182_v47 }
 0x8f0   : > { %1742 = vmatpush.bf16.msrb.mxu0 %v2181_v48 }
 0x8f2   : > { %v1484_v5 = vpop.permute.xlu0 %1483 }
 0x8f3   : > { %v1489_v6 = vsel %vm1024_vm9, %v1484_v5, 0 }
 0x8f4   : > { %1605 = vrot.lane.b32.xlu2 %v3364_v1, %s2961_s5  ;;  %1498 = vmatpush.bf16.msrb.mxu3 %v1489_v6 }
 0x947   : > { %v1479_v7 = vpop.xlane.xlu2 %1478 }
 0x948   : > { %2427 = vrcp.f32 %v1479_v7 }
 0x94e   : > { %v2428_v9 = vpop.eup %2427 }
 0x94f   : > { %v1481_v10 = vmul.f32 %v2428_v9, %v2420_v53  ;;  %v1540_v11 = vpop.xlane.xlu2 %1539 }
 0x950   : > { %2429 = vrcp.f32 %v1540_v11 }
 0x951   : > { %v1482_v12 = vpack.c.bf16 %v1481_v10, %v1481_v10 }
 0x953   : > { %2127 = vmatmul.msk.bf16.vlgmr.msrb.gmra.mxu3 %vm987_vm8, %v1482_v12 }
 0x956   : > { %v2430_v13 = vpop.eup %2429 }
 0x957   : > { %v1542_v14 = vmul.f32 %v2430_v13, %v2422_v58  ;;  %v1606_v15 = vpop.permute.xlu2 %1605  ;;  %v1601_v16 = vpop.xlane.xlu0 %1600 }
 0x958   : > { %v1611_v17 = vsel %vm1024_vm9, %v1606_v15, 0  ;;  %2431 = vrcp.f32 %v1601_v16 }
 0x959   : > { %v1543_v18 = vpack.c.bf16 %v1542_v14, %v1542_v14  ;;  %1620 = vmatpush.bf16.msra.mxu3 %v1611_v17  ;;  %v2184_v17 = vld [vmem:[%s3508_s1 + $0x8] sm:$0xff] }
 0x95b   : > { %2129 = vmatmul.msk.bf16.vlgmr.msra.gmra.mxu0 %vm987_vm8, %v1543_v18  ;;  %v2183_v18 = vld [vmem:[%s3508_s1] sm:$0xff] }
 0x95e   : > { %v2432_v1 = vpop.eup %2431 }
 0x95f   : > { %v1603_v20 = vmul.f32 %v2432_v1, %v2424_v62  ;;  %v2389_v1 = vld [vmem:[#allocation24] ss:$0 sm:$0xff] }
 0x961   : > { %v1604_v21 = vpack.c.bf16 %v1603_v20, %v1603_v20 }
 0x963   : > { %2131 = vmatmul.msk.bf16.vlgmr.msra.gmra.mxu3 %vm987_vm8, %v1604_v21 }
 0x968   : > { %v1442_v22 = vpop.f32.mrf.mxu0 }
 0x969   : > { %1446 = vst.msk [vmem:[#allocation2] sm:$0xff] %vm987_vm8, %v1442_v22 }
 0x970   : > { %v1444_v23 = vpop.f32.mrf.mxu0 }
 0x9d6   : > { %v1500_v24 = vpop.f32.mrf.mxu3 }
 0x9d7   : > { %1505 = vrot.lane.b32.xlu1 %v1500_v24, %s2968_s21  ;;  %s2141_s21 = sld [smem:[#allocation6 + $0x100]] }
 0x9d8   : > { %v1561_v25 = vpop.f32.mrf.mxu0 }
 0x9dd   : > { %v1706_v6 = vstv %s2141_s21 }
 0x9de   : > { %v1502_v26 = vpop.f32.mrf.mxu3 }
 0x9df   : > { %1566 = vrot.lane.b32.xlu1 %v1561_v25, %s2970_s0  ;;  %v2390_v25 = vld [vmem:[#allocation25] ss:$0 sm:$0xff] }
 0x9e0   : > { %v1563_v27 = vpop.f32.mrf.mxu0 }
 0x9e6   : > { %v1622_v28 = vpop.f32.mrf.mxu3 }
 0x9e7   : > { %1627 = vrot.lane.b32.xlu0 %v1622_v28, %s2969_s22  ;;  %s2142_s22 = sld [smem:[#allocation6 + $0x101]] }
 0x9ed   : > { %v1709_v13 = vstv %s2142_s22 }
 0x9ee   : > { %v1624_v0 = vpop.f32.mrf.mxu3 }
 0xa49   : > { %v1506_v31 = vpop.permute.xlu1 %1505 }
 0xa4a   : > { %1508 = vst.msk [vmem:[#allocation2] sm:$0xff] %vm1103_vm10, %v1506_v31  ;;  %vm1786_vm10 = vcmask 523264  }
 0xa51   : > { %v1567_v32 = vpop.permute.xlu1 %1566 }
 0xa52   : > { %1569 = vst.msk [vmem:[#allocation2] sm:$0xff] %vm1165_vm11, %v1567_v32 }
 0xa59   : > { %v1628_v33 = vpop.permute.xlu0 %1627 }
 0xa5a   : > { %1630 = vst.msk [vmem:[#allocation2] sm:$0xff] %vm1227_vm12, %v1628_v33 }
 0xa61   : > { %v1631_v34 = vld [vmem:[#allocation2] sm:$0xff] }
 0xa62   : > { %v1632_v35 = vpack.c.bf16 %v1631_v34, %v1631_v34 }
 0xa64   : > { %2140 = vmatmul.msk.bf16.vlgmr.msrb.gmra.mxu2 %vm888_vm0, %v1632_v35 }
 0xae7   : > { %v1657_v37 = vpop.f32.mrf.mxu2 }
 0xae8   : > { %v1661_v38 = vadd.f32 %v1657_v37, %v3353_v19 }
 0xaea   : > { %v3421_v39 = vadd.f32 %v2388_v36, %v1661_v38 }
 0xaec   : > { %v1669_v40 = vsel %vm888_vm0, %v3421_v39, 0.0 }
 0xaed   : > { %1670 = vadd.xlane.f32.xlu2 %v1669_v40 }
 0xaef   : > { %v1659_v41 = vpop.f32.mrf.mxu2 }
 0xb60   : > { %v1671_v42 = vpop.xlane.xlu2 %1670 }
 0xb61   : > { %v1672_v43 = vmul.f32 %v1671_v42, %v3293_v8  ;;  %v2186_v8 = vld [vmem:[%s3508_s1 + $0x18] sm:$0xff] }
 0xb62   : > { %1794 = vmatpush.bf16.msrb.mxu1 %v2186_v8 }
 0xb63   : > { %v1673_v44 = vsub.f32 %v3421_v39, %v1672_v43 }
 0xb65   : > { %v1674_v45 = vmul.f32 %v1673_v44, %v1673_v44  ;;  %v1707_v10 = vmul.f32 %v1706_v6, %v1673_v44 }
 0xb66   : > { %1795 = vmatpush.bf16.msrb.mxu1 %v2185_v56 }
 0xb67   : > { %v1675_v46 = vsel %vm888_vm0, %v1674_v45, 0.0 }
 0xb68   : > { %1676 = vadd.xlane.f32.xlu1 %v1675_v46 }
 0xb6a   : > { %1796 = vmatpush.bf16.msrb.mxu1 %v2184_v17 }
 0xb6e   : > { %1797 = vmatpush.bf16.msrb.mxu1 %v2183_v18 }
 0xbdb   : > { %v1677_v19 = vpop.xlane.xlu1 %1676 }
 0xbdc   : > { %v1678_v49 = vmul.f32 0.032258064, %v1677_v19 }
 0xbde   : > { %2433 = vrsqrt.f32 %v1678_v49  ;;  %vm1686_vm4 = vcmp.eq.f32.partialorder %v1678_v49, inf  ;;  %v1689_v58 = vand.u32 2147483648, %v1678_v49  ;;  %vm1688_vm5 = vcmp.eq.f32.partialorder %v1678_v49, 0.0 }
 0xbe4   : > { %v2434_v50 = vpop.eup %2433 }
 0xbe5   : > { %v1680_v51 = vmul.f32 %v2434_v50, %v1678_v49 }
 0xbe7   : > { %v1681_v52 = vmul.f32 %v2434_v50, %v1680_v51 }
 0xbe9   : > { %v1682_v53 = vmul.f32 0.5, %v1681_v52 }
 0xbeb   : > { %v1683_v54 = vsub.f32 1.5, %v1682_v53 }
 0xbed   : > { %v1684_v55 = vmul.f32 %v2434_v50, %v1683_v54 }
 0xbef   : > { %v1685_v57 = vmul.f32 %v1684_v55, %v1678_v49 }
 0xbf1   : > { %v1687_v59 = vsel %vm1686_vm4, %v1678_v49, %v1685_v57 }
 0xbf2   : > { %v1690_v60 = vsel %vm1688_vm5, %v1689_v58, %v1687_v59 }
 0xbf3   : > { %v1691_v61 = vadd.f32 1e-06, %v1690_v60 }
 0xbf5   : > { %2435 = vrcp.f32 %v1691_v61  ;;  %v1703_v3 = vand.u32 2147483648, %v1691_v61  ;;  %v1701_v5 = vand.u32 2147483647, %v1691_v61  ;;  %vm1697_vm7 = vweird.f32 %v1691_v61 }
 0xbf7   : > { %v1704_v9 = vor.u32 1.1754944e-38, %v1703_v3  ;;  %vm1702_vm9 = vcmp.eq.f32.partialorder %v1701_v5, 8.507059e+37 }
 0xbfb   : > { %v2436_v62 = vpop.eup %2435 }
 0xbfc   : > { %v1693_v63 = vmul.f32 %v2436_v62, %v1691_v61  ;;  %vm1698_vm6 = vweird.f32 %v2436_v62 }
 0xbfd   : > { %vm1699_vm8 = vmor %vm1697_vm7, %vm1698_vm6 }
 0xbfe   : > { %v1694_v2 = vsub.f32 1.0, %v1693_v63 }
 0xc00   : > { %v1695_v4 = vmul.f32 %v2436_v62, %v1694_v2 }
 0xc02   : > { %v1696_v7 = vadd.f32 %v2436_v62, %v1695_v4 }
 0xc04   : > { %v1700_v11 = vsel %vm1699_vm8, %v2436_v62, %v1696_v7 }
 0xc05   : > { %v1705_v12 = vsel %vm1702_vm9, %v1704_v9, %v1700_v11 }
 0xc06   : > { %v1708_v14 = vmul.f32 %v1707_v10, %v1705_v12 }
 0xc08   : > { %v1710_v15 = vadd.f32 %v1709_v13, %v1708_v14 }
 0xc0a   : > { %v1711_v16 = vpack.c.bf16 %v1710_v15, %v1710_v15 }
 0xc0c   : > { %2151 = vmatmul.msk.bf16.vlgmr.msrb.gmra.mxu0 %vm888_vm0, %v1711_v16 }
 0xc89   : > { %v1744_v20 = vpop.f32.mrf.mxu0 }
 0xc8a   : > { %v1745_v21 = vadd.f32 %v2389_v1, %v1744_v20 }
 0xc8c   : > { %v1748_v22 = vmax.f32 %v1745_v21, 0.0 }
 0xc8e   : > { %v1749_v23 = vpack.c.bf16 %v1748_v22, %v1748_v22 }
 0xc90   : > { %2168 = vmatmul.msk.bf16.vlgmr.msrb.gmra.mxu1 %vm1786_vm10, %v1749_v23 }
 0xc91   : > { %v1746_v24 = vpop.f32.mrf.mxu0 }
 0xd0d   : > { %v1799_v26 = vpop.f32.mrf.mxu1 }
 0xd0e   : > { %v1800_v27 = vadd.f32 %v2390_v25, %v1799_v26 }
 0xd10   : > { %v1803_v28 = vadd.f32 %v1800_v27, %v3421_v39 }
 0xd12   : > { %1804 = vst.msk [vmem:[%s882_s27] sm:$0xff] %vm888_vm0, %v1803_v28 }
 0xd15   : > { %v1801_v0 = vpop.f32.mrf.mxu1 }
 0xd16 PF: > { %p37_p1 = scmp.ge.s32.totalorder %s3198_s17, 4   ;;  %s3510_s0 = smov %s2930_s30 }
 0xd17   : > { %s3511_s30 = smov %s2934_s20  ;;  %s3512_s20 = smov %s3209_s9 }
 0xd18   : > { %s3513_s21 = smov %s3198_s17  ;;  %39 = sbr.rel (!%p37_p1) target bundleno = 22 (0x16), region = 202 }
 0xd1d   :  { %1824 = vsyncpa [#allocation4], 1 }
 0xd1e   :  { %1826 = vsyncpa [#allocation4 + $0x1], 1 }
 0xd1f   :  { %1827 = vsyncpa [#allocation8], 1 }
 0xd20   :  { %1828 = vsyncpa [#allocation11], 1 }
 0xd21   :  { %1829 = vsyncpa [#allocation14], 1 }
 0xd22   :  { %1830 = vsyncpa [#allocation17], 1 }
 0xd23   :  { %1831 = vsyncpa [#allocation20], 1 }
 0xd24   :  { %1832 = vsyncpa [#allocation23], 1 }
 0xd25   :  { %1833 = vsyncpa [#allocation26], 1 }
 0xd26   :  { %1834 = vsyncpa [#allocation5], 1 }
 0xd27   :  { %1836 = vsyncpa [#allocation5 + $0x1], 1 }

// kernel: _lambda_.3
= control target key start
LH: loop header
LB: loop body
LE: loop exit
PB: predicated region body
PF: predicated region fallthrough
CT: control target
= control target key end

     0   :  { %s3334_s0 = inlined_call_operand.hbm [shape: f32[2,8,32], index: 0, kind: input, shape index: {}]   ;;  %s3335_s1 = inlined_call_operand.hbm [shape: f32[2,8,32], index: 1, kind: input, shape index: {}]   ;;  %s3336_s2 = inlined_call_operand.vmem [shape: bf16[2,1,8,8], index: 2, kind: input, shape index: {}]   ;;  %s3337_s3 = inlined_call_operand.vmem [shape: bf16[2,1,1,8], index: 3, kind: input, shape index: {}]   ;;  %s3338_s4 = inlined_call_operand.vmem [shape: f32[3,2], index: 4, kind: input, shape index: {}]   ;;  %s3339_s5 = inlined_call_operand.hbm [shape: bf16[32,96], index: 5, kind: input, shape index: {}]   ;;  %s3340_s6 = inlined_call_operand.hbm [shape: f32[1,96], index: 6, kind: input, shape index: {}]   ;;  %s3341_s7 = inlined_call_operand.hbm [shape: bf16[32,32], index: 7, kind: input, shape index: {}]   ;;  %s3342_s8 = inlined_call_operand.hbm [shape: f32[1,32], index: 8, kind: input, shape index: {}]   ;;  %s3343_s9 = inlined_call_operand.hbm [shape: bf16[32,32], index: 9, kind: input, shape index: {}]   ;;  %s3344_s10 = inlined_call_operand.hbm [shape: f32[1,32], index: 10, kind: input, shape index: {}]   ;;  %s3345_s11 = inlined_call_operand.hbm [shape: bf16[32,64], index: 11, kind: input, shape index: {}]   ;;  %s3346_s12 = inlined_call_operand.hbm [shape: f32[1,64], index: 12, kind: input, shape index: {}]   ;;  %s3347_s13 = inlined_call_operand.hbm [shape: bf16[32,32], index: 13, kind: input, shape index: {}]   ;;  %s3348_s14 = inlined_call_operand.vmem [shape: f32[1,32], index: 14, kind: input, shape index: {}]   ;;  %s3349_s15 = inlined_call_operand.vmem [shape: bf16[32,64], index: 15, kind: input, shape index: {}]   ;;  %s3350_s16 = inlined_call_operand.vmem [shape: f32[1,64], index: 16, kind: input, shape index: {}]   ;;  %s3351_s17 = inlined_call_operand.hbm [shape: bf16[64,32], index: 17, kind: input, shape index: {}]   ;;  %s3352_s18 = inlined_call_operand.vmem [shape: f32[1,32], index: 18, kind: input, shape index: {}]   ;;  %s3353_s19 = inlined_call_operand.vmem [shape: f32[2,8,32], index: 19, kind: output, shape index: {}]  }
   0x1   :  { %3357 = sst [smem:[#allocation33_spill]] %s3334_s0 }
   0x2   :  { %3358 = sst [smem:[#allocation34_spill]] %s3335_s1 }
   0x3   :  { %3359 = sst [smem:[#allocation35_spill]] %s3336_s2 }
   0x4   :  { %3360 = sst [smem:[#allocation36_spill]] %s3337_s3 }
   0x5   :  { %3361 = sst [smem:[#allocation37_spill]] %s3338_s4 }
   0x6   :  { %3362 = sst [smem:[#allocation38_spill]] %s3339_s5 }
   0x7   :  { %3363 = sst [smem:[#allocation39_spill]] %s3340_s6 }
   0x8   :  { %3364 = sst [smem:[#allocation40_spill]] %s3341_s7 }
   0x9   :  { %3365 = sst [smem:[#allocation41_spill]] %s3342_s8 }
   0xa   :  { %3366 = sst [smem:[#allocation42_spill]] %s3343_s9 }
   0xb   :  { %3367 = sst [smem:[#allocation43_spill]] %s3344_s10 }
   0xc   :  { %3368 = sst [smem:[#allocation44_spill]] %s3345_s11 }
   0xd   :  { %3369 = sst [smem:[#allocation45_spill]] %s3349_s15 }
   0xe   :  { %3370 = sst [smem:[#allocation46_spill]] %s3350_s16 }
   0xf   :  { %3371 = sst [smem:[#allocation47_spill]] %s3352_s18 }
  0x10   :  { %3372 = sst [smem:[#allocation48_spill]] %s3353_s19 }
  0x11   :  { %24 = vsyncpa [#allocation4], 0 }
  0x12   :  { %26 = vsyncpa [#allocation4 + $0x1], 0 }
  0x13   :  { %27 = vsyncpa [#allocation7], 0 }
  0x14   :  { %29 = vsyncpa [#allocation7 + $0x1], 0 }
  0x15   :  { %30 = vsyncpa [#allocation5], 0 }
  0x16   :  { %31 = vsyncpa [#allocation11], 0 }
  0x17   :  { %32 = vsyncpa [#allocation14], 0 }
  0x18   :  { %33 = vsyncpa [#allocation17], 0 }
  0x19   :  { %34 = vsyncpa [#allocation20], 0 }
  0x1a   :  { %35 = vsyncpa [#allocation23], 0  ;;  %s2939_s0 = smov 0   ;;  %s2941_s30 = smov 0  }
  0x1b   :  { %s2943_s20 = smov 0   ;;  %s2945_s21 = smov 0  }
  0x1c LB: > { %s3373_s5 = sld [smem:[#allocation38_spill]]  ;;  %s2963_s23 = sadd.s32 4294967295, %s2809_s21   ;;  %s2809_s21 = sphi %s2945_s21, %s3396_s21   ;;  %s2805_s20 = sphi %s2943_s20, %s3395_s20   ;;  %s2801_s30 = sphi %s2941_s30, %s3394_s30   ;;  %s2797_s0 = sphi %s2939_s0, %s3393_s0  }
  0x1d   : > { %p2000_p0 = scmp.ge.s32.totalorder %s2809_s21, 1  ;;  %p62_p1 = scmp.eq.s32.totalorder %s2963_s23, 0 }
  0x1e   : > { %p491_p2 = scmp.lt.s32.totalorder %s2809_s21, 3  ;;  %s2811_s25 = smov [#allocation9]  }
  0x1f   : > { %s514_s3 = sshll.u32 %s2811_s25, 4  ;;  %s3375_s6 = sld [smem:[#allocation39_spill]]  ;;  %s515_s3 = int_to_ptr.vmem [resolvable:$true] %s514_s3 }
  0x20   : > { %p2968_p3 = pnand %p2000_p0, %p491_p2  ;;  %s3377_s8 = sld [smem:[#allocation41_spill]] }
  0x21   : > { %s2813_s18 = smov 64   ;;  %s2814_s16 = smov 4  }
  0x22   : > { %s512_s2 = sshll.u32 %s3373_s5, 4  ;;  %p2191_p4 = pneg %p2968_p3  ;;  %s513_s2 = int_to_ptr.hbm [resolvable:$true] %s512_s2 }
  0x23   : > { %s2812_s5 = smov [#allocation10]   ;;  %s3378_s10 = sld [smem:[#allocation43_spill]] }
  0x24   : > { %p2979_p5 = pnand %p2191_p4, %p62_p1  ;;  %s529_s19 = sshll.u32 %s2812_s5, 4  ;;  %s530_s19 = int_to_ptr.vmem [resolvable:$true] %s529_s19 }
  0x25   : > { %s527_s28 = sshll.u32 %s3375_s6, 4  ;;  %s2815_s1 = smov [#allocation13]   ;;  %s528_s28 = int_to_ptr.hbm [resolvable:$true] %s527_s28 }
  0x26   : > { %s553_s25 = sshll.u32 %s3377_s8, 4  ;;  %s555_s22 = sshll.u32 %s2815_s1, 4  ;;  %s554_s25 = int_to_ptr.hbm [resolvable:$true] %s553_s25  ;;  %s556_s22 = int_to_ptr.vmem [resolvable:$true] %s555_s22 }
  0x27   : > { %2197 = dma.hbm_to_vmem [thread:$0]  (!%p2979_p5), %s513_s2, 256, %s515_s3, [#allocation7], %s2813_s18, %s2813_s18, %s2814_s16  }
  0x28   : > { %2200 = dma.hbm_to_vmem [thread:$0]  (!%p2979_p5), %s528_s28, 16, %s530_s19, [#allocation11]  }
  0x29   : > { %s579_s6 = sshll.u32 %s3378_s10, 4  ;;  %s2816_s5 = smov [#allocation16]   ;;  %s580_s6 = int_to_ptr.hbm [resolvable:$true] %s579_s6 }
  0x2a   : > { %2206 = dma.hbm_to_vmem [thread:$0]  (!%p2979_p5), %s554_s25, 16, %s556_s22, [#allocation14]  }
  0x2b   : > { %s581_s8 = sshll.u32 %s2816_s5, 4  ;;  %s605_s3 = sshll.u32 %s3346_s12, 4  ;;  %s582_s8 = int_to_ptr.vmem [resolvable:$true] %s581_s8  ;;  %s606_s3 = int_to_ptr.hbm [resolvable:$true] %s605_s3 }
  0x2c   : > { %2212 = dma.hbm_to_vmem [thread:$0]  (!%p2979_p5), %s580_s6, 16, %s582_s8, [#allocation17]  }
  0x2d   : > { %s3379_s4 = sld [smem:[#allocation37_spill]]  ;;  %s2817_s27 = smov [#allocation19]  }
  0x2e   : > { %s607_s1 = sshll.u32 %s2817_s27, 4  ;;  %s2818_s25 = smov [#allocation8]   ;;  %s608_s1 = int_to_ptr.vmem [resolvable:$true] %s607_s1 }
  0x2f   : > { %2218 = dma.hbm_to_vmem [thread:$0]  (!%p2979_p5), %s606_s3, 16, %s608_s1, [#allocation20]  }
  0x30   : > { %s3380_s7 = sld [smem:[#allocation40_spill]]  ;;  %s2819_s6 = smov [#allocation12]  }
  0x31   : > { %s540_s8 = sshll.u32 %s2819_s6, 4  ;;  %s3381_s9 = sld [smem:[#allocation42_spill]]  ;;  %s541_s8 = int_to_ptr.vmem [resolvable:$true] %s540_s8 }
  0x32   : > { %s2820_s3 = smov [#allocation15]   ;;  %s3382_s11 = sld [smem:[#allocation44_spill]] }
  0x33   : > { %s503_s26 = sshll.u32 %s3379_s4, 4  ;;  %s2821_s6 = smov [#allocation18]   ;;  %s504_s26 = int_to_ptr.vmem [resolvable:$true] %s503_s26 }
  0x34   : > { %2194 = dma.vmem_to_smem (!%p2979_p5), %s504_s26, 64, %s2818_s25, [#allocation5]  }
  0x35   : > { %s566_s26 = sshll.u32 %s2820_s3, 4  ;;  %s2822_s2 = smov [#allocation21]   ;;  %s567_s26 = int_to_ptr.vmem [resolvable:$true] %s566_s26 }
  0x36   : > { %s538_s5 = sshll.u32 %s3380_s7, 4  ;;  %s618_s19 = sshll.u32 %s2822_s2, 4  ;;  %s539_s5 = int_to_ptr.hbm [resolvable:$true] %s538_s5  ;;  %s619_s19 = int_to_ptr.vmem [resolvable:$true] %s618_s19 }
  0x37   : > { %s564_s28 = sshll.u32 %s3381_s9, 4  ;;  %s2823_s27 = smov [#allocation22]   ;;  %s565_s28 = int_to_ptr.hbm [resolvable:$true] %s564_s28 }
  0x38   : > { %2203 = dma.hbm_to_vmem [thread:$0]  (!%p2979_p5), %s539_s5, 256, %s541_s8, [#allocation11], %s2813_s18, %s2813_s18, %s2814_s16  }
  0x39   : > { %s590_s25 = sshll.u32 %s3382_s11, 4  ;;  %s616_s5 = sshll.u32 %s3347_s13, 4  ;;  %s591_s25 = int_to_ptr.hbm [resolvable:$true] %s590_s25  ;;  %s617_s5 = int_to_ptr.hbm [resolvable:$true] %s616_s5 }
  0x3a   : > { %2209 = dma.hbm_to_vmem [thread:$0]  (!%p2979_p5), %s565_s28, 256, %s567_s26, [#allocation14], %s2813_s18, %s2813_s18, %s2814_s16  }
  0x3b   : > { %s592_s8 = sshll.u32 %s2821_s6, 4  ;;  %s639_s26 = sshll.u32 %s3351_s17, 4  ;;  %s593_s8 = int_to_ptr.vmem [resolvable:$true] %s592_s8  ;;  %s640_s26 = int_to_ptr.hbm [resolvable:$true] %s639_s26 }
  0x3c   : > { %2215 = dma.hbm_to_vmem [thread:$0]  (!%p2979_p5), %s591_s25, 256, %s593_s8, [#allocation17], %s2813_s18, %s2813_s18, %s2814_s16  }
  0x3d   : > { %2221 = dma.hbm_to_vmem [thread:$0]  (!%p2979_p5), %s617_s5, 256, %s619_s19, [#allocation20], %s2813_s18, %s2813_s18, %s2814_s16  }
  0x3e   : > { %s641_s1 = sshll.u32 %s2823_s27, 4  ;;  %s3051_s25 = sadd.s32 1, %s2809_s21   ;;  %s642_s1 = int_to_ptr.vmem [resolvable:$true] %s641_s1 }
  0x3f   : > { %2224 = dma.hbm_to_vmem [thread:$0]  (!%p2979_p5), %s640_s26, 512, %s642_s1, [#allocation23], %s2813_s18, %s2813_s18, %s2814_s16  }
  0x40   : > { %s45_s15 = ssub.s32 %s2809_s21, %s3051_s25  ;;  %s48_s22 = sadd.s32 1, %s2805_s20 }
  0x41   : > { %p46_p6 = scmp.eq.s32.totalorder %s45_s15, 0  ;;  %p55_p7 = scmp.ne.s32.totalorder %s2805_s20, %s2801_s30 }
  0x42   : > { %p56_p8 = scmp.eq.s32.totalorder %s2809_s21, 0  ;;  %p61_p9 = scmp.ne.s32.totalorder %s2801_s30, %s2797_s0 }
  0x43   : > { %s3062_s5 = scalar_select %p46_p6, %s2805_s20, %s48_s22  }
  0x44   : > { %p57_p10 = por %p56_p8, %p55_p7  ;;  %p3066_p11 = por %p62_p1, %p61_p9 }
  0x45   : > { %p2243_p12 = scmp.lt.s32.totalorder %s2809_s21, 2  ;;  %s658_s16 = sand.u32 1, %s2805_s20  }
  0x46   : > { %s3072_s18 = sshll.u32 %s658_s16, 3  ;;  %s2014_s6 = sshll.u32 %s2809_s21, 3 }
  0x47   : > { %s3384_s19 = sld [smem:[#allocation33_spill]]  ;;  %s662_s0 = scalar_lea.vmem [#allocation3], %s3072_s18 }
  0x48   : > { %s670_s3 = sshll.u32 %s662_s0, 4  ;;  %p3079_p13 = pnand %p2243_p12, %p57_p10  ;;  %s671_s3 = int_to_ptr.vmem [resolvable:$true] %s670_s3 }
  0x49   : > { %s3386_s22 = sld [smem:[#allocation34_spill]]  ;;  %s677_s7 = sand.u32 1, %s2809_s21  }
  0x4a   : > { %s659_s9 = scalar_lea.sflag [#allocation4], %s658_s16  ;;  %p2687_p2 = pneg %p3079_p13 }
  0x4d   : > { %s666_s28 = scalar_lea.hbm %s3384_s19, %s2014_s6  ;;  %s2690_s0 = scalar_lea.hbm %s3384_s19, 16 }
  0x4e   : > { %s668_s26 = sshll.u32 %s666_s28, 4  ;;  %s669_s26 = int_to_ptr.hbm [resolvable:$true] %s668_s26 }
  0x4f   : > { %s685_s4 = scalar_lea.hbm %s3386_s22, %s2014_s6  ;;  %s2683_s10 = sshra.s32 %s669_s26, 4  ;;  %s2684_s10 = int_to_ptr.hbm [resolvable:$true] %s2683_s10 }
  0x50   : > { %s2685_s8 = scalar_lea.hbm %s2684_s10, 8  ;;  %p2691_p6 = scmp.lt.s32.totalorder %s2684_s10, %s3384_s19 }
  0x51   : > { %p2686_p0 = scmp.ne.s32.totalorder %s2684_s10, %s2685_s8  ;;  %p2692_p7 = scmp.lt.s32.totalorder %s2690_s0, %s2685_s8 }
  0x53   : > { %p2688_p4 = pnand %p2687_p2, %p2686_p0  ;;  %p2693_p8 = por %p2692_p7, %p2691_p6 }
  0x55   : > { %p2689_p5 = pneg %p2688_p4 }
  0x57   : > { %p2694_p9 = pnand %p2693_p8, %p2689_p5 }
  0x59   : > { %2697 = shalt.err (!%p2694_p9)
}
  0x5a   : > { %2228 = dma.hbm_to_vmem [thread:$0]  (!%p3079_p13), %s669_s26, 128, %s671_s3, %s659_s9  }
  0x5b   : > { %s687_s21 = sshll.u32 %s685_s4, 4  ;;  %s681_s16 = scalar_lea.vmem [#allocation6], %s3072_s18  ;;  %s688_s21 = int_to_ptr.hbm [resolvable:$true] %s687_s21 }
  0x5c   : > { %s689_s6 = sshll.u32 %s681_s16, 4  ;;  %s678_s2 = scalar_lea.sflag [#allocation7], %s677_s7  ;;  %s690_s6 = int_to_ptr.vmem [resolvable:$true] %s689_s6 }
  0x5d   : > { %s2713_s28 = sshra.s32 %s688_s21, 4  ;;  %s2720_s0 = scalar_lea.hbm %s3386_s22, 16  ;;  %s2714_s28 = int_to_ptr.hbm [resolvable:$true] %s2713_s28 }
  0x5e   : > { %s2715_s11 = scalar_lea.hbm %s2714_s28, 8  ;;  %p2721_p4 = scmp.lt.s32.totalorder %s2714_s28, %s3386_s22 }
  0x5f   : > { %p2716_p10 = scmp.ne.s32.totalorder %s2714_s28, %s2715_s11  ;;  %p2722_p5 = scmp.lt.s32.totalorder %s2720_s0, %s2715_s11 }
  0x61   : > { %p2718_p12 = pnand %p2716_p10, %p2687_p2  ;;  %p2723_p6 = por %p2722_p5, %p2721_p4 }
  0x63   : > { %p2719_p0 = pneg %p2718_p12 }
  0x65   : > { %p2724_p7 = pnand %p2723_p6, %p2719_p0 }
  0x67   : > { %2727 = shalt.err (!%p2724_p7)
}
  0x68   : > { %2231 = dma.hbm_to_vmem [thread:$0]  (!%p3079_p13), %s688_s21, 128, %s690_s6, %s678_s2  }
  0x69   : > { %711 = sbr.rel (%p2968_p3) target bundleno = 3357 (0xd1d), region = 96  ;;  %s713_s4 = sand.u32 (!%p2968_p3), 1, %s2801_s30  }
  0x6a   : > { %s3115_s7 = sshll.u32 (!%p2968_p3), %s713_s4, 3  ;;  %s714_s18 = scalar_lea.sflag (!%p2968_p3), [#allocation4], %s713_s4 }
  0x6b   : > { %s717_s3 = scalar_lea.vmem (!%p2968_p3), [#allocation3], %s3115_s7 }
  0x6e   : > { %2760 = dma.done.wait (%p3066_p11), %s714_s18, 128  }
  0x6f   : > { %2762 = vsyncadd (%p3066_p11), %s714_s18, 4294967168  ;;  %s723_s11 = sand.u32 1, %s2963_s23   ;;  %s727_s24 = scalar_lea.vmem [#allocation6], %s3115_s7 }
  0x70   : > { %s724_s26 = scalar_lea.sflag [#allocation7], %s723_s11 }
  0x71   : > { %2764 = dma.done.wait (%p3066_p11), %s724_s26, 128  }
  0x72   : > { %2766 = vsyncadd (%p3066_p11), %s724_s26, 4294967168 }
  0x73   : > { %2768 = dma.done.wait (%p62_p1), [#allocation5], 64  }
  0x74   : > { %2770 = vsyncadd (%p62_p1), [#allocation5], 4294967232 }
  0x75   : > { %2772 = dma.done.wait (%p62_p1), [#allocation7], 256  }
  0x76   : > { %2774 = vsyncadd (%p62_p1), [#allocation7], 4294967040 }
  0x77   : > { %2776 = dma.done.wait (%p62_p1), [#allocation11], 272  }
  0x78   : > { %2778 = vsyncadd (%p62_p1), [#allocation11], 4294967024 }
  0x79   : > { %2780 = dma.done.wait (%p62_p1), [#allocation14], 272  }
  0x7a   : > { %2782 = vsyncadd (%p62_p1), [#allocation14], 4294967024 }
  0x7b   : > { %2784 = dma.done.wait (%p62_p1), [#allocation17], 272  }
  0x7c   : > { %2786 = vsyncadd (%p62_p1), [#allocation17], 4294967024 }
  0x7d   : > { %2788 = dma.done.wait (%p62_p1), [#allocation20], 272  }
  0x7e   : > { %2790 = vsyncadd (%p62_p1), [#allocation20], 4294967024 }
  0x7f   : > { %2792 = dma.done.wait (%p62_p1), [#allocation23], 512  }
  0x80   : > { %2794 = vsyncadd (%p62_p1), [#allocation23], 4294966784 }
  0x81   : > { %788 = sfence }
  0x82   : > { %v3156_v0 = vld [vmem:[%s717_s3] sm:$0xff]  ;;  %vm866_vm0 = vcmask 261120   ;;  %v2824_v2 = vmov 32.0   ;;  %s864_s29 = sld [smem:[#allocation8]]  ;;  %v2315_v45 = vld [vmem:[#allocation10] ss:$0 sm:$0xff] }
  0x83   : > { %v867_v1 = vsel %vm866_vm0, %v3156_v0, 0.0  ;;  %2322 = vrcp.f32 %v2824_v2  ;;  %v2128_v14 = vld [vmem:[#allocation9 + $0x8] sm:$0xff]  ;;  %v2127_v15 = vld [vmem:[#allocation9] sm:$0xff]  ;;  %s2033_s27 = sld [smem:[#allocation8 + $0x1]]  ;;  %s2825_s15 = smov 96   ;;  %vm965_vm8 = vcmask 64512  }
  0x84   : > { %868 = vadd.xlane.f32.xlu0 %v867_v1  ;;  %946 = vmatpush.bf16.msra.mxu0 %v2128_v14  ;;  %s2826_s21 = smov 104   ;;  %s2827_s16 = smov 120   ;;  %vm1002_vm9 = vcmask 1043456   ;;  %vm1081_vm10 = vcmask 130112   ;;  %vm1143_vm11 = vcmask 195712   ;;  %vm1205_vm12 = vcmask 261312  }
  0x85   : > { %s2828_s6 = smov 88   ;;  %s2829_s2 = smov 72  }
  0x86   : > { %s2830_s28 = smov 80   ;;  %s2831_s10 = smov 112  }
  0x87   : > { %p850_p1 = scmp.lt.s32.totalorder %s2963_s23, 1  ;;  %s3387_s9 = sld [smem:[#allocation35_spill]] }
  0x88   : > { %947 = vmatpush.bf16.msra.mxu0 %v2127_v15  ;;  %v911_v35 = vstv %s864_s29  ;;  %s2832_s18 = smov 64   ;;  %s2833_s3 = smov 56  }
  0x89   : > { %v2323_v3 = vpop.eup %2322  ;;  %v914_v41 = vstv %s2033_s27  ;;  %s3398_s23 = smov (!%p850_p1, %s2963_s23), 1  ;;  %s2834_s11 = smov 40  }
  0x8a   : > { %v871_v4 = vmul.f32 32.0, %v2323_v3  ;;  %vm875_vm1 = vweird.f32 %v2323_v3  ;;  %s2031_s8 = sshll.u32 %s3398_s23, 2  ;;  %s2835_s26 = smov 48  }
  0x8b   : > { %s2836_s29 = smov 8   ;;  %s2837_s27 = smov 24  }
  0x8c   : > { %v872_v5 = vsub.f32 1.0, %v871_v4  ;;  %s2060_s7 = sld [smem:[#allocation8 + $0x80]] }
  0x8d   : > { %s853_s4 = scalar_lea.vmem %s3387_s9, %s2031_s8  ;;  %s2838_s8 = smov 16  }
  0x8e   : > { %v873_v6 = vmul.f32 %v2323_v3, %v872_v5  ;;  %v953_v63 = vld [vmem:[%s853_s4] sm:$0xf]  ;;  %s3388_s0 = sld [smem:[#allocation36_spill]] }
  0x8f   : > { %v959_v1 = vunpack.c.l.bf16 %v953_v63 }
  0x90   : > { %v874_v7 = vadd.f32 %v2323_v3, %v873_v6 }
  0x92   : > { %v3160_v8 = vsel %vm875_vm1, %v2323_v3, %v874_v7 }
  0x94   : > { %s856_s1 = scalar_lea.vmem %s3388_s0, %s3398_s23  ;;  %s3392_s0 = sld [smem:[#allocation48_spill]] }
  0xf7   : > { %v869_v9 = vpop.xlane.xlu0 %868 }
  0xf8   : > { %v877_v10 = vmul.f32 %v3160_v8, %v869_v9 }
  0xfa   : > { %v878_v11 = vsub.f32 %v3156_v0, %v877_v10 }
  0xfc   : > { %v879_v12 = vmul.f32 %v878_v11, %v878_v11  ;;  %v912_v38 = vmul.f32 %v911_v35, %v878_v11 }
  0xfe   : > { %v880_v13 = vsel %vm866_vm0, %v879_v12, 0.0 }
  0xff   : > { %881 = vadd.xlane.f32.xlu0 %v880_v13 }
 0x172   : > { %v882_v16 = vpop.xlane.xlu0 %881 }
 0x173   : > { %v883_v17 = vmul.f32 0.032258064, %v882_v16 }
 0x175   : > { %2324 = vrsqrt.f32 %v883_v17  ;;  %vm891_vm2 = vcmp.eq.f32.partialorder %v883_v17, inf  ;;  %v894_v25 = vand.u32 2147483648, %v883_v17  ;;  %vm893_vm3 = vcmp.eq.f32.partialorder %v883_v17, 0.0 }
 0x17b   : > { %v2325_v18 = vpop.eup %2324 }
 0x17c   : > { %v885_v19 = vmul.f32 %v2325_v18, %v883_v17 }
 0x17e   : > { %v886_v20 = vmul.f32 %v2325_v18, %v885_v19 }
 0x180   : > { %v887_v21 = vmul.f32 0.5, %v886_v20 }
 0x182   : > { %v888_v22 = vsub.f32 1.5, %v887_v21 }
 0x184   : > { %v889_v23 = vmul.f32 %v2325_v18, %v888_v22 }
 0x186   : > { %v890_v24 = vmul.f32 %v889_v23, %v883_v17 }
 0x188   : > { %v892_v26 = vsel %vm891_vm2, %v883_v17, %v890_v24 }
 0x189   : > { %v895_v27 = vsel %vm893_vm3, %v894_v25, %v892_v26 }
 0x18a   : > { %v896_v28 = vadd.f32 1e-06, %v895_v27 }
 0x18c   : > { %2326 = vrcp.f32 %v896_v28  ;;  %v908_v32 = vand.u32 2147483648, %v896_v28  ;;  %v906_v34 = vand.u32 2147483647, %v896_v28  ;;  %vm902_vm5 = vweird.f32 %v896_v28 }
 0x18e   : > { %v909_v37 = vor.u32 1.1754944e-38, %v908_v32  ;;  %vm907_vm7 = vcmp.eq.f32.partialorder %v906_v34, 8.507059e+37 }
 0x192   : > { %v2327_v29 = vpop.eup %2326 }
 0x193   : > { %v898_v30 = vmul.f32 %v2327_v29, %v896_v28  ;;  %vm903_vm4 = vweird.f32 %v2327_v29 }
 0x194   : > { %vm904_vm6 = vmor %vm902_vm5, %vm903_vm4 }
 0x195   : > { %v899_v31 = vsub.f32 1.0, %v898_v30 }
 0x197   : > { %v900_v33 = vmul.f32 %v2327_v29, %v899_v31 }
 0x199   : > { %v901_v36 = vadd.f32 %v2327_v29, %v900_v33 }
 0x19b   : > { %v905_v39 = vsel %vm904_vm6, %v2327_v29, %v901_v36 }
 0x19c   : > { %v910_v40 = vsel %vm907_vm7, %v909_v37, %v905_v39 }
 0x19d   : > { %v913_v42 = vmul.f32 %v912_v38, %v910_v40 }
 0x19f   : > { %v915_v43 = vadd.f32 %v914_v41, %v913_v42 }
 0x1a1   : > { %v916_v44 = vpack.c.bf16 %v915_v43, %v915_v43 }
 0x1a3   : > { %2042 = vmatmul.msk.bf16.vlgmr.msra.gmra.mxu0 %vm866_vm0, %v916_v44 }
 0x220   : > { %v949_v46 = vpop.f32.mrf.mxu0 }
 0x221   : > { %v950_v47 = vadd.f32 %v2315_v45, %v949_v46 }
 0x223   : > { %v958_v48 = vmul.f32 0.35355338, %v950_v47  ;;  %v3166_v49 = vpack.c.bf16 %v950_v47, %v950_v47 }
 0x225   : > { %v960_v50 = vpack.c.bf16 %v958_v48, %v958_v48  ;;  %963 = vrot.lane.b32.xlu1 %v3166_v49, %s2825_s15 }
 0x227   : > { %1145 = vrot.lane.b32.xlu0 %v960_v50, %s2826_s21  ;;  %1021 = vrot.lane.b32.xlu2 %v960_v50, %s2827_s16 }
 0x228   : > { %v951_v51 = vpop.f32.mrf.mxu0 }
 0x22d   : > { %1023 = vrot.lane.b32.xlu1 %v3166_v49, %s2828_s6 }
 0x22f   : > { %1147 = vrot.lane.b32.xlu2 %v3166_v49, %s2829_s2 }
 0x235   : > { %1085 = vrot.lane.b32.xlu1 %v3166_v49, %s2830_s28 }
 0x237   : > { %1083 = vrot.lane.b32.xlu2 %v960_v50, %s2831_s10 }
 0x281   : > { %v1022_v52 = vpop.permute.xlu2 %1021 }
 0x289   : > { %v1148_v55 = vpop.permute.xlu2 %1147 }
 0x28a   : > { %v1153_v58 = vsel %vm965_vm8, %v1148_v55, 0 }
 0x291   : > { %v1084_v61 = vpop.permute.xlu2 %1083 }
 0x297   : > { %v964_v53 = vpop.permute.xlu1 %963 }
 0x298   : > { %v970_v54 = vsel %vm965_vm8, %v964_v53, 0 }
 0x299   : > { %979 = vmatpush.bf16.xpose.msra.mxu1 %v970_v54  ;;  %v1146_v62 = vpop.permute.xlu0 %1145 }
 0x29f   : > { %v1024_v56 = vpop.permute.xlu1 %1023 }
 0x2a0   : > { %2043 = vmatmul.msk.bf16.vlgmr.msra.gmra.mxu1 %vm965_vm8, %v960_v50  ;;  %v1029_v57 = vsel %vm965_vm8, %v1024_v56, 0 }
 0x2a1   : > { %1038 = vmatpush.bf16.xpose.msra.mxu3 %v1029_v57 }
 0x2a7   : > { %v1086_v59 = vpop.permute.xlu1 %1085 }
 0x2a8   : > { %2045 = vmatmul.msk.bf16.vlgmr.msra.gmra.mxu3 %vm965_vm8, %v1022_v52  ;;  %v1091_v60 = vsel %vm965_vm8, %v1086_v59, 0 }
 0x2a9   : > { %1162 = vmatpush.bf16.xpose.msrb.mxu3 %v1153_v58  ;;  %1100 = vmatpush.bf16.xpose.msrb.mxu0 %v1091_v60 }
 0x2b0   : > { %2047 = vmatmul.msk.bf16.vlgmr.msrb.gmra.mxu0 %vm965_vm8, %v1084_v61 }
 0x2b8   : > { %2049 = vmatmul.msk.bf16.vlgmr.msrb.gmra.mxu3 %vm965_vm8, %v1146_v62 }
 0x31d   : > { %v981_v2 = vpop.f32.mrf.mxu1 }
 0x31e   : > { %v982_v3 = vadd.f32 %v981_v2, %v959_v1 }
 0x320   : > { %v985_v4 = vsel %vm965_vm8, %v982_v3, -inf }
 0x321   : > { %986 = vmax.xlane.f32.xlu1 %v985_v4 }
 0x325   : > { %v983_v5 = vpop.f32.mrf.mxu1 }
 0x32b   : > { %v1040_v6 = vpop.f32.mrf.mxu3 }
 0x32c   : > { %v1041_v7 = vadd.f32 %v1040_v6, %v959_v1 }
 0x32d   : > { %v1102_v9 = vpop.f32.mrf.mxu0 }
 0x32e   : > { %v1044_v10 = vsel %vm965_vm8, %v1041_v7, -inf  ;;  %v1103_v11 = vadd.f32 %v1102_v9, %v959_v1  ;;  %v2130_v9 = vld [vmem:[#allocation12 + $0x8] sm:$0xff] }
 0x32f   : > { %1045 = vmax.xlane.f32.xlu2 %v1044_v10  ;;  %1230 = vmatpush.bf16.msra.mxu0 %v2130_v9  ;;  %v2129_v10 = vld [vmem:[#allocation12] sm:$0xff] }
 0x330   : > { %v1106_v14 = vsel %vm965_vm8, %v1103_v11, -inf }
 0x333   : > { %v1042_v12 = vpop.f32.mrf.mxu3  ;;  %1231 = vmatpush.bf16.msra.mxu0 %v2129_v10 }
 0x335   : > { %v1104_v13 = vpop.f32.mrf.mxu0 }
 0x337   : > { %1107 = vmax.xlane.f32.xlu2 %v1106_v14 }
 0x33b   : > { %v1164_v15 = vpop.f32.mrf.mxu3 }
 0x33c   : > { %v1165_v16 = vadd.f32 %v1164_v15, %v959_v1 }
 0x33e   : > { %v1168_v17 = vsel %vm965_vm8, %v1165_v16, -inf }
 0x33f   : > { %1169 = vmax.xlane.f32.xlu0 %v1168_v17 }
 0x343   : > { %v1166_v18 = vpop.f32.mrf.mxu3 }
 0x34f   : > { %997 = vrot.lane.b32.xlu2 %v3166_v49, %s2832_s18  ;;  %s2097_s18 = sld [smem:[#allocation8 + $0x100]] }
 0x353   : > { %1056 = vrot.lane.b32.xlu0 %v3166_v49, %s2833_s3  ;;  %s2098_s3 = sld [smem:[#allocation8 + $0x101]] }
 0x357   : > { %1180 = vrot.lane.b32.xlu2 %v3166_v49, %s2834_s11 }
 0x35b   : > { %1118 = vrot.lane.b32.xlu0 %v3166_v49, %s2835_s26 }
 0x394   : > { %v987_v19 = vpop.xlane.xlu1 %986 }
 0x395   : > { %v988_v20 = vsub.f32 %v982_v3, %v987_v19 }
 0x397   : > { %v989_v21 = vmul.f32 1.442695, %v988_v20 }
 0x399   : > { %2328 = vpow2.f32 %v989_v21 }
 0x39f   : > { %v2329_v22 = vpop.eup %2328 }
 0x3a0   : > { %v991_v23 = vsel %vm965_vm8, %v2329_v22, 0.0 }
 0x3a1   : > { %992 = vadd.xlane.f32.xlu1 %v991_v23 }
 0x3a2   : > { %v1046_v24 = vpop.xlane.xlu2 %1045 }
 0x3a3   : > { %v1047_v25 = vsub.f32 %v1041_v7, %v1046_v24 }
 0x3a5   : > { %v1048_v26 = vmul.f32 1.442695, %v1047_v25 }
 0x3a7   : > { %2330 = vpow2.f32 %v1048_v26 }
 0x3aa   : > { %v1108_v27 = vpop.xlane.xlu2 %1107 }
 0x3ab   : > { %v1109_v34 = vsub.f32 %v1103_v11, %v1108_v27 }
 0x3ad   : > { %v2331_v28 = vpop.eup %2330  ;;  %v1110_v36 = vmul.f32 1.442695, %v1109_v34 }
 0x3ae   : > { %v1050_v29 = vsel %vm965_vm8, %v2331_v28, 0.0 }
 0x3af   : > { %1051 = vadd.xlane.f32.xlu1 %v1050_v29 }
 0x3b2   : > { %v1170_v30 = vpop.xlane.xlu0 %1169  ;;  %v998_v31 = vpop.permute.xlu2 %997 }
 0x3b3   : > { %v1171_v32 = vsub.f32 %v1165_v16, %v1170_v30  ;;  %v1004_v33 = vsel %vm1002_vm9, %v998_v31, 0  ;;  %v2316_v16 = vld [vmem:[#allocation13] ss:$0 sm:$0xff]  ;;  %v2132_v30 = vld [vmem:[#allocation15 + $0x8] sm:$0xff]  ;;  %v2131_v31 = vld [vmem:[#allocation15] sm:$0xff] }
 0x3b4   : > { %1013 = vmatpush.bf16.msra.mxu2 %v1004_v33 }
 0x3b5   : > { %v1172_v35 = vmul.f32 1.442695, %v1171_v32 }
 0x3b7   : > { %2332 = vpow2.f32 %v1172_v35 }
 0x3b8   : > { %2334 = vpow2.f32 %v1110_v36 }
 0x3ba   : > { %v1181_v48 = vpop.permute.xlu2 %1180 }
 0x3bb   : > { %v1186_v50 = vsel %vm1002_vm9, %v1181_v48, 0 }
 0x3bd   : > { %v2333_v37 = vpop.eup %2332 }
 0x3be   : > { %v1174_v38 = vsel %vm965_vm8, %v2333_v37, 0.0  ;;  %v2335_v39 = vpop.eup %2334 }
 0x3bf   : > { %1175 = vadd.xlane.f32.xlu1 %v1174_v38  ;;  %v1112_v42 = vsel %vm965_vm8, %v2335_v39, 0.0 }
 0x3c5   : > { %v1057_v40 = vpop.permute.xlu0 %1056 }
 0x3c6   : > { %v1062_v41 = vsel %vm1002_vm9, %v1057_v40, 0 }
 0x3c7   : > { %1071 = vmatpush.bf16.msrb.mxu2 %v1062_v41  ;;  %1113 = vadd.xlane.f32.xlu1 %v1112_v42 }
 0x3cd   : > { %v1119_v43 = vpop.permute.xlu0 %1118 }
 0x3ce   : > { %v1124_v44 = vsel %vm1002_vm9, %v1119_v43, 0 }
 0x3cf   : > { %1133 = vmatpush.bf16.msrb.mxu1 %v1124_v44 }
 0x3d3   : > { %1317 = vmatpush.bf16.msra.mxu1 %v2132_v30 }
 0x3d7   : > { %1318 = vmatpush.bf16.msra.mxu1 %v2131_v31 }
 0x414   : > { %v993_v45 = vpop.xlane.xlu1 %992 }
 0x415   : > { %2336 = vrcp.f32 %v993_v45 }
 0x41b   : > { %v2337_v46 = vpop.eup %2336 }
 0x41c   : > { %v995_v47 = vmul.f32 %v2337_v46, %v2329_v22  ;;  %v2134_v22 = vld [vmem:[#allocation18 + $0x8] sm:$0xff] }
 0x41d   : > { %1354 = vmatpush.bf16.msra.mxu3 %v2134_v22 }
 0x41e   : > { %v996_v49 = vpack.c.bf16 %v995_v47, %v995_v47 }
 0x420   : > { %2044 = vmatmul.msk.bf16.vlgmr.msra.gmra.mxu2 %vm965_vm8, %v996_v49 }
 0x421   : > { %1195 = vmatpush.bf16.msra.mxu2 %v1186_v50 }
 0x422   : > { %v1052_v51 = vpop.xlane.xlu1 %1051 }
 0x423   : > { %2338 = vrcp.f32 %v1052_v51  ;;  %v1282_v51 = vstv %s2060_s7  ;;  %s3391_s7 = sld [smem:[#allocation47_spill]] }
 0x429   : > { %v2339_v52 = vpop.eup %2338 }
 0x42a   : > { %v1054_v53 = vmul.f32 %v2339_v52, %v2331_v28  ;;  %v2133_v28 = vld [vmem:[#allocation18] sm:$0xff] }
 0x42b   : > { %1355 = vmatpush.bf16.msra.mxu3 %v2133_v28 }
 0x42c   : > { %v1055_v54 = vpack.c.bf16 %v1054_v53, %v1054_v53 }
 0x430   : > { %2046 = vmatmul.msk.bf16.vlgmr.msrb.gmra.mxu2 %vm965_vm8, %v1055_v54 }
 0x432   : > { %v1176_v55 = vpop.xlane.xlu1 %1175 }
 0x433   : > { %2340 = vrcp.f32 %v1176_v55 }
 0x439   : > { %v2341_v56 = vpop.eup %2340 }
 0x43a   : > { %v1178_v57 = vmul.f32 %v2341_v56, %v2333_v37  ;;  %v1114_v58 = vpop.xlane.xlu1 %1113 }
 0x43b   : > { %2342 = vrcp.f32 %v1114_v58 }
 0x43c   : > { %v1179_v59 = vpack.c.bf16 %v1178_v57, %v1178_v57 }
 0x440   : > { %2050 = vmatmul.msk.bf16.vlgmr.msra.gmra.mxu2 %vm965_vm8, %v1179_v59 }
 0x441   : > { %v2343_v60 = vpop.eup %2342 }
 0x442   : > { %v1116_v61 = vmul.f32 %v2343_v60, %v2335_v39 }
 0x444   : > { %v1117_v62 = vpack.c.bf16 %v1116_v61, %v1116_v61  ;;  %v2317_v61 = vld [vmem:[#allocation19] ss:$0 sm:$0xff] }
 0x446   : > { %2048 = vmatmul.msk.bf16.vlgmr.msrb.gmra.mxu1 %vm965_vm8, %v1117_v62 }
 0x4a3   : > { %v1015_v63 = vpop.f32.mrf.mxu2 }
 0x4a4   : > { %1019 = vst.msk [vmem:[#allocation2] sm:$0xff] %vm965_vm8, %v1015_v63 }
 0x4ab   : > { %v1017_v1 = vpop.f32.mrf.mxu2 }
 0x4b3   : > { %v1073_v2 = vpop.f32.mrf.mxu2 }
 0x4b4   : > { %1078 = vrot.lane.b32.xlu1 %v1073_v2, %s2836_s29 }
 0x4bb   : > { %v1075_v3 = vpop.f32.mrf.mxu2 }
 0x4c3   : > { %v1135_v4 = vpop.f32.mrf.mxu1  ;;  %v1197_v5 = vpop.f32.mrf.mxu2 }
 0x4c4   : > { %1202 = vrot.lane.b32.xlu0 %v1197_v5, %s2837_s27  ;;  %1140 = vrot.lane.b32.xlu2 %v1135_v4, %s2838_s8  ;;  %v2318_v4 = vld [vmem:[#allocation16] ss:$0 sm:$0xff] }
 0x4cb   : > { %v1137_v6 = vpop.f32.mrf.mxu1  ;;  %v1199_v7 = vpop.f32.mrf.mxu2 }
 0x51e   : > { %v1141_v12 = vpop.permute.xlu2 %1140 }
 0x526   : > { %v1079_v11 = vpop.permute.xlu1 %1078 }
 0x527   : > { %1082 = vst.msk [vmem:[#allocation2] sm:$0xff] %vm1081_vm10, %v1079_v11 }
 0x528   : > { %1144 = vst.msk [vmem:[#allocation2] sm:$0xff] %vm1143_vm11, %v1141_v12 }
 0x536   : > { %v1203_v13 = vpop.permute.xlu0 %1202 }
 0x537   : > { %1206 = vst.msk [vmem:[#allocation2] sm:$0xff] %vm1205_vm12, %v1203_v13 }
 0x53e   : > { %v1207_v14 = vld [vmem:[#allocation2] sm:$0xff] }
 0x53f   : > { %v1208_v15 = vpack.c.bf16 %v1207_v14, %v1207_v14 }
 0x541   : > { %2059 = vmatmul.msk.bf16.vlgmr.msra.gmra.mxu0 %vm866_vm0, %v1208_v15 }
 0x5be   : > { %v1233_v17 = vpop.f32.mrf.mxu0 }
 0x5bf   : > { %v1237_v18 = vadd.f32 %v1233_v17, %v3156_v0  ;;  %v863_v0 = vld [vmem:[%s727_s24] sm:$0xff]  ;;  %s2061_s24 = sld [smem:[#allocation8 + $0x81]] }
 0x5c0   : > { %v1324_v29 = vpack.c.bf16 %v863_v0, %v863_v0 }
 0x5c1   : > { %v3224_v19 = vadd.f32 %v2316_v16, %v1237_v18  ;;  %v1361_v18 = vld [vmem:[%s856_s1] sm:$0x1] }
 0x5c2   : > { %2079 = vmatmul.msk.bf16.vlgmr.msra.gmra.mxu3 %vm866_vm0, %v1324_v29 }
 0x5c3   : > { %v1245_v20 = vsel %vm866_vm0, %v3224_v19, 0.0 }
 0x5c4   : > { %1246 = vadd.xlane.f32.xlu2 %v1245_v20 }
 0x5c5   : > { %v1285_v57 = vstv %s2061_s24  ;;  %s2032_s24 = sshll.u32 %s3398_s23, 3 }
 0x5c6   : > { %v1235_v21 = vpop.f32.mrf.mxu0  ;;  %s860_s1 = scalar_lea.vmem %s3392_s0, %s2032_s24 }
 0x5c7   : > { %v1367_v21 = vunpack.c.l.bf16 %v1361_v18 }
 0x5c9   : > { %v1368_v22 = vperm.slane %v1367_v21, 0 }
 0x637   : > { %v1247_v23 = vpop.xlane.xlu2 %1246 }
 0x638   : > { %v1248_v24 = vmul.f32 %v1247_v23, %v3160_v8 }
 0x63a   : > { %v1249_v25 = vsub.f32 %v3224_v19, %v1248_v24 }
 0x63c   : > { %v1250_v26 = vmul.f32 %v1249_v25, %v1249_v25  ;;  %v1283_v54 = vmul.f32 %v1282_v51, %v1249_v25 }
 0x63e   : > { %v1251_v27 = vsel %vm866_vm0, %v1250_v26, 0.0 }
 0x63f   : > { %1252 = vadd.xlane.f32.xlu0 %v1251_v27 }
 0x645   : > { %v1357_v62 = vpop.f32.mrf.mxu3 }
 0x646   : > { %v1358_v63 = vadd.f32 %v2317_v61, %v1357_v62 }
 0x648   : > { %v3235_v1 = vpack.c.bf16 %v1358_v63, %v1358_v63 }
 0x64a   : > { %1428 = vrot.lane.b32.xlu1 %v3235_v1, %s2827_s16  ;;  %v1375_v2 = vsel %vm965_vm8, %v3235_v1, 0 }
 0x64b   : > { %1384 = vmatpush.bf16.xpose.msrb.mxu2 %v1375_v2 }
 0x64d   : > { %v1359_v3 = vpop.f32.mrf.mxu3 }
 0x652   : > { %1489 = vrot.lane.b32.xlu1 %v3235_v1, %s2831_s10 }
 0x6b2   : > { %v1253_v32 = vpop.xlane.xlu0 %1252 }
 0x6b3   : > { %v1254_v33 = vmul.f32 0.032258064, %v1253_v32 }
 0x6b5   : > { %2344 = vrsqrt.f32 %v1254_v33  ;;  %vm1262_vm13 = vcmp.eq.f32.partialorder %v1254_v33, inf  ;;  %v1265_v41 = vand.u32 2147483648, %v1254_v33  ;;  %vm1264_vm14 = vcmp.eq.f32.partialorder %v1254_v33, 0.0 }
 0x6bb   : > { %v2345_v34 = vpop.eup %2344 }
 0x6bc   : > { %v1256_v35 = vmul.f32 %v2345_v34, %v1254_v33  ;;  %v1429_v11 = vpop.permute.xlu1 %1428 }
 0x6bd   : > { %v1434_v12 = vsel %vm965_vm8, %v1429_v11, 0 }
 0x6be   : > { %v1257_v36 = vmul.f32 %v2345_v34, %v1256_v35  ;;  %1443 = vmatpush.bf16.xpose.msrb.mxu1 %v1434_v12 }
 0x6c0   : > { %v1258_v37 = vmul.f32 0.5, %v1257_v36 }
 0x6c2   : > { %v1259_v38 = vsub.f32 1.5, %v1258_v37 }
 0x6c4   : > { %v1260_v39 = vmul.f32 %v2345_v34, %v1259_v38  ;;  %v1490_v13 = vpop.permute.xlu1 %1489 }
 0x6c5   : > { %v1495_v14 = vsel %vm965_vm8, %v1490_v13, 0 }
 0x6c6   : > { %v1261_v40 = vmul.f32 %v1260_v39, %v1254_v33  ;;  %1504 = vmatpush.bf16.xpose.msra.mxu2 %v1495_v14 }
 0x6c8   : > { %v1263_v42 = vsel %vm1262_vm13, %v1254_v33, %v1261_v40 }
 0x6c9   : > { %v1266_v43 = vsel %vm1264_vm14, %v1265_v41, %v1263_v42 }
 0x6ca   : > { %v1267_v44 = vadd.f32 1e-06, %v1266_v43 }
 0x6cc   : > { %2346 = vrcp.f32 %v1267_v44  ;;  %v1279_v48 = vand.u32 2147483648, %v1267_v44  ;;  %v1277_v50 = vand.u32 2147483647, %v1267_v44  ;;  %vm1273_vm1 = vweird.f32 %v1267_v44 }
 0x6ce   : > { %v1280_v53 = vor.u32 1.1754944e-38, %v1279_v48  ;;  %vm1278_vm3 = vcmp.eq.f32.partialorder %v1277_v50, 8.507059e+37 }
 0x6d2   : > { %v2347_v45 = vpop.eup %2346 }
 0x6d3   : > { %v1269_v46 = vmul.f32 %v2347_v45, %v1267_v44  ;;  %vm1274_vm15 = vweird.f32 %v2347_v45 }
 0x6d4   : > { %vm1275_vm2 = vmor %vm1273_vm1, %vm1274_vm15 }
 0x6d5   : > { %v1270_v47 = vsub.f32 1.0, %v1269_v46 }
 0x6d7   : > { %v1271_v49 = vmul.f32 %v2347_v45, %v1270_v47 }
 0x6d9   : > { %v1272_v52 = vadd.f32 %v2347_v45, %v1271_v49 }
 0x6db   : > { %v1276_v55 = vsel %vm1275_vm2, %v2347_v45, %v1272_v52 }
 0x6dc   : > { %v1281_v56 = vsel %vm1278_vm3, %v1280_v53, %v1276_v55 }
 0x6dd   : > { %v1284_v58 = vmul.f32 %v1283_v54, %v1281_v56 }
 0x6df   : > { %v1286_v59 = vadd.f32 %v1285_v57, %v1284_v58 }
 0x6e1   : > { %v1287_v60 = vpack.c.bf16 %v1286_v59, %v1286_v59 }
 0x6e3   : > { %2070 = vmatmul.msk.bf16.vlgmr.msra.gmra.mxu1 %vm866_vm0, %v1287_v60 }
 0x760   : > { %v1320_v5 = vpop.f32.mrf.mxu1 }
 0x761   : > { %v1321_v6 = vadd.f32 %v2318_v4, %v1320_v5 }
 0x763   : > { %v1366_v7 = vmul.f32 0.35355338, %v1321_v6 }
 0x765   : > { %v1369_v9 = vpack.c.bf16 %v1366_v7, %v1366_v7 }
 0x767   : > { %1487 = vrot.lane.b32.xlu2 %v1369_v9, %s2831_s10  ;;  %1426 = vrot.lane.b32.xlu1 %v1369_v9, %s2827_s16 }
 0x768   : > { %2080 = vmatmul.msk.bf16.vlgmr.msrb.gmra.mxu2 %vm965_vm8, %v1369_v9  ;;  %v1322_v10 = vpop.f32.mrf.mxu1 }
 0x76f   : > { %1550 = vrot.lane.b32.xlu1 %v3235_v1, %s2826_s21 }
 0x777   : > { %1548 = vrot.lane.b32.xlu1 %v1369_v9, %s2826_s21 }
 0x7c1   : > { %v1488_v15 = vpop.permute.xlu2 %1487 }
 0x7c2   : > { %2084 = vmatmul.msk.bf16.vlgmr.msra.gmra.mxu2 %vm965_vm8, %v1488_v15 }
 0x7d9   : > { %v1427_v16 = vpop.permute.xlu1 %1426 }
 0x7da   : > { %2082 = vmatmul.msk.bf16.vlgmr.msrb.gmra.mxu1 %vm965_vm8, %v1427_v16 }
 0x7e1   : > { %v1551_v17 = vpop.permute.xlu1 %1550 }
 0x7e2   : > { %v1556_v20 = vsel %vm965_vm8, %v1551_v17, 0 }
 0x7e3   : > { %1565 = vmatpush.bf16.xpose.msra.mxu1 %v1556_v20 }
 0x7e9   : > { %v1549_v23 = vpop.permute.xlu1 %1548 }
 0x7ea   : > { %2086 = vmatmul.msk.bf16.vlgmr.msra.gmra.mxu1 %vm965_vm8, %v1549_v23 }
 0x7eb   : > { %v1386_v24 = vpop.f32.mrf.mxu2 }
 0x7ec   : > { %v1387_v25 = vadd.f32 %v1386_v24, %v1368_v22 }
 0x7ee   : > { %v1390_v26 = vsel %vm965_vm8, %v1387_v25, -inf }
 0x7ef   : > { %1391 = vmax.xlane.f32.xlu1 %v1390_v26 }
 0x7f3   : > { %v1388_v27 = vpop.f32.mrf.mxu2 }
 0x808   : > { %1403 = vrot.lane.b32.xlu1 %v3235_v1, %s2825_s15 }
 0x810   : > { %1522 = vrot.lane.b32.xlu1 %v3235_v1, %s2830_s28  ;;  %s3389_s28 = sld [smem:[#allocation45_spill]] }
 0x845   : > { %v1506_v28 = vpop.f32.mrf.mxu2 }
 0x846   : > { %v1507_v32 = vadd.f32 %v1506_v28, %v1368_v22 }
 0x848   : > { %v1510_v35 = vsel %vm965_vm8, %v1507_v32, -inf }
 0x84d   : > { %v1508_v0 = vpop.f32.mrf.mxu2 }
 0x857   : > { %v1445_v29 = vpop.f32.mrf.mxu1 }
 0x858   : > { %v1446_v30 = vadd.f32 %v1445_v29, %v1368_v22  ;;  %v2136_v29 = vld [vmem:[#allocation21 + $0x8] sm:$0xff] }
 0x859   : > { %1632 = vmatpush.bf16.msrb.mxu2 %v2136_v29 }
 0x85a   : > { %v1449_v31 = vsel %vm965_vm8, %v1446_v30, -inf }
 0x85b   : > { %1450 = vmax.xlane.f32.xlu0 %v1449_v31 }
 0x85f   : > { %v1447_v33 = vpop.f32.mrf.mxu1 }
 0x862   : > { %v1392_v34 = vpop.xlane.xlu1 %1391 }
 0x863   : > { %v1393_v36 = vsub.f32 %v1387_v25, %v1392_v34  ;;  %1511 = vmax.xlane.f32.xlu0 %v1510_v35 }
 0x865   : > { %v1394_v37 = vmul.f32 1.442695, %v1393_v36  ;;  %v2319_v36 = vld [vmem:[%s3348_s14] ss:$0 sm:$0xff] }
 0x867   : > { %v1567_v38 = vpop.f32.mrf.mxu1  ;;  %2348 = vpow2.f32 %v1394_v37 }
 0x868   : > { %v1568_v39 = vadd.f32 %v1567_v38, %v1368_v22 }
 0x86a   : > { %v1571_v40 = vsel %vm965_vm8, %v1568_v39, -inf }
 0x86b   : > { %1572 = vmax.xlane.f32.xlu0 %v1571_v40 }
 0x86d   : > { %v2349_v41 = vpop.eup %2348 }
 0x86e   : > { %v1396_v43 = vsel %vm965_vm8, %v2349_v41, 0.0 }
 0x86f   : > { %v1569_v42 = vpop.f32.mrf.mxu1 }
 0x873   : > { %1397 = vadd.xlane.f32.xlu0 %v1396_v43 }
 0x87a   : > { %v1404_v44 = vpop.permute.xlu1 %1403 }
 0x87b   : > { %v1409_v45 = vsel %vm1002_vm9, %v1404_v44, 0 }
 0x87c   : > { %1418 = vmatpush.bf16.msrb.mxu0 %v1409_v45 }
 0x882   : > { %v1523_v46 = vpop.permute.xlu1 %1522 }
 0x883   : > { %v1528_v47 = vsel %vm1002_vm9, %v1523_v46, 0 }
 0x884   : > { %1537 = vmatpush.bf16.msra.mxu0 %v1528_v47  ;;  %v2137_v47 = vld [vmem:[%s3389_s28] sm:$0xff] }
 0x887   : > { %1461 = vrot.lane.b32.xlu0 %v3235_v1, %s2828_s6 }
 0x8ce   : > { %v1451_v48 = vpop.xlane.xlu0 %1450 }
 0x8cf   : > { %v1452_v49 = vsub.f32 %v1446_v30, %v1451_v48  ;;  %v2135_v30 = vld [vmem:[#allocation21] sm:$0xff] }
 0x8d0   : > { %1633 = vmatpush.bf16.msrb.mxu2 %v2135_v30 }
 0x8d1   : > { %v1453_v50 = vmul.f32 1.442695, %v1452_v49 }
 0x8d3   : > { %2350 = vpow2.f32 %v1453_v50 }
 0x8d6   : > { %v1512_v51 = vpop.xlane.xlu0 %1511 }
 0x8d7   : > { %v1513_v52 = vsub.f32 %v1507_v32, %v1512_v51 }
 0x8d9   : > { %v2351_v53 = vpop.eup %2350  ;;  %v1514_v54 = vmul.f32 1.442695, %v1513_v52 }
 0x8da   : > { %v1455_v55 = vsel %vm965_vm8, %v2351_v53, 0.0 }
 0x8db   : > { %2352 = vpow2.f32 %v1514_v54  ;;  %1456 = vadd.xlane.f32.xlu2 %v1455_v55  ;;  %v2142_v54 = vld [vmem:[#allocation22 + $0x18] sm:$0xff] }
 0x8dc   : > { %1772 = vmatpush.bf16.msrb.mxu1 %v2142_v54 }
 0x8de   : > { %v1573_v56 = vpop.xlane.xlu0 %1572 }
 0x8df   : > { %v1574_v57 = vsub.f32 %v1568_v39, %v1573_v56  ;;  %v2141_v56 = vld [vmem:[#allocation22 + $0x10] sm:$0xff] }
 0x8e0   : > { %1773 = vmatpush.bf16.msrb.mxu1 %v2141_v56 }
 0x8e1   : > { %v2353_v58 = vpop.eup %2352  ;;  %v1575_v59 = vmul.f32 1.442695, %v1574_v57 }
 0x8e2   : > { %v1516_v60 = vsel %vm965_vm8, %v2353_v58, 0.0 }
 0x8e3   : > { %2354 = vpow2.f32 %v1575_v59  ;;  %1517 = vadd.xlane.f32.xlu2 %v1516_v60 }
 0x8e6   : > { %v1398_v61 = vpop.xlane.xlu0 %1397 }
 0x8e7   : > { %2356 = vrcp.f32 %v1398_v61 }
 0x8e9   : > { %v2355_v62 = vpop.eup %2354 }
 0x8ea   : > { %v1577_v63 = vsel %vm965_vm8, %v2355_v62, 0.0 }
 0x8eb   : > { %1578 = vadd.xlane.f32.xlu0 %v1577_v63 }
 0x8ed   : > { %v2357_v2 = vpop.eup %2356 }
 0x8ee   : > { %v1400_v3 = vmul.f32 %v2357_v2, %v2349_v41 }
 0x8f0   : > { %v1401_v4 = vpack.c.bf16 %v1400_v3, %v1400_v3 }
 0x8f2   : > { %2081 = vmatmul.msk.bf16.vlgmr.msrb.gmra.mxu0 %vm965_vm8, %v1401_v4 }
 0x8f9   : > { %v1462_v5 = vpop.permute.xlu0 %1461 }
 0x8fa   : > { %v1467_v6 = vsel %vm1002_vm9, %v1462_v5, 0 }
 0x8fb   : > { %1583 = vrot.lane.b32.xlu2 %v3235_v1, %s2829_s2  ;;  %1476 = vmatpush.bf16.msrb.mxu3 %v1467_v6  ;;  %v1684_v6 = vstv %s2097_s18 }
 0x94e   : > { %v1457_v7 = vpop.xlane.xlu2 %1456 }
 0x94f   : > { %2358 = vrcp.f32 %v1457_v7 }
 0x955   : > { %v2359_v9 = vpop.eup %2358 }
 0x956   : > { %v1459_v10 = vmul.f32 %v2359_v9, %v2351_v53  ;;  %v1518_v11 = vpop.xlane.xlu2 %1517 }
 0x957   : > { %2360 = vrcp.f32 %v1518_v11 }
 0x958   : > { %v1460_v12 = vpack.c.bf16 %v1459_v10, %v1459_v10 }
 0x95a   : > { %2083 = vmatmul.msk.bf16.vlgmr.msrb.gmra.mxu3 %vm965_vm8, %v1460_v12 }
 0x95d   : > { %v2361_v13 = vpop.eup %2360 }
 0x95e   : > { %v1520_v14 = vmul.f32 %v2361_v13, %v2353_v58  ;;  %v1584_v15 = vpop.permute.xlu2 %1583  ;;  %v1579_v16 = vpop.xlane.xlu0 %1578  ;;  %v1687_v13 = vstv %s2098_s3 }
 0x95f   : > { %v1589_v17 = vsel %vm1002_vm9, %v1584_v15, 0  ;;  %2362 = vrcp.f32 %v1579_v16 }
 0x960   : > { %v1521_v18 = vpack.c.bf16 %v1520_v14, %v1520_v14  ;;  %1598 = vmatpush.bf16.msra.mxu3 %v1589_v17  ;;  %v2140_v17 = vld [vmem:[#allocation22 + $0x8] sm:$0xff] }
 0x961   : > { %1774 = vmatpush.bf16.msrb.mxu1 %v2140_v17 }
 0x962   : > { %2085 = vmatmul.msk.bf16.vlgmr.msra.gmra.mxu0 %vm965_vm8, %v1521_v18  ;;  %v2139_v18 = vld [vmem:[#allocation22] sm:$0xff] }
 0x965   : > { %v2363_v1 = vpop.eup %2362  ;;  %1775 = vmatpush.bf16.msrb.mxu1 %v2139_v18 }
 0x966   : > { %v1581_v20 = vmul.f32 %v2363_v1, %v2355_v62 }
 0x968   : > { %v1582_v21 = vpack.c.bf16 %v1581_v20, %v1581_v20 }
 0x96a   : > { %2087 = vmatmul.msk.bf16.vlgmr.msra.gmra.mxu3 %vm965_vm8, %v1582_v21 }
 0x96f   : > { %v1420_v22 = vpop.f32.mrf.mxu0 }
 0x970   : > { %1424 = vst.msk [vmem:[#allocation2] sm:$0xff] %vm965_vm8, %v1420_v22 }
 0x977   : > { %v1422_v23 = vpop.f32.mrf.mxu0 }
 0x9dd   : > { %v1478_v24 = vpop.f32.mrf.mxu3 }
 0x9de   : > { %1483 = vrot.lane.b32.xlu1 %v1478_v24, %s2836_s29  ;;  %s3390_s29 = sld [smem:[#allocation46_spill]] }
 0x9df   : > { %v1539_v25 = vpop.f32.mrf.mxu0 }
 0x9e4   : > { %v2320_v1 = vld [vmem:[%s3390_s29] ss:$0 sm:$0xff] }
 0x9e5   : > { %v1480_v26 = vpop.f32.mrf.mxu3 }
 0x9e6   : > { %1544 = vrot.lane.b32.xlu1 %v1539_v25, %s2838_s8  ;;  %v2321_v25 = vld [vmem:[%s3391_s7] ss:$0 sm:$0xff] }
 0x9e7   : > { %v1541_v27 = vpop.f32.mrf.mxu0 }
 0x9ed   : > { %v1600_v28 = vpop.f32.mrf.mxu3 }
 0x9ee   : > { %1605 = vrot.lane.b32.xlu0 %v1600_v28, %s2837_s27 }
 0x9f5   : > { %v1602_v0 = vpop.f32.mrf.mxu3 }
 0xa50   : > { %v1484_v31 = vpop.permute.xlu1 %1483 }
 0xa51   : > { %1486 = vst.msk [vmem:[#allocation2] sm:$0xff] %vm1081_vm10, %v1484_v31  ;;  %vm1764_vm10 = vcmask 523264  }
 0xa58   : > { %v1545_v32 = vpop.permute.xlu1 %1544 }
 0xa59   : > { %1547 = vst.msk [vmem:[#allocation2] sm:$0xff] %vm1143_vm11, %v1545_v32 }
 0xa60   : > { %v1606_v33 = vpop.permute.xlu0 %1605 }
 0xa61   : > { %1608 = vst.msk [vmem:[#allocation2] sm:$0xff] %vm1205_vm12, %v1606_v33 }
 0xa68   : > { %v1609_v34 = vld [vmem:[#allocation2] sm:$0xff] }
 0xa69   : > { %v1610_v35 = vpack.c.bf16 %v1609_v34, %v1609_v34 }
 0xa6b   : > { %2096 = vmatmul.msk.bf16.vlgmr.msrb.gmra.mxu2 %vm866_vm0, %v1610_v35 }
 0xaee   : > { %v1635_v37 = vpop.f32.mrf.mxu2 }
 0xaef   : > { %v1639_v38 = vadd.f32 %v1635_v37, %v3224_v19  ;;  %v2138_v19 = vld [vmem:[%s3389_s28 + $0x8] sm:$0xff] }
 0xaf0   : > { %1719 = vmatpush.bf16.msrb.mxu0 %v2138_v19 }
 0xaf1   : > { %v3295_v39 = vadd.f32 %v2319_v36, %v1639_v38 }
 0xaf3   : > { %v1647_v40 = vsel %vm866_vm0, %v3295_v39, 0.0 }
 0xaf4   : > { %1648 = vadd.xlane.f32.xlu2 %v1647_v40  ;;  %1720 = vmatpush.bf16.msrb.mxu0 %v2137_v47 }
 0xaf6   : > { %v1637_v41 = vpop.f32.mrf.mxu2 }
 0xb67   : > { %v1649_v42 = vpop.xlane.xlu2 %1648 }
 0xb68   : > { %v1650_v43 = vmul.f32 %v1649_v42, %v3160_v8 }
 0xb6a   : > { %v1651_v44 = vsub.f32 %v3295_v39, %v1650_v43 }
 0xb6c   : > { %v1652_v45 = vmul.f32 %v1651_v44, %v1651_v44  ;;  %v1685_v10 = vmul.f32 %v1684_v6, %v1651_v44 }
 0xb6e   : > { %v1653_v46 = vsel %vm866_vm0, %v1652_v45, 0.0 }
 0xb6f   : > { %1654 = vadd.xlane.f32.xlu1 %v1653_v46 }
 0xbe2   : > { %v1655_v48 = vpop.xlane.xlu1 %1654 }
 0xbe3   : > { %v1656_v49 = vmul.f32 0.032258064, %v1655_v48 }
 0xbe5   : > { %2364 = vrsqrt.f32 %v1656_v49  ;;  %vm1664_vm4 = vcmp.eq.f32.partialorder %v1656_v49, inf  ;;  %v1667_v58 = vand.u32 2147483648, %v1656_v49  ;;  %vm1666_vm5 = vcmp.eq.f32.partialorder %v1656_v49, 0.0 }
 0xbeb   : > { %v2365_v8 = vpop.eup %2364 }
 0xbec   : > { %v1658_v50 = vmul.f32 %v2365_v8, %v1656_v49 }
 0xbee   : > { %v1659_v51 = vmul.f32 %v2365_v8, %v1658_v50 }
 0xbf0   : > { %v1660_v52 = vmul.f32 0.5, %v1659_v51 }
 0xbf2   : > { %v1661_v53 = vsub.f32 1.5, %v1660_v52 }
 0xbf4   : > { %v1662_v55 = vmul.f32 %v2365_v8, %v1661_v53 }
 0xbf6   : > { %v1663_v57 = vmul.f32 %v1662_v55, %v1656_v49 }
 0xbf8   : > { %v1665_v59 = vsel %vm1664_vm4, %v1656_v49, %v1663_v57 }
 0xbf9   : > { %v1668_v60 = vsel %vm1666_vm5, %v1667_v58, %v1665_v59 }
 0xbfa   : > { %v1669_v61 = vadd.f32 1e-06, %v1668_v60 }
 0xbfc   : > { %2366 = vrcp.f32 %v1669_v61  ;;  %v1681_v3 = vand.u32 2147483648, %v1669_v61  ;;  %v1679_v5 = vand.u32 2147483647, %v1669_v61  ;;  %vm1675_vm7 = vweird.f32 %v1669_v61 }
 0xbfe   : > { %v1682_v9 = vor.u32 1.1754944e-38, %v1681_v3  ;;  %vm1680_vm9 = vcmp.eq.f32.partialorder %v1679_v5, 8.507059e+37 }
 0xc02   : > { %v2367_v62 = vpop.eup %2366 }
 0xc03   : > { %v1671_v63 = vmul.f32 %v2367_v62, %v1669_v61  ;;  %vm1676_vm6 = vweird.f32 %v2367_v62 }
 0xc04   : > { %vm1677_vm8 = vmor %vm1675_vm7, %vm1676_vm6 }
 0xc05   : > { %v1672_v2 = vsub.f32 1.0, %v1671_v63 }
 0xc07   : > { %v1673_v4 = vmul.f32 %v2367_v62, %v1672_v2 }
 0xc09   : > { %v1674_v7 = vadd.f32 %v2367_v62, %v1673_v4 }
 0xc0b   : > { %v1678_v11 = vsel %vm1677_vm8, %v2367_v62, %v1674_v7 }
 0xc0c   : > { %v1683_v12 = vsel %vm1680_vm9, %v1682_v9, %v1678_v11 }
 0xc0d   : > { %v1686_v14 = vmul.f32 %v1685_v10, %v1683_v12 }
 0xc0f   : > { %v1688_v15 = vadd.f32 %v1687_v13, %v1686_v14 }
 0xc11   : > { %v1689_v16 = vpack.c.bf16 %v1688_v15, %v1688_v15 }
 0xc13   : > { %2107 = vmatmul.msk.bf16.vlgmr.msrb.gmra.mxu0 %vm866_vm0, %v1689_v16 }
 0xc90   : > { %v1722_v20 = vpop.f32.mrf.mxu0 }
 0xc91   : > { %v1723_v21 = vadd.f32 %v2320_v1, %v1722_v20 }
 0xc93   : > { %v1726_v22 = vmax.f32 %v1723_v21, 0.0 }
 0xc95   : > { %v1727_v23 = vpack.c.bf16 %v1726_v22, %v1726_v22 }
 0xc97   : > { %2124 = vmatmul.msk.bf16.vlgmr.msrb.gmra.mxu1 %vm1764_vm10, %v1727_v23 }
 0xc98   : > { %v1724_v24 = vpop.f32.mrf.mxu0 }
 0xd14   : > { %v1777_v26 = vpop.f32.mrf.mxu1 }
 0xd15   : > { %v1778_v27 = vadd.f32 %v2321_v25, %v1777_v26 }
 0xd17   : > { %v1781_v28 = vadd.f32 %v1778_v27, %v3295_v39 }
 0xd19   : > { %1782 = vst.msk [vmem:[%s860_s1] sm:$0xff] %vm866_vm0, %v1781_v28 }
 0xd1c   : > { %v1779_v0 = vpop.f32.mrf.mxu1 }
 0xd1d PF: > { %p38_p3 = scmp.ge.s32.totalorder %s3051_s25, 4   ;;  %s3393_s0 = smov %s2801_s30 }
 0xd1e   : > { %s3394_s30 = smov %s2805_s20  ;;  %s3395_s20 = smov %s3062_s5 }
 0xd1f   : > { %s3396_s21 = smov %s3051_s25  ;;  %40 = sbr.rel (!%p38_p3) target bundleno = 28 (0x1c), region = 200 }
 0xd24   :  { %1802 = vsyncpa [#allocation4], 1 }
 0xd25   :  { %1804 = vsyncpa [#allocation4 + $0x1], 1 }
 0xd26   :  { %1805 = vsyncpa [#allocation7], 1 }
 0xd27   :  { %1807 = vsyncpa [#allocation7 + $0x1], 1 }
 0xd28   :  { %1808 = vsyncpa [#allocation11], 1 }
 0xd29   :  { %1809 = vsyncpa [#allocation14], 1 }
 0xd2a   :  { %1810 = vsyncpa [#allocation17], 1 }
 0xd2b   :  { %1811 = vsyncpa [#allocation20], 1 }
 0xd2c   :  { %1812 = vsyncpa [#allocation23], 1 }
 0xd2d   :  { %1813 = vsyncpa [#allocation5], 1 }
 0xd2e   :  { %1815 = vsyncpa [#allocation5 + $0x1], 1 }

</bundles_post_ra>
